<compile_context>
chip_gen: v7x
topology: tpu7x:2x2x1
jax: 0.10.0
libtpu: 0.0.40
codegen_flags: <defaults>
</compile_context>

<pallas_src>
import math
from functools import partial

import jax
import jax.numpy as jnp
from jax.experimental import pallas as pl
from jax.experimental.pallas import tpu as pltpu


# --------------------------------- the kernel --------------------------------

def _spatial_attention_kernel(
    x_ref,                        # (C, HW)  f32   full per-batch block (channel-first)
    gn_g_ref, gn_b_ref,           # (1, C)   f32   GroupNorm affine
    gavg_ref,                     # (C, C)   f32   block-diagonal group-averaging matrix
    wq_ref, wk_ref, wv_ref,       # (C, C)   bf16  (wq pre-scaled by 1/sqrt(C))
    bq_ref, bk_ref, bv_ref,       # (1, C)   f32   (bq pre-scaled by 1/sqrt(C))
    wpo_ref, bpo_ref,             # (C, C) bf16 / (1, C) f32   proj_out
    o_ref,                        # (C, TQ)  f32   channel-first output tile
    xn_buf, k_buf, v_buf,         # (HW, C)  bf16 scratch, carried across query tiles
    *, eps, tq):
    c, hw = x_ref.shape
    qi = pl.program_id(1)

    # Once per batch element: transpose to channels-last, GroupNorm (centered two-pass,
    # MXU ones-row reductions over HW, group averaging via the precomputed gavg matmul),
    # cache the normalized activations plus the full K / V projections in VMEM scratch.
    @pl.when(qi == 0)
    def _prep():
        xt = x_ref[...].astype(jnp.float32).T                        # (HW, C)
        ones_row = jnp.ones((1, hw), jnp.float32)
        inv_hw = 1.0 / hw

        mean_c = jnp.dot(ones_row, xt, preferred_element_type=jnp.float32) * inv_hw
        mean_g = jnp.dot(mean_c, gavg_ref[...], preferred_element_type=jnp.float32)
        d = xt - mean_g
        var_c = jnp.dot(ones_row, d * d, preferred_element_type=jnp.float32) * inv_hw
        var_g = jnp.dot(var_c, gavg_ref[...], preferred_element_type=jnp.float32)

        scale = gn_g_ref[...] * jax.lax.rsqrt(var_g + eps)
        shift = gn_b_ref[...] - mean_g * scale
        xn = (xt * scale + shift).astype(jnp.bfloat16)               # (HW, C)

        xn_buf[...] = xn
        k_buf[...] = (jnp.dot(xn, wk_ref[...], preferred_element_type=jnp.float32)
                      + bk_ref[...]).astype(jnp.bfloat16)
        v_buf[...] = (jnp.dot(xn, wv_ref[...], preferred_element_type=jnp.float32)
                      + bv_ref[...]).astype(jnp.bfloat16)

    # ------------------------------ per query tile ------------------------------
    q_start = pl.multiple_of(qi * tq, tq)
    qn = xn_buf[pl.ds(q_start, tq), :]                               # (TQ, C) bf16
    q = (jnp.dot(qn, wq_ref[...], preferred_element_type=jnp.float32)
         + bq_ref[...]).astype(jnp.bfloat16)                         # sm_scale pre-folded

    # scores (TQ, HW): single head, contraction over C (lane-dense)
    s = jax.lax.dot_general(q, k_buf[...], (((1,), (1,)), ((), ())),
                            preferred_element_type=jnp.float32)
    s = s - jnp.max(s, axis=-1, keepdims=True)
    p = jnp.exp(s)
    denom = jnp.sum(p, axis=-1, keepdims=True)                       # (TQ, 1)

    # deferred normalization: AV on un-normalized weights, rescale the (TQ, C) result
    att = jnp.dot(p.astype(jnp.bfloat16), v_buf[...],
                  preferred_element_type=jnp.float32)                # (TQ, C)
    att = att * pl.reciprocal(denom, approx=False)

    out = jnp.dot(att.astype(jnp.bfloat16), wpo_ref[...],
                  preferred_element_type=jnp.float32) + bpo_ref[...]

    # residual add + store in channel-first layout (lane-dense (C, TQ) block)
    o_ref[...] = (out.T + x_ref[:, pl.ds(q_start, tq)].astype(jnp.float32)
                  ).astype(o_ref.dtype)

    # TODO(synk): attention dropout (p=self.dropout) and the causal_mask branch are
    # omitted -- dropout is identity at inference and the reference module's
    # self.dropout / LowerTriangularMask are undefined symbols.


# ------------------------- feature detection (Buffered) ------------------------

def _supports_buffered():
    if not hasattr(pl, "Buffered"):
        return False
    try:
        pl.BlockSpec((8, 128), lambda i, j: (0, 0), pipeline_mode=pl.Buffered(1))
        return True
    except (TypeError, ValueError):
        return False


_HAS_BUFFERED = _supports_buffered()


# ---------------------------------- wrapper -----------------------------------

@partial(jax.jit, static_argnames=("tq", "single_buffer", "num_groups", "eps"))
def _spatial_attention_impl(x_nchw, params, *, tq, single_buffer,
                            num_groups=32, eps=1e-6):
    gn_g, gn_b, wq, wk, wv, bq, bk, bv, wpo, bpo = params
    b, c, h, w = x_nchw.shape
    assert c % num_groups == 0, "GroupNorm(32, C) requires C % 32 == 0"
    hw = h * w

    # Generation-aware VMEM budget (128 MiB on v5e/v6e, 64 MiB on v7x).
    try:
        vmem_cap = int(pltpu.get_tpu_info().vmem_capacity_bytes)
    except Exception:
        vmem_cap = 64 << 20                      # conservative (v7x-sized) fallback
    vmem_budget = int(vmem_cap * 0.85)

    # Query tile: 256 by default, 512 on the 128 MiB parts; keep it a multiple of 128
    # that divides HW (fall back to a single tile for irregular spatial sizes).
    if tq is None:
        tq = 512 if vmem_budget >= (96 << 20) else 256
    tq = min(tq, hw)
    if hw % tq or (tq % 128 and tq != hw):
        tq = hw

    # Trace-time weight prep: bf16 matmul operands (f32 accumulation in-kernel),
    # sm_scale folded into wq/bq, block-diagonal group-averaging matrix precomputed.
    sm_scale = 1.0 / math.sqrt(c)
    gs = c // num_groups
    gid = jnp.arange(c, dtype=jnp.int32) // gs
    gavg = (gid[:, None] == gid[None, :]).astype(jnp.float32) / gs

    weights = (gn_g.astype(jnp.float32), gn_b.astype(jnp.float32), gavg,
               (wq.astype(jnp.float32) * sm_scale).astype(jnp.bfloat16),
               wk.astype(jnp.bfloat16), wv.astype(jnp.bfloat16),
               bq.astype(jnp.float32) * sm_scale,
               bk.astype(jnp.float32), bv.astype(jnp.float32),
               wpo.astype(jnp.bfloat16), bpo.astype(jnp.float32))

    w_bytes = sum(int(p.size) * p.dtype.itemsize for p in weights)
    n_buf = 1 if single_buffer else 2

    def vmem_need(tq_):
        return (n_buf * c * hw * 4          # x block
                + 2 * c * tq_ * 4           # out block (double buffered)
                + 3 * hw * c * 2            # xn / K / V bf16 scratch
                + 3 * tq_ * hw * 4          # score / softmax temporaries
                + n_buf * w_bytes
                + (8 << 20))                # headroom

    # Shrink the query tile (not the budget) if it would not fit.
    while (vmem_need(tq) > vmem_budget and tq >= 256 and tq % 256 == 0
           and hw % (tq // 2) == 0):
        tq //= 2
    n_q = hw // tq
    vmem_limit = int(min(max(vmem_need(tq), 32 << 20), vmem_budget))

    # Channel-first (B, C, HW) view: free reshape, no HBM transpose pass.
    x_cf = x_nchw.reshape(b, c, hw).astype(jnp.float32)

    def weight_spec(arr):
        if single_buffer:
            return pl.BlockSpec(arr.shape, lambda bi, qi: (0, 0),
                                pipeline_mode=pl.Buffered(1))
        return pl.BlockSpec(arr.shape, lambda bi, qi: (0, 0))

    if single_buffer:
        x_spec = pl.BlockSpec((None, c, hw), lambda bi, qi: (bi, 0, 0),
                              pipeline_mode=pl.Buffered(1))
    else:
        x_spec = pl.BlockSpec((None, c, hw), lambda bi, qi: (bi, 0, 0))

    kernel = partial(_spatial_attention_kernel, eps=eps, tq=tq)

    out_cf = pl.pallas_call(
        kernel,
        out_shape=jax.ShapeDtypeStruct((b, c, hw), jnp.float32),
        grid=(b, n_q),
        in_specs=[x_spec] + [weight_spec(wt) for wt in weights],
        out_specs=pl.BlockSpec((None, c, tq), lambda bi, qi: (bi, 0, qi)),
        scratch_shapes=[
            pltpu.VMEM((hw, c), jnp.bfloat16),   # normalized activations (channels-last)
            pltpu.VMEM((hw, c), jnp.bfloat16),   # K (full, per batch element)
            pltpu.VMEM((hw, c), jnp.bfloat16),   # V (full, per batch element)
        ],
        compiler_params=pltpu.CompilerParams(
            dimension_semantics=("parallel", "arbitrary"),
            vmem_limit_bytes=vmem_limit),
    )(x_cf, *weights)

    return out_cf.reshape(b, c, h, w)


def spatial_attention(x_nchw, params, *, tq=None):
    if _HAS_BUFFERED:
        try:
            return _spatial_attention_impl(x_nchw, params, tq=tq, single_buffer=True)
        except pltpu.LoweringException:
            pass   # build rejects Buffered(1) at lowering -> use default double-buffering
    return _spatial_attention_impl(x_nchw, params, tq=tq, single_buffer=False)


# ----------------------- pure-JAX reference (f32, for validation) ----------------------

def _reference(x, params, *, num_groups=32, eps=1e-6):
    gn_g, gn_b, wq, wk, wv, bq, bk, bv, wpo, bpo = params
    b, c, h, w = x.shape
    xg = x.reshape(b, num_groups, c // num_groups, h, w)
    mean = jnp.mean(xg, axis=(2, 3, 4), keepdims=True)
    var = jnp.mean((xg - mean) ** 2, axis=(2, 3, 4), keepdims=True)
    xn = ((xg - mean) * jax.lax.rsqrt(var + eps)).reshape(b, c, h, w)
    xn = xn * gn_g.reshape(1, c, 1, 1) + gn_b.reshape(1, c, 1, 1)
    xs = jnp.transpose(xn.reshape(b, c, h * w), (0, 2, 1))          # (B, HW, C)
    q = xs @ wq + bq
    k = xs @ wk + bk
    v = xs @ wv + bv
    s = jnp.einsum("bqc,bkc->bqk", q, k) / jnp.sqrt(jnp.float32(c))
    p = jax.nn.softmax(s, axis=-1)
    att = jnp.einsum("bqk,bkc->bqc", p, v)
    out = att @ wpo + bpo
    return x + jnp.transpose(out, (0, 2, 1)).reshape(b, c, h, w)


# ----------------------------- deterministic params ----------------------------

def init_params(key, c):
    keys = iter(jax.random.split(key, 10))

    def wgt(shape, scale=0.05):
        return (scale * jax.random.normal(next(keys), shape)).astype(jnp.float32)

    gn_g = (1.0 + 0.05 * jax.random.normal(next(keys), (1, c))).astype(jnp.float32)
    gn_b = wgt((1, c))
    # 1x1 convs stored as (C_in, C_out) right-multiply matrices; the fused qkv conv is
    # split into three slabs at trace time (q / k / v).
    wq, wk, wv = wgt((c, c)), wgt((c, c)), wgt((c, c))
    bq, bk, bv = wgt((1, c)), wgt((1, c)), wgt((1, c))
    wpo, bpo = wgt((c, c)), wgt((1, c))
    return [gn_g, gn_b, wq, wk, wv, bq, bk, bv, wpo, bpo]


if __name__ == "__main__":
    # in_channels must be divisible by 32 (GroupNorm(32, C)); C = 128 keeps every matmul
    # contraction and every output store lane-dense (multiples of 128).
    B, C, H, W = 2, 128, 16, 16

    key = jax.random.PRNGKey(0)
    kx, kp = jax.random.split(key)
    x = jax.random.normal(kx, (B, C, H, W), dtype=jnp.float32)
    params = init_params(kp, C)

    out = spatial_attention(x, params)
    out = jax.block_until_ready(out)

    assert out.shape == (B, C, H, W)
    assert bool(jnp.all(jnp.isfinite(out)))
    # loose tolerance: kernel uses bf16 matmul operands (f32 accumulation)
    ref = _reference(x, params)
    assert float(jnp.max(jnp.abs(out - ref))) < 5e-2
    print("KERNEL_OK")
</pallas_src>

<mosaic_0001>
module attributes {stable_mosaic.version = 11 : i64} {
  func.func @_spatial_attention_kernel(%arg0: i32, %arg1: i32, %arg2: memref<1x128x256xf32, #tpu.memory_space<vmem>>, %arg3: memref<1x128xf32, #tpu.memory_space<vmem>>, %arg4: memref<1x128xf32, #tpu.memory_space<vmem>>, %arg5: memref<128x128xf32, #tpu.memory_space<vmem>>, %arg6: memref<128x128xbf16, #tpu.memory_space<vmem>>, %arg7: memref<128x128xbf16, #tpu.memory_space<vmem>>, %arg8: memref<128x128xbf16, #tpu.memory_space<vmem>>, %arg9: memref<1x128xf32, #tpu.memory_space<vmem>>, %arg10: memref<1x128xf32, #tpu.memory_space<vmem>>, %arg11: memref<1x128xf32, #tpu.memory_space<vmem>>, %arg12: memref<128x128xbf16, #tpu.memory_space<vmem>>, %arg13: memref<1x128xf32, #tpu.memory_space<vmem>>, %arg14: memref<1x128x256xf32, #tpu.memory_space<vmem>>, %arg15: memref<256x128xbf16, #tpu.memory_space<vmem>>, %arg16: memref<256x128xbf16, #tpu.memory_space<vmem>>, %arg17: memref<256x128xbf16, #tpu.memory_space<vmem>>) attributes {dimension_semantics = [#tpu.dimension_semantics<parallel>, #tpu.dimension_semantics<arbitrary>], iteration_bounds = array<i64: 2, 1>, scalar_prefetch = 0 : i64, scratch_operands = 3 : i64, tpu.core_type = #tpu.core_type<tc>, window_params = [{pipeline_mode = #tpu.pipeline_mode<synchronous>, transform_indices = @transform_0, window_bounds = array<i64: 1, 128, 256>}, {pipeline_mode = #tpu.pipeline_mode<synchronous>, transform_indices = @transform_1, window_bounds = array<i64: 1, 128>}, {pipeline_mode = #tpu.pipeline_mode<synchronous>, transform_indices = @transform_2, window_bounds = array<i64: 1, 128>}, {pipeline_mode = #tpu.pipeline_mode<synchronous>, transform_indices = @transform_3, window_bounds = array<i64: 128, 128>}, {pipeline_mode = #tpu.pipeline_mode<synchronous>, transform_indices = @transform_4, window_bounds = array<i64: 128, 128>}, {pipeline_mode = #tpu.pipeline_mode<synchronous>, transform_indices = @transform_5, window_bounds = array<i64: 128, 128>}, {pipeline_mode = #tpu.pipeline_mode<synchronous>, transform_indices = @transform_6, window_bounds = array<i64: 128, 128>}, {pipeline_mode = #tpu.pipeline_mode<synchronous>, transform_indices = @transform_7, window_bounds = array<i64: 1, 128>}, {pipeline_mode = #tpu.pipeline_mode<synchronous>, transform_indices = @transform_8, window_bounds = array<i64: 1, 128>}, {pipeline_mode = #tpu.pipeline_mode<synchronous>, transform_indices = @transform_9, window_bounds = array<i64: 1, 128>}, {pipeline_mode = #tpu.pipeline_mode<synchronous>, transform_indices = @transform_10, window_bounds = array<i64: 128, 128>}, {pipeline_mode = #tpu.pipeline_mode<synchronous>, transform_indices = @transform_11, window_bounds = array<i64: 1, 128>}, {transform_indices = @transform_12, window_bounds = array<i64: 1, 128, 256>}]} {
    %c0_i32 = arith.constant 0 : i32
    %0 = arith.cmpi eq, %arg1, %c0_i32 : i32
    %1 = arith.extui %0 : i1 to i32
    %c0_i32_0 = arith.constant 0 : i32
    %2 = arith.cmpi ne, %1, %c0_i32_0 : i32
    scf.if %2 {
      %c0_23 = arith.constant 0 : index
      %c0_24 = arith.constant 0 : index
      %c0_25 = arith.constant 0 : index
      %42 = vector.load %arg2[%c0_23, %c0_24, %c0_25] : memref<1x128x256xf32, #tpu.memory_space<vmem>>, vector<1x128x256xf32>
      %43 = vector.shape_cast %42 : vector<1x128x256xf32> to vector<128x256xf32>
      %44 = tpu.transpose %43, [1, 0] : vector<128x256xf32> -> vector<256x128xf32>
      %cst_26 = arith.constant 1.000000e+00 : f32
      %45 = vector.broadcast %cst_26 : f32 to vector<1x256xf32>
      %cst_27 = arith.constant dense<0.000000e+00> : vector<1x128xf32>
      %46 = tpu.matmul %45, %44, %cst_27 {dimension_numbers = #tpu.dot_dimension_numbers<[1], [0], [0], [1], [0, 0, 1, 1], [], []>} : vector<1x256xf32>, vector<256x128xf32>, vector<1x128xf32> -> vector<1x128xf32>
      %cst_28 = arith.constant 3.906250e-03 : f32
      %47 = vector.broadcast %cst_28 : f32 to vector<1x128xf32>
      %48 = arith.mulf %46, %47 : vector<1x128xf32>
      %c0_29 = arith.constant 0 : index
      %c0_30 = arith.constant 0 : index
      %49 = vector.load %arg5[%c0_29, %c0_30] : memref<128x128xf32, #tpu.memory_space<vmem>>, vector<128x128xf32>
      %cst_31 = arith.constant dense<0.000000e+00> : vector<1x128xf32>
      %50 = tpu.matmul %48, %49, %cst_31 {dimension_numbers = #tpu.dot_dimension_numbers<[1], [0], [0], [1], [0, 0, 1, 1], [], []>} : vector<1x128xf32>, vector<128x128xf32>, vector<1x128xf32> -> vector<1x128xf32>
      %51 = vector.broadcast %50 : vector<1x128xf32> to vector<256x128xf32>
      %52 = arith.subf %44, %51 : vector<256x128xf32>
      %53 = arith.mulf %52, %52 : vector<256x128xf32>
      %cst_32 = arith.constant dense<0.000000e+00> : vector<1x128xf32>
      %54 = tpu.matmul %45, %53, %cst_32 {dimension_numbers = #tpu.dot_dimension_numbers<[1], [0], [0], [1], [0, 0, 1, 1], [], []>} : vector<1x256xf32>, vector<256x128xf32>, vector<1x128xf32> -> vector<1x128xf32>
      %cst_33 = arith.constant 3.906250e-03 : f32
      %55 = vector.broadcast %cst_33 : f32 to vector<1x128xf32>
      %56 = arith.mulf %54, %55 : vector<1x128xf32>
      %c0_34 = arith.constant 0 : index
      %c0_35 = arith.constant 0 : index
      %57 = vector.load %arg5[%c0_34, %c0_35] : memref<128x128xf32, #tpu.memory_space<vmem>>, vector<128x128xf32>
      %cst_36 = arith.constant dense<0.000000e+00> : vector<1x128xf32>
      %58 = tpu.matmul %56, %57, %cst_36 {dimension_numbers = #tpu.dot_dimension_numbers<[1], [0], [0], [1], [0, 0, 1, 1], [], []>} : vector<1x128xf32>, vector<128x128xf32>, vector<1x128xf32> -> vector<1x128xf32>
      %c0_37 = arith.constant 0 : index
      %c0_38 = arith.constant 0 : index
      %59 = vector.load %arg3[%c0_37, %c0_38] : memref<1x128xf32, #tpu.memory_space<vmem>>, vector<1x128xf32>
      %cst_39 = arith.constant 9.99999997E-7 : f32
      %60 = vector.broadcast %cst_39 : f32 to vector<1x128xf32>
      %61 = arith.addf %58, %60 : vector<1x128xf32>
      %62 = math.rsqrt %61 : vector<1x128xf32>
      %63 = arith.mulf %59, %62 : vector<1x128xf32>
      %c0_40 = arith.constant 0 : index
      %c0_41 = arith.constant 0 : index
      %64 = vector.load %arg4[%c0_40, %c0_41] : memref<1x128xf32, #tpu.memory_space<vmem>>, vector<1x128xf32>
      %65 = arith.mulf %50, %63 : vector<1x128xf32>
      %66 = arith.subf %64, %65 : vector<1x128xf32>
      %67 = vector.broadcast %63 : vector<1x128xf32> to vector<256x128xf32>
      %68 = arith.mulf %44, %67 : vector<256x128xf32>
      %69 = vector.broadcast %66 : vector<1x128xf32> to vector<256x128xf32>
      %70 = arith.addf %68, %69 : vector<256x128xf32>
      %71 = arith.truncf %70 : vector<256x128xf32> to vector<256x128xbf16>
      %c0_42 = arith.constant 0 : index
      %c0_43 = arith.constant 0 : index
      %72 = vector.load %arg15[%c0_42, %c0_43] : memref<256x128xbf16, #tpu.memory_space<vmem>>, vector<256x128xbf16>
      tpu.vector_store %arg15[%c0_42, %c0_43], %71 {strides = array<i32>} : memref<256x128xbf16, #tpu.memory_space<vmem>>, vector<256x128xbf16>,
      %c0_44 = arith.constant 0 : index
      %c0_45 = arith.constant 0 : index
      %73 = vector.load %arg7[%c0_44, %c0_45] : memref<128x128xbf16, #tpu.memory_space<vmem>>, vector<128x128xbf16>
      %cst_46 = arith.constant dense<0.000000e+00> : vector<256x128xf32>
      %74 = tpu.matmul %71, %73, %cst_46 {dimension_numbers = #tpu.dot_dimension_numbers<[1], [0], [0], [1], [0, 0, 1, 1], [], []>} : vector<256x128xbf16>, vector<128x128xbf16>, vector<256x128xf32> -> vector<256x128xf32>
      %c0_47 = arith.constant 0 : index
      %c0_48 = arith.constant 0 : index
      %75 = vector.load %arg10[%c0_47, %c0_48] : memref<1x128xf32, #tpu.memory_space<vmem>>, vector<1x128xf32>
      %76 = vector.broadcast %75 : vector<1x128xf32> to vector<256x128xf32>
      %77 = arith.addf %74, %76 : vector<256x128xf32>
      %78 = arith.truncf %77 : vector<256x128xf32> to vector<256x128xbf16>
      %c0_49 = arith.constant 0 : index
      %c0_50 = arith.constant 0 : index
      %79 = vector.load %arg16[%c0_49, %c0_50] : memref<256x128xbf16, #tpu.memory_space<vmem>>, vector<256x128xbf16>
      tpu.vector_store %arg16[%c0_49, %c0_50], %78 {strides = array<i32>} : memref<256x128xbf16, #tpu.memory_space<vmem>>, vector<256x128xbf16>,
      %c0_51 = arith.constant 0 : index
      %c0_52 = arith.constant 0 : index
      %80 = vector.load %arg8[%c0_51, %c0_52] : memref<128x128xbf16, #tpu.memory_space<vmem>>, vector<128x128xbf16>
      %cst_53 = arith.constant dense<0.000000e+00> : vector<256x128xf32>
      %81 = tpu.matmul %71, %80, %cst_53 {dimension_numbers = #tpu.dot_dimension_numbers<[1], [0], [0], [1], [0, 0, 1, 1], [], []>} : vector<256x128xbf16>, vector<128x128xbf16>, vector<256x128xf32> -> vector<256x128xf32>
      %c0_54 = arith.constant 0 : index
      %c0_55 = arith.constant 0 : index
      %82 = vector.load %arg11[%c0_54, %c0_55] : memref<1x128xf32, #tpu.memory_space<vmem>>, vector<1x128xf32>
      %83 = vector.broadcast %82 : vector<1x128xf32> to vector<256x128xf32>
      %84 = arith.addf %81, %83 : vector<256x128xf32>
      %85 = arith.truncf %84 : vector<256x128xf32> to vector<256x128xbf16>
      %c0_56 = arith.constant 0 : index
      %c0_57 = arith.constant 0 : index
      %86 = vector.load %arg17[%c0_56, %c0_57] : memref<256x128xbf16, #tpu.memory_space<vmem>>, vector<256x128xbf16>
      tpu.vector_store %arg17[%c0_56, %c0_57], %85 {strides = array<i32>} : memref<256x128xbf16, #tpu.memory_space<vmem>>, vector<256x128xbf16>,
    } else {
    }
    %c256_i32 = arith.constant 256 : i32
    %3 = arith.muli %arg1, %c256_i32 : i32
    %4 = tpu.assume_multiple %3, 256 : i32
    %5 = arith.index_cast %4 : i32 to index
    %c0 = arith.constant 0 : index
    %6 = vector.load %arg15[%5, %c0] : memref<256x128xbf16, #tpu.memory_space<vmem>>, vector<256x128xbf16>
    %c0_1 = arith.constant 0 : index
    %c0_2 = arith.constant 0 : index
    %7 = vector.load %arg6[%c0_1, %c0_2] : memref<128x128xbf16, #tpu.memory_space<vmem>>, vector<128x128xbf16>
    %cst = arith.constant dense<0.000000e+00> : vector<256x128xf32>
    %8 = tpu.matmul %6, %7, %cst {dimension_numbers = #tpu.dot_dimension_numbers<[1], [0], [0], [1], [0, 0, 1, 1], [], []>} : vector<256x128xbf16>, vector<128x128xbf16>, vector<256x128xf32> -> vector<256x128xf32>
    %c0_3 = arith.constant 0 : index
    %c0_4 = arith.constant 0 : index
    %9 = vector.load %arg9[%c0_3, %c0_4] : memref<1x128xf32, #tpu.memory_space<vmem>>, vector<1x128xf32>
    %10 = vector.broadcast %9 : vector<1x128xf32> to vector<256x128xf32>
    %11 = arith.addf %8, %10 : vector<256x128xf32>
    %12 = arith.truncf %11 : vector<256x128xf32> to vector<256x128xbf16>
    %c0_5 = arith.constant 0 : index
    %c0_6 = arith.constant 0 : index
    %13 = vector.load %arg16[%c0_5, %c0_6] : memref<256x128xbf16, #tpu.memory_space<vmem>>, vector<256x128xbf16>
    %cst_7 = arith.constant dense<0.000000e+00> : vector<256x256xf32>
    %14 = tpu.matmul %12, %13, %cst_7 {dimension_numbers = #tpu.dot_dimension_numbers<[1], [1], [0], [0], [0, 0, 1, 0], [], []>} : vector<256x128xbf16>, vector<256x128xbf16>, vector<256x256xf32> -> vector<256x256xf32>
    %cst_8 = arith.constant dense<0xFF800000> : vector<256xf32>
    %15 = vector.multi_reduction <maximumf>, %14, %cst_8 [1] : vector<256x256xf32> to vector<256xf32>
    %16 = vector.shape_cast %15 : vector<256xf32> to vector<256x1xf32>
    %17 = vector.broadcast %16 : vector<256x1xf32> to vector<256x256xf32>
    %18 = arith.subf %14, %17 : vector<256x256xf32>
    %19 = math.exp %18 : vector<256x256xf32>
    %cst_9 = arith.constant dense<0.000000e+00> : vector<256xf32>
    %20 = vector.multi_reduction <add>, %19, %cst_9 [1] : vector<256x256xf32> to vector<256xf32>
    %21 = vector.shape_cast %20 : vector<256xf32> to vector<256x1xf32>
    %22 = arith.truncf %19 : vector<256x256xf32> to vector<256x256xbf16>
    %c0_10 = arith.constant 0 : index
    %c0_11 = arith.constant 0 : index
    %23 = vector.load %arg17[%c0_10, %c0_11] : memref<256x128xbf16, #tpu.memory_space<vmem>>, vector<256x128xbf16>
    %cst_12 = arith.constant dense<0.000000e+00> : vector<256x128xf32>
    %24 = tpu.matmul %22, %23, %cst_12 {dimension_numbers = #tpu.dot_dimension_numbers<[1], [0], [0], [1], [0, 0, 1, 1], [], []>} : vector<256x256xbf16>, vector<256x128xbf16>, vector<256x128xf32> -> vector<256x128xf32>
    %25 = tpu.reciprocal %21 : vector<256x1xf32> -> vector<256x1xf32>
    %26 = vector.broadcast %25 : vector<256x1xf32> to vector<256x128xf32>
    %27 = arith.mulf %24, %26 : vector<256x128xf32>
    %28 = arith.truncf %27 : vector<256x128xf32> to vector<256x128xbf16>
    %c0_13 = arith.constant 0 : index
    %c0_14 = arith.constant 0 : index
    %29 = vector.load %arg12[%c0_13, %c0_14] : memref<128x128xbf16, #tpu.memory_space<vmem>>, vector<128x128xbf16>
    %cst_15 = arith.constant dense<0.000000e+00> : vector<256x128xf32>
    %30 = tpu.matmul %28, %29, %cst_15 {dimension_numbers = #tpu.dot_dimension_numbers<[1], [0], [0], [1], [0, 0, 1, 1], [], []>} : vector<256x128xbf16>, vector<128x128xbf16>, vector<256x128xf32> -> vector<256x128xf32>
    %c0_16 = arith.constant 0 : index
    %c0_17 = arith.constant 0 : index
    %31 = vector.load %arg13[%c0_16, %c0_17] : memref<1x128xf32, #tpu.memory_space<vmem>>, vector<1x128xf32>
    %32 = vector.broadcast %31 : vector<1x128xf32> to vector<256x128xf32>
    %33 = arith.addf %30, %32 : vector<256x128xf32>
    %34 = tpu.transpose %33, [1, 0] : vector<256x128xf32> -> vector<128x256xf32>
    %c0_18 = arith.constant 0 : index
    %c0_19 = arith.constant 0 : index
    %35 = arith.index_cast %4 : i32 to index
    %36 = vector.load %arg2[%c0_18, %c0_19, %35] : memref<1x128x256xf32, #tpu.memory_space<vmem>>, vector<1x128x256xf32>
    %37 = vector.shape_cast %36 : vector<1x128x256xf32> to vector<128x256xf32>
    %38 = arith.addf %34, %37 : vector<128x256xf32>
    %c0_20 = arith.constant 0 : index
    %c0_21 = arith.constant 0 : index
    %c0_22 = arith.constant 0 : index
    %39 = vector.load %arg14[%c0_20, %c0_21, %c0_22] : memref<1x128x256xf32, #tpu.memory_space<vmem>>, vector<1x128x256xf32>
    %40 = vector.shape_cast %39 : vector<1x128x256xf32> to vector<128x256xf32>
    %41 = vector.shape_cast %38 : vector<128x256xf32> to vector<1x128x256xf32>
    tpu.vector_store %arg14[%c0_20, %c0_21, %c0_22], %41 {strides = array<i32>} : memref<1x128x256xf32, #tpu.memory_space<vmem>>, vector<1x128x256xf32>,
    return
  }
  func.func @transform_0(%arg0: i32, %arg1: i32) -> (i32, i32, i32) {
    %c0_i32 = arith.constant 0 : i32
    %c0_i32_0 = arith.constant 0 : i32
    %c0_i32_1 = arith.constant 0 : i32
    return %arg0, %c0_i32, %c0_i32_0 : i32, i32, i32
  }
  func.func @transform_1(%arg0: i32, %arg1: i32) -> (i32, i32) {
    %c0_i32 = arith.constant 0 : i32
    %c0_i32_0 = arith.constant 0 : i32
    %c0_i32_1 = arith.constant 0 : i32
    return %c0_i32, %c0_i32_0 : i32, i32
  }
  func.func @transform_2(%arg0: i32, %arg1: i32) -> (i32, i32) {
    %c0_i32 = arith.constant 0 : i32
    %c0_i32_0 = arith.constant 0 : i32
    %c0_i32_1 = arith.constant 0 : i32
    return %c0_i32, %c0_i32_0 : i32, i32
  }
  func.func @transform_3(%arg0: i32, %arg1: i32) -> (i32, i32) {
    %c0_i32 = arith.constant 0 : i32
    %c0_i32_0 = arith.constant 0 : i32
    %c0_i32_1 = arith.constant 0 : i32
    return %c0_i32, %c0_i32_0 : i32, i32
  }
  func.func @transform_4(%arg0: i32, %arg1: i32) -> (i32, i32) {
    %c0_i32 = arith.constant 0 : i32
    %c0_i32_0 = arith.constant 0 : i32
    %c0_i32_1 = arith.constant 0 : i32
    return %c0_i32, %c0_i32_0 : i32, i32
  }
  func.func @transform_5(%arg0: i32, %arg1: i32) -> (i32, i32) {
    %c0_i32 = arith.constant 0 : i32
    %c0_i32_0 = arith.constant 0 : i32
    %c0_i32_1 = arith.constant 0 : i32
    return %c0_i32, %c0_i32_0 : i32, i32
  }
  func.func @transform_6(%arg0: i32, %arg1: i32) -> (i32, i32) {
    %c0_i32 = arith.constant 0 : i32
    %c0_i32_0 = arith.constant 0 : i32
    %c0_i32_1 = arith.constant 0 : i32
    return %c0_i32, %c0_i32_0 : i32, i32
  }
  func.func @transform_7(%arg0: i32, %arg1: i32) -> (i32, i32) {
    %c0_i32 = arith.constant 0 : i32
    %c0_i32_0 = arith.constant 0 : i32
    %c0_i32_1 = arith.constant 0 : i32
    return %c0_i32, %c0_i32_0 : i32, i32
  }
  func.func @transform_8(%arg0: i32, %arg1: i32) -> (i32, i32) {
    %c0_i32 = arith.constant 0 : i32
    %c0_i32_0 = arith.constant 0 : i32
    %c0_i32_1 = arith.constant 0 : i32
    return %c0_i32, %c0_i32_0 : i32, i32
  }
  func.func @transform_9(%arg0: i32, %arg1: i32) -> (i32, i32) {
    %c0_i32 = arith.constant 0 : i32
    %c0_i32_0 = arith.constant 0 : i32
    %c0_i32_1 = arith.constant 0 : i32
    return %c0_i32, %c0_i32_0 : i32, i32
  }
  func.func @transform_10(%arg0: i32, %arg1: i32) -> (i32, i32) {
    %c0_i32 = arith.constant 0 : i32
    %c0_i32_0 = arith.constant 0 : i32
    %c0_i32_1 = arith.constant 0 : i32
    return %c0_i32, %c0_i32_0 : i32, i32
  }
  func.func @transform_11(%arg0: i32, %arg1: i32) -> (i32, i32) {
    %c0_i32 = arith.constant 0 : i32
    %c0_i32_0 = arith.constant 0 : i32
    %c0_i32_1 = arith.constant 0 : i32
    return %c0_i32, %c0_i32_0 : i32, i32
  }
  func.func @transform_12(%arg0: i32, %arg1: i32) -> (i32, i32, i32) {
    %c0_i32 = arith.constant 0 : i32
    %c0_i32_0 = arith.constant 0 : i32
    return %arg0, %c0_i32, %arg1 : i32, i32, i32
  }
}

</mosaic_0001>

<bundles_post_ra>
// kernel: _spatial_attention_impl.1
= control target key start
LH: loop header
LB: loop body
LE: loop exit
PB: predicated region body
PF: predicated region fallthrough
CT: control target
= control target key end

     0   :  { %s4310_s21 = smov 0   ;;  %s4312_s22 = smov 0   ;;  %s5525_s0 = inlined_call_operand.vmem [shape: f32[2,128,256], index: 0, kind: input, shape index: {}]   ;;  %s5526_s1 = inlined_call_operand.vmem [shape: f32[1,128], index: 1, kind: input, shape index: {}]   ;;  %s5527_s2 = inlined_call_operand.vmem [shape: f32[1,128], index: 2, kind: input, shape index: {}]   ;;  %s5528_s3 = inlined_call_operand.vmem [shape: f32[128,128], index: 3, kind: input, shape index: {}]   ;;  %s5529_s4 = inlined_call_operand.vmem [shape: bf16[128,128], index: 4, kind: input, shape index: {}]   ;;  %s5530_s5 = inlined_call_operand.vmem [shape: bf16[128,128], index: 5, kind: input, shape index: {}]   ;;  %s5531_s6 = inlined_call_operand.vmem [shape: bf16[128,128], index: 6, kind: input, shape index: {}]   ;;  %s5532_s7 = inlined_call_operand.vmem [shape: f32[1,128], index: 7, kind: input, shape index: {}]   ;;  %s5533_s8 = inlined_call_operand.vmem [shape: f32[1,128], index: 8, kind: input, shape index: {}]   ;;  %s5534_s9 = inlined_call_operand.vmem [shape: f32[1,128], index: 9, kind: input, shape index: {}]   ;;  %s5535_s10 = inlined_call_operand.vmem [shape: bf16[128,128], index: 10, kind: input, shape index: {}]   ;;  %s5536_s11 = inlined_call_operand.vmem [shape: f32[1,128], index: 11, kind: input, shape index: {}]   ;;  %s5537_s12 = inlined_call_operand.vmem [shape: f32[2,128,256], index: 12, kind: output, shape index: {}]  }
   0x1   :  { %s4314_s23 = smov 0  }
   0x2 LB: > { %s34_s24 = sadd.s32 1, %s4235_s22  ;;  %p3184_p0 = scmp.ge.s32.totalorder %s4239_s23, 1  ;;  %s4239_s23 = sphi %s4314_s23, %s22_s23   ;;  %s4235_s22 = sphi %s4312_s22, %s5584_s22   ;;  %s4231_s21 = sphi %s4310_s21, %s5583_s21  }
   0x3   : > { %p36_p1 = scmp.ge.s32.totalorder %s34_s24, 2  ;;  %p376_p2 = scmp.lt.s32.totalorder %s4239_s23, 3 }
   0x5   : > { %s5586_s24 = smov (%p36_p1, %s34_s24), 0  ;;  %p377_p3 = pnand %p3184_p0, %p376_p2 }
   0x7   : > { %380 = sbr.rel (%p377_p3) target bundleno = 2545 (0x9f1), region = 68 }
   0xe   : > { %p422_p4 = scmp.lt.s32.totalorder %s4231_s21, 1  ;;  %v4241_v32 = vmov 1.0   ;;  %v609_v33 = vld [vmem:[%s5528_s3] sm:$0xff]  ;;  %v610_v34 = vld [vmem:[%s5528_s3 + $0x8] sm:$0xff]  ;;  %v611_v35 = vld [vmem:[%s5528_s3 + $0x10] sm:$0xff]  ;;  %v4242_v36 = vmov 0.0|0.0  }
   0xf   : > { %602 = vmatprep.mubr.f32.mxu0 %v4241_v32  ;;  %3883 = vmatprep.subr.bf16.mxu1 %v4242_v36  ;;  %v4381_v37 = vpack.c.bf16 %v610_v34, %v609_v33  ;;  %v612_v38 = vld [vmem:[%s5528_s3 + $0x18] sm:$0xff]  ;;  %v613_v40 = vld [vmem:[%s5528_s3 + $0x20] sm:$0xff]  ;;  %v614_v41 = vld [vmem:[%s5528_s3 + $0x28] sm:$0xff]  ;;  %vm4243_vm0 = vmmov 0  }
  0x10   : > { %s5588_s21 = smov (!%p422_p4, %s4231_s21), 1  ;;  %v4387_v39 = vpack.c.bf16 %v612_v38, %v611_v35  ;;  %v4397_v42 = vpack.c.bf16 %v614_v41, %v613_v40  ;;  %v615_v43 = vld [vmem:[%s5528_s3 + $0x30] sm:$0xff]  ;;  %v616_v44 = vld [vmem:[%s5528_s3 + $0x38] sm:$0xff]  ;;  %v617_v46 = vld [vmem:[%s5528_s3 + $0x40] sm:$0xff] }
  0x11   : > { %s3227_s25 = sshll.u32 %s5588_s21, 8  ;;  %3885 = vmatpush3.bf16.msra.mxu1 %v4381_v37  ;;  %v4407_v45 = vpack.c.bf16 %v616_v44, %v615_v43  ;;  %v618_v47 = vld [vmem:[%s5528_s3 + $0x48] sm:$0xff]  ;;  %v619_v49 = vld [vmem:[%s5528_s3 + $0x50] sm:$0xff]  ;;  %v620_v50 = vld [vmem:[%s5528_s3 + $0x58] sm:$0xff] }
  0x12   : > { %s4336_s28 = scalar_lea.vmem %s5525_s0, %s3227_s25  ;;  %3886 = vmatprep.subr.bf16.mxu1 %v4242_v36  ;;  %v4417_v48 = vpack.c.bf16 %v618_v47, %v617_v46  ;;  %v4427_v51 = vpack.c.bf16 %v620_v50, %v619_v49  ;;  %v621_v52 = vld [vmem:[%s5528_s3 + $0x60] sm:$0xff]  ;;  %v622_v53 = vld [vmem:[%s5528_s3 + $0x68] sm:$0xff]  ;;  %v623_v44 = vld [vmem:[%s5528_s3 + $0x70] sm:$0xff]  ;;  %v4244_v49 = vmov 0.0   ;;  %s5451_s13 = scalar_lea.vmem %s5537_s12, %s3227_s25 }
  0x13   : > { %v443_v0 = vld [vmem:[%s4336_s28 + $0x8] sm:$0xff]  ;;  %v442_v1 = vld [vmem:[%s4336_s28] sm:$0xff]  ;;  %v445_v2 = vld [vmem:[%s4336_s28 + $0x18] sm:$0xff]  ;;  %v4437_v54 = vpack.c.bf16 %v622_v53, %v621_v52  ;;  %3621 = vmatprep.mubr.msk.f32.mxu1 %vm4243_vm0, %v4244_v49 }
  0x14   : > { %506 = vxpose.xlu0.b32.start [1/16] %v443_v0, 128  ;;  %474 = vxpose.xlu1.b32.start [1/16] %v442_v1, 128  ;;  %v444_v3 = vld [vmem:[%s4336_s28 + $0x10] sm:$0xff]  ;;  %v447_v4 = vld [vmem:[%s4336_s28 + $0x28] sm:$0xff]  ;;  %v446_v5 = vld [vmem:[%s4336_s28 + $0x20] sm:$0xff] }
  0x15   : > { %v449_v6 = vld [vmem:[%s4336_s28 + $0x38] sm:$0xff]  ;;  %v448_v7 = vld [vmem:[%s4336_s28 + $0x30] sm:$0xff]  ;;  %v451_v8 = vld [vmem:[%s4336_s28 + $0x48] sm:$0xff]  ;;  %3888 = vmatpush3.bf16.msra.mxu1 %v4387_v39 }
  0x16   : > { %v450_v9 = vld [vmem:[%s4336_s28 + $0x40] sm:$0xff]  ;;  %v453_v10 = vld [vmem:[%s4336_s28 + $0x58] sm:$0xff]  ;;  %v452_v11 = vld [vmem:[%s4336_s28 + $0x50] sm:$0xff]  ;;  %3889 = vmatprep.subr.bf16.mxu1 %v4242_v36 }
  0x17   : > { %v455_v12 = vld [vmem:[%s4336_s28 + $0x68] sm:$0xff]  ;;  %v454_v13 = vld [vmem:[%s4336_s28 + $0x60] sm:$0xff]  ;;  %v457_v14 = vld [vmem:[%s4336_s28 + $0x78] sm:$0xff] }
  0x18   : > { %507 = vxpose.xlu0.b32.cont [2/16] %v445_v2, 128  ;;  %475 = vxpose.xlu1.b32.cont [2/16] %v444_v3, 128  ;;  %v456_v15 = vld [vmem:[%s4336_s28 + $0x70] sm:$0xff]  ;;  %v459_v16 = vld [vmem:[%s4336_s28 + $0x88] sm:$0xff]  ;;  %v458_v17 = vld [vmem:[%s4336_s28 + $0x80] sm:$0xff] }
  0x19   : > { %v461_v18 = vld [vmem:[%s4336_s28 + $0x98] sm:$0xff]  ;;  %v460_v19 = vld [vmem:[%s4336_s28 + $0x90] sm:$0xff]  ;;  %v463_v20 = vld [vmem:[%s4336_s28 + $0xa8] sm:$0xff]  ;;  %3891 = vmatpush3.bf16.msra.mxu1 %v4397_v42 }
  0x1a   : > { %v462_v21 = vld [vmem:[%s4336_s28 + $0xa0] sm:$0xff]  ;;  %v465_v22 = vld [vmem:[%s4336_s28 + $0xb8] sm:$0xff]  ;;  %v464_v23 = vld [vmem:[%s4336_s28 + $0xb0] sm:$0xff]  ;;  %3892 = vmatprep.subr.bf16.mxu1 %v4242_v36 }
  0x1b   : > { %v467_v24 = vld [vmem:[%s4336_s28 + $0xc8] sm:$0xff]  ;;  %v466_v25 = vld [vmem:[%s4336_s28 + $0xc0] sm:$0xff]  ;;  %v469_v26 = vld [vmem:[%s4336_s28 + $0xd8] sm:$0xff] }
  0x1c   : > { %508 = vxpose.xlu0.b32.cont [3/16] %v447_v4, 128  ;;  %476 = vxpose.xlu1.b32.cont [3/16] %v446_v5, 128  ;;  %v468_v27 = vld [vmem:[%s4336_s28 + $0xd0] sm:$0xff]  ;;  %v471_v28 = vld [vmem:[%s4336_s28 + $0xe8] sm:$0xff]  ;;  %v470_v29 = vld [vmem:[%s4336_s28 + $0xe0] sm:$0xff] }
  0x1d   : > { %v473_v30 = vld [vmem:[%s4336_s28 + $0xf8] sm:$0xff]  ;;  %v472_v31 = vld [vmem:[%s4336_s28 + $0xf0] sm:$0xff]  ;;  %3894 = vmatpush3.bf16.msra.mxu1 %v4407_v45 }
  0x1e   : > { %3895 = vmatprep.subr.bf16.mxu1 %v4242_v36  ;;  %v624_v46 = vld [vmem:[%s5528_s3 + $0x78] sm:$0xff] }
  0x1f   : > { %v3905_v47 = vpack.c.bf16 %v624_v46, %v623_v44 }
  0x20   : > { %509 = vxpose.xlu0.b32.cont [4/16] %v449_v6, 128  ;;  %477 = vxpose.xlu1.b32.cont [4/16] %v448_v7, 128 }
  0x21   : > { %3897 = vmatpush3.bf16.msra.mxu1 %v4417_v48 }
  0x22   : > { %3898 = vmatprep.subr.bf16.mxu1 %v4242_v36 }
  0x24   : > { %510 = vxpose.xlu0.b32.cont [5/16] %v451_v8, 128  ;;  %478 = vxpose.xlu1.b32.cont [5/16] %v450_v9, 128 }
  0x25   : > { %3900 = vmatpush3.bf16.msra.mxu1 %v4427_v51 }
  0x26   : > { %3901 = vmatprep.subr.bf16.mxu1 %v4242_v36 }
  0x28   : > { %511 = vxpose.xlu0.b32.cont [6/16] %v453_v10, 128  ;;  %479 = vxpose.xlu1.b32.cont [6/16] %v452_v11, 128 }
  0x29   : > { %3903 = vmatpush3.bf16.msra.mxu1 %v4437_v54 }
  0x2a   : > { %3904 = vmatprep.subr.bf16.mxu1 %v4242_v36 }
  0x2c   : > { %512 = vxpose.xlu0.b32.cont [7/16] %v455_v12, 128  ;;  %480 = vxpose.xlu1.b32.cont [7/16] %v454_v13, 128 }
  0x2d   : > { %3906 = vmatpush3.bf16.msra.mxu1 %v3905_v47 }
  0x2e   : > { %3939 = vmatprep.subr.bf16.mxu1 %v4242_v36 }
  0x30   : > { %513 = vxpose.xlu0.b32.cont [8/16] %v457_v14, 128  ;;  %481 = vxpose.xlu1.b32.cont [8/16] %v456_v15, 128 }
  0x34   : > { %514 = vxpose.xlu0.b32.cont [9/16] %v459_v16, 128  ;;  %482 = vxpose.xlu1.b32.cont [9/16] %v458_v17, 128 }
  0x38   : > { %515 = vxpose.xlu0.b32.cont [10/16] %v461_v18, 128  ;;  %483 = vxpose.xlu1.b32.cont [10/16] %v460_v19, 128 }
  0x3c   : > { %516 = vxpose.xlu0.b32.cont [11/16] %v463_v20, 128  ;;  %484 = vxpose.xlu1.b32.cont [11/16] %v462_v21, 128 }
  0x40   : > { %517 = vxpose.xlu0.b32.cont [12/16] %v465_v22, 128  ;;  %485 = vxpose.xlu1.b32.cont [12/16] %v464_v23, 128 }
  0x44   : > { %518 = vxpose.xlu0.b32.cont [13/16] %v467_v24, 128  ;;  %486 = vxpose.xlu1.b32.cont [13/16] %v466_v25, 128 }
  0x48   : > { %519 = vxpose.xlu0.b32.cont [14/16] %v469_v26, 128  ;;  %487 = vxpose.xlu1.b32.cont [14/16] %v468_v27, 128 }
  0x4c   : > { %520 = vxpose.xlu0.b32.cont [15/16] %v471_v28, 128  ;;  %488 = vxpose.xlu1.b32.cont [15/16] %v470_v29, 128 }
  0x50   : > { %521 = vxpose.xlu0.b32.end [16/16] %v473_v30, 128  ;;  %489 = vxpose.xlu1.b32.end [16/16] %v472_v31, 128 }
  0x94   : > { %v4442_v55 = vpop.trf.xlu0  ;;  %v4444_v56 = vpop.trf.xlu1 }
  0x98   : > { %v4446_v57 = vpop.trf.xlu0  ;;  %v4448_v58 = vpop.trf.xlu1 }
  0x99   : > { %v3851_v59 = vpack.c.bf16 %v4446_v57, %v4442_v55  ;;  %v3853_v60 = vpack.c.bf16 %v4448_v58, %v4444_v56 }
  0x9b   : > { %3852 = vmatprep.subr.bf16.mxu0 %v3851_v59 }
  0x9c   : > { %v4454_v61 = vpop.trf.xlu0  ;;  %3854 = vmatpush3.bf16.msra.mxu0 %v3853_v60  ;;  %v4456_v62 = vpop.trf.xlu1 }
  0xa0   : > { %v4458_v63 = vpop.trf.xlu0  ;;  %v4460_v0 = vpop.trf.xlu1 }
  0xa1   : > { %v3855_v1 = vpack.c.bf16 %v4458_v63, %v4454_v61  ;;  %v3857_v2 = vpack.c.bf16 %v4460_v0, %v4456_v62 }
  0xa3   : > { %3856 = vmatprep.subr.bf16.mxu0 %v3855_v1 }
  0xa4   : > { %v4466_v3 = vpop.trf.xlu0  ;;  %3858 = vmatpush3.bf16.msra.mxu0 %v3857_v2  ;;  %v4468_v4 = vpop.trf.xlu1 }
  0xa8   : > { %v4470_v5 = vpop.trf.xlu0  ;;  %v4472_v6 = vpop.trf.xlu1 }
  0xa9   : > { %v3859_v7 = vpack.c.bf16 %v4470_v5, %v4466_v3  ;;  %v3861_v8 = vpack.c.bf16 %v4472_v6, %v4468_v4 }
  0xab   : > { %3860 = vmatprep.subr.bf16.mxu0 %v3859_v7 }
  0xac   : > { %v4478_v9 = vpop.trf.xlu0  ;;  %3862 = vmatpush3.bf16.msra.mxu0 %v3861_v8  ;;  %v4480_v10 = vpop.trf.xlu1 }
  0xb0   : > { %v4482_v11 = vpop.trf.xlu0  ;;  %v4484_v12 = vpop.trf.xlu1 }
  0xb1   : > { %v3863_v13 = vpack.c.bf16 %v4482_v11, %v4478_v9  ;;  %v3865_v14 = vpack.c.bf16 %v4484_v12, %v4480_v10 }
  0xb3   : > { %3864 = vmatprep.subr.bf16.mxu0 %v3863_v13 }
  0xb4   : > { %v4490_v15 = vpop.trf.xlu0  ;;  %3866 = vmatpush3.bf16.msra.mxu0 %v3865_v14  ;;  %v4492_v16 = vpop.trf.xlu1 }
  0xb8   : > { %v4494_v17 = vpop.trf.xlu0  ;;  %v4496_v18 = vpop.trf.xlu1 }
  0xb9   : > { %v3867_v19 = vpack.c.bf16 %v4494_v17, %v4490_v15  ;;  %v3869_v20 = vpack.c.bf16 %v4496_v18, %v4492_v16 }
  0xbb   : > { %3868 = vmatprep.subr.bf16.mxu0 %v3867_v19 }
  0xbc   : > { %v4502_v21 = vpop.trf.xlu0  ;;  %3870 = vmatpush3.bf16.msra.mxu0 %v3869_v20  ;;  %v4504_v22 = vpop.trf.xlu1 }
  0xc0   : > { %v4506_v23 = vpop.trf.xlu0  ;;  %v4508_v24 = vpop.trf.xlu1 }
  0xc1   : > { %v3871_v25 = vpack.c.bf16 %v4506_v23, %v4502_v21  ;;  %v3873_v26 = vpack.c.bf16 %v4508_v24, %v4504_v22 }
  0xc3   : > { %3872 = vmatprep.subr.bf16.mxu0 %v3871_v25 }
  0xc4   : > { %v4514_v27 = vpop.trf.xlu0  ;;  %3874 = vmatpush3.bf16.msra.mxu0 %v3873_v26  ;;  %v4516_v28 = vpop.trf.xlu1 }
  0xc8   : > { %v4518_v29 = vpop.trf.xlu0  ;;  %v4520_v30 = vpop.trf.xlu1 }
  0xc9   : > { %v3877_v31 = vpack.c.bf16 %v4520_v30, %v4516_v28  ;;  %v3875_v33 = vpack.c.bf16 %v4518_v29, %v4514_v27 }
  0xcb   : > { %3876 = vmatprep.subr.bf16.mxu0 %v3875_v33 }
  0xcc   : > { %v4526_v34 = vpop.trf.xlu0  ;;  %3878 = vmatpush3.bf16.msra.mxu0 %v3877_v31  ;;  %v4528_v35 = vpop.trf.xlu1 }
  0xd0   : > { %v4530_v38 = vpop.trf.xlu0  ;;  %v4532_v40 = vpop.trf.xlu1 }
  0xd1   : > { %v3879_v41 = vpack.c.bf16 %v4530_v38, %v4526_v34  ;;  %v3881_v43 = vpack.c.bf16 %v4532_v40, %v4528_v35 }
  0xd3   : > { %3880 = vmatprep.subr.bf16.mxu0 %v3879_v41 }
  0xd4   : > { %3882 = vmatpush3.bf16.msra.mxu0 %v3881_v43 }
  0xd7   : > { %603 = vmatmul.mubr.f32.vlgmr.msra.gmra.mrb[0].mxu0 %v4241_v32 }
  0xd8   : > { %827 = vmatprep.mubr.f32.mxu0 %v4241_v32 }
 0x1aa   : > { %v3261_v50 = vpop.f32.mrb[0].mxu0 }
 0x1ab   : > { %v3262_v52 = vpop.f32.mrb[1].mxu0 }
 0x1ac   : > { %v3263_v53 = vadd.f32 %v3262_v52, %v3261_v50 }
 0x1ae   : > { %v608_v59 = vmul.f32 0.00390625, %v3263_v53 }
 0x1b0   : > { %3622 = vmatmul.mubr.f32.vlgmr.msra.gmra.mrb[0].mxu1 %v608_v59 }
 0x1b1   : > { %3941 = vmatpush3.bf16.msra.mxu1 %v4381_v37  ;;  %3656 = vmatprep.mubr.msk.f32.mxu1 %vm4243_vm0, %v4244_v49  ;;  %v695_v37 = vlaneseq }
 0x1b2   : > { %3942 = vmatprep.subr.bf16.mxu1 %v4242_v36 }
 0x1b5   : > { %3944 = vmatpush3.bf16.msra.mxu1 %v4387_v39  ;;  %v696_v39 = vshrl.u32 %v695_v37, 7 }
 0x1b6   : > { %3945 = vmatprep.subr.bf16.mxu1 %v4242_v36 }
 0x1b7   : > { %v4563_v60 = vsub.s32 0, %v696_v39 }
 0x1b9   : > { %3947 = vmatpush3.bf16.msra.mxu1 %v4397_v42 }
 0x1ba   : > { %3948 = vmatprep.subr.bf16.mxu1 %v4242_v36 }
 0x1bd   : > { %3950 = vmatpush3.bf16.msra.mxu1 %v4407_v45 }
 0x1be   : > { %3951 = vmatprep.subr.bf16.mxu1 %v4242_v36 }
 0x1c1   : > { %3953 = vmatpush3.bf16.msra.mxu1 %v4417_v48 }
 0x1c2   : > { %3954 = vmatprep.subr.bf16.mxu1 %v4242_v36 }
 0x1c5   : > { %3956 = vmatpush3.bf16.msra.mxu1 %v4427_v51 }
 0x1c6   : > { %3957 = vmatprep.subr.bf16.mxu1 %v4242_v36 }
 0x1c9   : > { %3959 = vmatpush3.bf16.msra.mxu1 %v4437_v54 }
 0x1ca   : > { %3960 = vmatprep.subr.bf16.mxu1 %v4242_v36 }
 0x1cd   : > { %3962 = vmatpush3.bf16.msra.mxu1 %v3905_v47 }
 0x283   : > { %v4561_v42 = vpop.f32.mrb[0].mxu1 }
 0x284   : > { %v3623_v45 = vpop.f32.mrb[1].mxu1  ;;  %v4567_v48 = vrot.slane %v4561_v42, %v4563_v60 }
 0x286   : > { %v699_v51 = vsub.f32 %v4444_v56, %v4567_v48  ;;  %v700_v54 = vsub.f32 %v4448_v58, %v4567_v48  ;;  %v715_v36 = vsub.f32 %v4442_v55, %v4567_v48  ;;  %v716_v1 = vsub.f32 %v4446_v57, %v4567_v48 }
 0x287   : > { %v717_v2 = vsub.f32 %v4454_v61, %v4567_v48  ;;  %v718_v7 = vsub.f32 %v4458_v63, %v4567_v48  ;;  %v701_v8 = vsub.f32 %v4456_v62, %v4567_v48  ;;  %v702_v13 = vsub.f32 %v4460_v0, %v4567_v48 }
 0x288   : > { %v731_v14 = vmul.f32 %v699_v51, %v699_v51  ;;  %v732_v19 = vmul.f32 %v700_v54, %v700_v54  ;;  %v747_v20 = vmul.f32 %v715_v36, %v715_v36  ;;  %v748_v25 = vmul.f32 %v716_v1, %v716_v1 }
 0x289   : > { %v719_v26 = vsub.f32 %v4466_v3, %v4567_v48  ;;  %v720_v31 = vsub.f32 %v4470_v5, %v4567_v48  ;;  %v749_v33 = vmul.f32 %v717_v2, %v717_v2  ;;  %v750_v41 = vmul.f32 %v718_v7, %v718_v7 }
 0x28a   : > { %v703_v43 = vsub.f32 %v4468_v4, %v4567_v48  ;;  %v704_v44 = vsub.f32 %v4472_v6, %v4567_v48  ;;  %v3907_v46 = vpack.c.bf16 %v748_v25, %v747_v20  ;;  %v721_v47 = vsub.f32 %v4478_v9, %v4567_v48 }
 0x28b   : > { %v733_v49 = vmul.f32 %v701_v8, %v701_v8  ;;  %v734_v50 = vmul.f32 %v702_v13, %v702_v13  ;;  %v3909_v52 = vpack.c.bf16 %v732_v19, %v731_v14  ;;  %v722_v53 = vsub.f32 %v4482_v11, %v4567_v48 }
 0x28c   : > { %v751_v59 = vmul.f32 %v719_v26, %v719_v26  ;;  %v752_v37 = vmul.f32 %v720_v31, %v720_v31  ;;  %3908 = vmatprep.subr.bf16.mxu0 %v3907_v46  ;;  %v3911_v39 = vpack.c.bf16 %v750_v41, %v749_v33  ;;  %v705_v45 = vsub.f32 %v4480_v10, %v4567_v48 }
 0x28d   : > { %3910 = vmatpush3.bf16.msra.mxu0 %v3909_v52  ;;  %v706_v51 = vsub.f32 %v4484_v12, %v4567_v48  ;;  %v723_v54 = vsub.f32 %v4490_v15, %v4567_v48  ;;  %v735_v36 = vmul.f32 %v703_v43, %v703_v43  ;;  %v736_v1 = vmul.f32 %v704_v44, %v704_v44 }
 0x28e   : > { %3912 = vmatprep.subr.bf16.mxu0 %v3911_v39  ;;  %v3913_v2 = vpack.c.bf16 %v734_v50, %v733_v49  ;;  %v724_v7 = vsub.f32 %v4494_v17, %v4567_v48  ;;  %v753_v8 = vmul.f32 %v721_v47, %v721_v47  ;;  %v754_v13 = vmul.f32 %v722_v53, %v722_v53 }
 0x28f   : > { %v3915_v14 = vpack.c.bf16 %v752_v37, %v751_v59  ;;  %v707_v19 = vsub.f32 %v4492_v16, %v4567_v48  ;;  %v708_v20 = vsub.f32 %v4496_v18, %v4567_v48  ;;  %v725_v25 = vsub.f32 %v4502_v21, %v4567_v48 }
 0x290   : > { %v737_v26 = vmul.f32 %v705_v45, %v705_v45  ;;  %v738_v31 = vmul.f32 %v706_v51, %v706_v51  ;;  %v3917_v33 = vpack.c.bf16 %v736_v1, %v735_v36  ;;  %v726_v41 = vsub.f32 %v4506_v23, %v4567_v48 }
 0x291   : > { %3914 = vmatpush3.bf16.msra.mxu0 %v3913_v2  ;;  %v755_v43 = vmul.f32 %v723_v54, %v723_v54  ;;  %v756_v44 = vmul.f32 %v724_v7, %v724_v7  ;;  %v3919_v46 = vpack.c.bf16 %v754_v13, %v753_v8  ;;  %v709_v47 = vsub.f32 %v4504_v22, %v4567_v48 }
 0x292   : > { %3916 = vmatprep.subr.bf16.mxu0 %v3915_v14  ;;  %v710_v49 = vsub.f32 %v4508_v24, %v4567_v48  ;;  %v727_v50 = vsub.f32 %v4514_v27, %v4567_v48  ;;  %v739_v52 = vmul.f32 %v707_v19, %v707_v19  ;;  %v740_v53 = vmul.f32 %v708_v20, %v708_v20 }
 0x293   : > { %v3921_v59 = vpack.c.bf16 %v738_v31, %v737_v26  ;;  %v728_v37 = vsub.f32 %v4518_v29, %v4567_v48  ;;  %v757_v39 = vmul.f32 %v725_v25, %v725_v25  ;;  %v758_v45 = vmul.f32 %v726_v41, %v726_v41 }
 0x294   : > { %v3923_v51 = vpack.c.bf16 %v756_v44, %v755_v43  ;;  %v711_v54 = vsub.f32 %v4516_v28, %v4567_v48  ;;  %v712_v36 = vsub.f32 %v4520_v30, %v4567_v48  ;;  %v729_v1 = vsub.f32 %v4526_v34, %v4567_v48 }
 0x295   : > { %3918 = vmatpush3.bf16.msra.mxu0 %v3917_v33  ;;  %v741_v2 = vmul.f32 %v709_v47, %v709_v47  ;;  %v742_v7 = vmul.f32 %v710_v49, %v710_v49  ;;  %v3925_v8 = vpack.c.bf16 %v740_v53, %v739_v52  ;;  %v730_v13 = vsub.f32 %v4530_v38, %v4567_v48 }
 0x296   : > { %3920 = vmatprep.subr.bf16.mxu0 %v3919_v46  ;;  %v759_v14 = vmul.f32 %v727_v50, %v727_v50  ;;  %v3927_v19 = vpack.c.bf16 %v758_v45, %v757_v39  ;;  %v760_v20 = vmul.f32 %v728_v37, %v728_v37  ;;  %v713_v25 = vsub.f32 %v4528_v35, %v4567_v48  ;;  %v3993_v37 = vld [vmem:[%s5530_s5 + $0x8] sm:$0xff]  }
 0x297   : > { %v714_v26 = vsub.f32 %v4532_v40, %v4567_v48  ;;  %v743_v31 = vmul.f32 %v711_v54, %v711_v54  ;;  %v744_v33 = vmul.f32 %v712_v36, %v712_v36  ;;  %v3929_v41 = vpack.c.bf16 %v742_v7, %v741_v2  ;;  %v3991_v48 = vld [vmem:[%s5530_s5] sm:$0xff]   ;;  %v3994_v54 = vld [vmem:[%s5531_s6 + $0x8] sm:$0xff]   ;;  %v3995_v36 = vld [vmem:[%s5530_s5 + $0x10] sm:$0xff]  }
 0x298   : > { %v761_v43 = vmul.f32 %v729_v1, %v729_v1  ;;  %v762_v44 = vmul.f32 %v730_v13, %v730_v13  ;;  %v3931_v46 = vpack.c.bf16 %v760_v20, %v759_v14  ;;  %v745_v47 = vmul.f32 %v713_v25, %v713_v25  ;;  %v3996_v1 = vld [vmem:[%s5531_s6 + $0x10] sm:$0xff]   ;;  %v3997_v2 = vld [vmem:[%s5530_s5 + $0x18] sm:$0xff]   ;;  %v4000_v13 = vld [vmem:[%s5531_s6 + $0x20] sm:$0xff]  }
 0x299   : > { %3922 = vmatpush3.bf16.msra.mxu0 %v3921_v59  ;;  %v746_v49 = vmul.f32 %v714_v26, %v714_v26  ;;  %v3933_v50 = vpack.c.bf16 %v744_v33, %v743_v31  ;;  %v3992_v59 = vld [vmem:[%s5531_s6] sm:$0xff]   ;;  %v3998_v7 = vld [vmem:[%s5531_s6 + $0x18] sm:$0xff]   ;;  %v4001_v14 = vld [vmem:[%s5530_s5 + $0x28] sm:$0xff]  }
 0x29a   : > { %3924 = vmatprep.subr.bf16.mxu0 %v3923_v51  ;;  %v3935_v52 = vpack.c.bf16 %v762_v44, %v761_v43  ;;  %3707 = vmatprep.subr.bf16.mxu1 %v3992_v59  ;;  %v4003_v20 = vld [vmem:[%s5530_s5 + $0x30] sm:$0xff]   ;;  %v4005_v26 = vld [vmem:[%s5530_s5 + $0x38] sm:$0xff]   ;;  %v4685_v33 = vld [vmem:[%s5529_s4] sm:$0xff]  }
 0x29b   : > { %v3937_v53 = vpack.c.bf16 %v746_v49, %v745_v47  ;;  %v4004_v25 = vld [vmem:[%s5531_s6 + $0x30] sm:$0xff]   ;;  %v4006_v31 = vld [vmem:[%s5531_s6 + $0x38] sm:$0xff]  }
 0x29d   : > { %3926 = vmatpush3.bf16.msra.mxu0 %v3925_v8  ;;  %v3999_v8 = vld [vmem:[%s5530_s5 + $0x20] sm:$0xff]  }
 0x29e   : > { %3928 = vmatprep.subr.bf16.mxu0 %v3927_v19  ;;  %v4002_v19 = vld [vmem:[%s5531_s6 + $0x28] sm:$0xff]  }
 0x2a1   : > { %3930 = vmatpush3.bf16.msra.mxu0 %v3929_v41 }
 0x2a2   : > { %3932 = vmatprep.subr.bf16.mxu0 %v3931_v46  ;;  %v834_v46 = vld [vmem:[%s5526_s1] sm:$0x1] }
 0x2a5   : > { %3934 = vmatpush3.bf16.msra.mxu0 %v3933_v50  ;;  %v907_v50 = vld [vmem:[%s5527_s2] sm:$0x1] }
 0x2a6   : > { %3936 = vmatprep.subr.bf16.mxu0 %v3935_v52 }
 0x2a9   : > { %3938 = vmatpush3.bf16.msra.mxu0 %v3937_v53 }
 0x2aa   : > { %3659 = vmatprep.subr.bf16.mxu0 %v3991_v48 }
 0x2ac   : > { %828 = vmatmul.mubr.f32.vlgmr.msra.gmra.mrb[2].mxu0 %v4241_v32 }
 0x2ad   : > { %3660 = vmatpush3.bf16.msra.mxu0 %v3991_v48 }
 0x2ae   : > { %3661 = vmatprep.subr.bf16.mxu0 %v3993_v37 }
 0x2b1   : > { %3662 = vmatpush3.bf16.msra.mxu0 %v3993_v37 }
 0x2b2   : > { %3663 = vmatprep.subr.bf16.mxu0 %v3995_v36 }
 0x2b5   : > { %3664 = vmatpush3.bf16.msra.mxu0 %v3995_v36 }
 0x2b6   : > { %3665 = vmatprep.subr.bf16.mxu0 %v3997_v2 }
 0x2b9   : > { %3666 = vmatpush3.bf16.msra.mxu0 %v3997_v2 }
 0x2ba   : > { %3667 = vmatprep.subr.bf16.mxu0 %v3999_v8 }
 0x2bd   : > { %3668 = vmatpush3.bf16.msra.mxu0 %v3999_v8 }
 0x2be   : > { %3669 = vmatprep.subr.bf16.mxu0 %v4001_v14 }
 0x2c1   : > { %3670 = vmatpush3.bf16.msra.mxu0 %v4001_v14 }
 0x2c2   : > { %3671 = vmatprep.subr.bf16.mxu0 %v4003_v20 }
 0x2c5   : > { %3672 = vmatpush3.bf16.msra.mxu0 %v4003_v20 }
 0x2c6   : > { %3673 = vmatprep.subr.bf16.mxu0 %v4005_v26 }
 0x2c9   : > { %3674 = vmatpush3.bf16.msra.mxu0 %v4005_v26 }
 0x2ca   : > { %3755 = vmatprep.subr.bf16.mxu0 %v4685_v33 }
 0x37f   : > { %v3313_v39 = vpop.f32.mrb[2].mxu0 }
 0x380   : > { %v3314_v45 = vpop.f32.mrb[3].mxu0 }
 0x381   : > { %v3315_v32 = vadd.f32 %v3314_v45, %v3313_v39 }
 0x383   : > { %v833_v51 = vmul.f32 0.00390625, %v3315_v32 }
 0x385   : > { %3657 = vmatmul.mubr.f32.vlgmr.msra.gmra.mrb[2].mxu1 %v833_v51 }
 0x386   : > { %3708 = vmatpush3.bf16.msra.mxu1 %v3992_v59 }
 0x387   : > { %3709 = vmatprep.subr.bf16.mxu1 %v3994_v54 }
 0x38a   : > { %3710 = vmatpush3.bf16.msra.mxu1 %v3994_v54 }
 0x38b   : > { %3711 = vmatprep.subr.bf16.mxu1 %v3996_v1 }
 0x38e   : > { %3712 = vmatpush3.bf16.msra.mxu1 %v3996_v1 }
 0x38f   : > { %3713 = vmatprep.subr.bf16.mxu1 %v3998_v7 }
 0x392   : > { %3714 = vmatpush3.bf16.msra.mxu1 %v3998_v7 }
 0x393   : > { %3715 = vmatprep.subr.bf16.mxu1 %v4000_v13 }
 0x396   : > { %3716 = vmatpush3.bf16.msra.mxu1 %v4000_v13 }
 0x397   : > { %3717 = vmatprep.subr.bf16.mxu1 %v4002_v19 }
 0x39a   : > { %3718 = vmatpush3.bf16.msra.mxu1 %v4002_v19 }
 0x39b   : > { %3719 = vmatprep.subr.bf16.mxu1 %v4004_v25 }
 0x39e   : > { %3720 = vmatpush3.bf16.msra.mxu1 %v4004_v25 }
 0x39f   : > { %3721 = vmatprep.subr.bf16.mxu1 %v4006_v31 }
 0x3a2   : > { %3722 = vmatpush3.bf16.msra.mxu1 %v4006_v31 }
 0x458   : > { %v901_v41 = vpop.f32.mrb[2].mxu1 }
 0x459   : > { %v902_v43 = vadd.f32 1e-06, %v901_v41  ;;  %v3658_v44 = vpop.f32.mrb[3].mxu1 }
 0x45b   : > { %4023 = vrsqrt.f32 %v902_v43 }
 0x465   : > { %v4024_v47 = vpop.eup %4023 }
 0x466   : > { %v906_v49 = vmul.f32 %v4024_v47, %v834_v46 }
 0x468   : > { %v908_v52 = vmul.f32 %v906_v49, %v4561_v42  ;;  %v914_v53 = vrot.slane %v906_v49, %v4563_v60 }
 0x46a   : > { %v909_v48 = vsub.f32 %v907_v50, %v908_v52  ;;  %v916_v59 = vmul.f32 %v914_v53, %v4444_v56  ;;  %v917_v37 = vmul.f32 %v914_v53, %v4448_v58  ;;  %v918_v39 = vmul.f32 %v914_v53, %v4456_v62 }
 0x46b   : > { %v919_v45 = vmul.f32 %v914_v53, %v4460_v0  ;;  %v920_v32 = vmul.f32 %v914_v53, %v4468_v4  ;;  %v921_v51 = vmul.f32 %v914_v53, %v4472_v6  ;;  %v922_v54 = vmul.f32 %v914_v53, %v4480_v10 }
 0x46c   : > { %v4704_v36 = vrot.slane %v909_v48, %v4563_v60  ;;  %v923_v42 = vmul.f32 %v914_v53, %v4484_v12  ;;  %v924_v1 = vmul.f32 %v914_v53, %v4492_v16  ;;  %v925_v56 = vmul.f32 %v914_v53, %v4496_v18 }
 0x46d   : > { %v926_v58 = vmul.f32 %v914_v53, %v4504_v22  ;;  %v927_v62 = vmul.f32 %v914_v53, %v4508_v24  ;;  %v928_v0 = vmul.f32 %v914_v53, %v4516_v28  ;;  %v929_v4 = vmul.f32 %v914_v53, %v4520_v30 }
 0x46e   : > { %v930_v6 = vmul.f32 %v914_v53, %v4528_v35  ;;  %v931_v10 = vmul.f32 %v914_v53, %v4532_v40  ;;  %v932_v60 = vmul.f32 %v914_v53, %v4442_v55  ;;  %v933_v12 = vmul.f32 %v914_v53, %v4446_v57 }
 0x46f   : > { %v934_v16 = vmul.f32 %v914_v53, %v4454_v61  ;;  %v935_v18 = vmul.f32 %v914_v53, %v4458_v63  ;;  %v936_v22 = vmul.f32 %v914_v53, %v4466_v3  ;;  %v937_v24 = vmul.f32 %v914_v53, %v4470_v5 }
 0x470   : > { %v938_v28 = vmul.f32 %v914_v53, %v4478_v9  ;;  %v939_v30 = vmul.f32 %v914_v53, %v4482_v11  ;;  %v940_v35 = vmul.f32 %v914_v53, %v4490_v15  ;;  %v941_v40 = vmul.f32 %v914_v53, %v4494_v17 }
 0x471   : > { %v942_v55 = vmul.f32 %v914_v53, %v4502_v21  ;;  %v943_v57 = vmul.f32 %v914_v53, %v4506_v23  ;;  %v944_v61 = vmul.f32 %v914_v53, %v4514_v27  ;;  %v945_v63 = vmul.f32 %v914_v53, %v4518_v29 }
 0x472   : > { %v946_v3 = vmul.f32 %v914_v53, %v4526_v34  ;;  %v947_v5 = vmul.f32 %v914_v53, %v4530_v38  ;;  %v954_v9 = vadd.f32 %v4704_v36, %v916_v59  ;;  %v955_v11 = vadd.f32 %v4704_v36, %v917_v37 }
 0x473   : > { %v956_v15 = vadd.f32 %v4704_v36, %v918_v39  ;;  %v957_v17 = vadd.f32 %v4704_v36, %v919_v45  ;;  %v958_v21 = vadd.f32 %v4704_v36, %v920_v32  ;;  %v959_v23 = vadd.f32 %v4704_v36, %v921_v51 }
 0x474   : > { %v960_v27 = vadd.f32 %v4704_v36, %v922_v54  ;;  %v961_v29 = vadd.f32 %v4704_v36, %v923_v42  ;;  %v962_v34 = vadd.f32 %v4704_v36, %v924_v1  ;;  %v963_v38 = vadd.f32 %v4704_v36, %v925_v56 }
 0x475   : > { %v964_v2 = vadd.f32 %v4704_v36, %v926_v58  ;;  %v965_v7 = vadd.f32 %v4704_v36, %v927_v62  ;;  %v966_v8 = vadd.f32 %v4704_v36, %v928_v0  ;;  %v967_v13 = vadd.f32 %v4704_v36, %v929_v4  ;;  %v4008_v62 = vld [vmem:[%s5529_s4 + $0x8] sm:$0xff]  }
 0x476   : > { %v968_v14 = vadd.f32 %v4704_v36, %v930_v6  ;;  %v970_v19 = vadd.f32 %v4704_v36, %v932_v60  ;;  %v971_v20 = vadd.f32 %v4704_v36, %v933_v12  ;;  %v972_v25 = vadd.f32 %v4704_v36, %v934_v16  ;;  %v4009_v16 = vld [vmem:[%s5529_s4 + $0x10] sm:$0xff]  }
 0x477   : > { %v973_v26 = vadd.f32 %v4704_v36, %v935_v18  ;;  %v974_v31 = vadd.f32 %v4704_v36, %v936_v22  ;;  %v975_v41 = vadd.f32 %v4704_v36, %v937_v24  ;;  %v976_v43 = vadd.f32 %v4704_v36, %v938_v28  ;;  %v4010_v22 = vld [vmem:[%s5529_s4 + $0x18] sm:$0xff]   ;;  %v4013_v24 = vld [vmem:[%s5529_s4 + $0x30] sm:$0xff]  }
 0x478   : > { %v977_v44 = vadd.f32 %v4704_v36, %v939_v30  ;;  %v978_v46 = vadd.f32 %v4704_v36, %v940_v35  ;;  %v979_v47 = vadd.f32 %v4704_v36, %v941_v40  ;;  %v980_v49 = vadd.f32 %v4704_v36, %v942_v55  ;;  %v4014_v28 = vld [vmem:[%s5529_s4 + $0x38] sm:$0xff]   ;;  %v4858_v35 = vld [vmem:[%s5533_s8] ss:$0 sm:$0xff] }
 0x479   : > { %v981_v50 = vadd.f32 %v4704_v36, %v943_v57  ;;  %v982_v52 = vadd.f32 %v4704_v36, %v944_v61  ;;  %v984_v53 = vadd.f32 %v4704_v36, %v946_v3  ;;  %v985_v48 = vadd.f32 %v4704_v36, %v947_v5  ;;  %v4863_v55 = vld [vmem:[%s5534_s9] ss:$0 sm:$0xff] }
 0x47a   : > { %v4761_v59 = vpack.c.bf16 %v955_v11, %v954_v9  ;;  %v4763_v37 = vpack.c.bf16 %v957_v17, %v956_v15  ;;  %v4765_v39 = vpack.c.bf16 %v959_v23, %v958_v21  ;;  %v4767_v45 = vpack.c.bf16 %v961_v29, %v960_v27 }
 0x47b   : > { %v4769_v32 = vpack.c.bf16 %v963_v38, %v962_v34  ;;  %v4771_v51 = vpack.c.bf16 %v965_v7, %v964_v2  ;;  %v4773_v54 = vpack.c.bf16 %v967_v13, %v966_v8  ;;  %v969_v42 = vadd.f32 %v4704_v36, %v931_v10 }
 0x47c   : > { %3675 = vmatprep.mubr.bf16.mxu0 %v4761_v59  ;;  %3723 = vmatprep.mubr.bf16.mxu1 %v4761_v59  ;;  %v4778_v1 = vpack.c.bf16 %v971_v20, %v970_v19  ;;  %v4780_v56 = vpack.c.bf16 %v973_v26, %v972_v25  ;;  %v4782_v58 = vpack.c.bf16 %v975_v41, %v974_v31 }
 0x47d   : > { %3676 = vmatmul.mubr.bf16.vlgmr.msra.gmra.mrb[4].mxu0 %v4763_v37  ;;  %3724 = vmatmul.mubr.bf16.vlgmr.msra.gmra.mrb[4].mxu1 %v4763_v37  ;;  %v993_v0 = vpack.c.bf16 %v969_v42, %v968_v14  ;;  %v4789_v4 = vpack.c.bf16 %v977_v44, %v976_v43  ;;  %v4791_v6 = vpack.c.bf16 %v979_v47, %v978_v46 }
 0x47e   : > { %3679 = vmatprep.mubr.bf16.mxu0 %v4765_v39  ;;  %3727 = vmatprep.mubr.bf16.mxu1 %v4765_v39  ;;  %v4795_v10 = vpack.c.bf16 %v981_v50, %v980_v49  ;;  %v983_v60 = vadd.f32 %v4704_v36, %v945_v63  ;;  %v4798_v12 = vpack.c.bf16 %v985_v48, %v984_v53  ;;  %v4012_v36 = vld [vmem:[%s5529_s4 + $0x28] sm:$0xff]  }
 0x47f   : > { %3756 = vmatpush3.bf16.msra.mxu0 %v4685_v33  ;;  %v4011_v33 = vld [vmem:[%s5529_s4 + $0x20] sm:$0xff]  }
 0x480   : > { %3757 = vmatprep.subr.bf16.mxu0 %v4008_v62  ;;  %v1000_v18 = vpack.c.bf16 %v983_v60, %v982_v52 }
 0x483   : > { %3758 = vmatpush3.bf16.msra.mxu0 %v4008_v62 }
 0x484   : > { %3759 = vmatprep.subr.bf16.mxu0 %v4009_v16 }
 0x485   : > { %3680 = vmatmul.mubr.bf16.gmra.mrb[8].mxu0 %v4767_v45  ;;  %3728 = vmatmul.mubr.bf16.gmra.mrb[8].mxu1 %v4767_v45 }
 0x486   : > { %3683 = vmatprep.mubr.bf16.mxu0 %v4769_v32  ;;  %3731 = vmatprep.mubr.bf16.mxu1 %v4769_v32 }
 0x487   : > { %3760 = vmatpush3.bf16.msra.mxu0 %v4009_v16 }
 0x488   : > { %3761 = vmatprep.subr.bf16.mxu0 %v4010_v22 }
 0x48b   : > { %3762 = vmatpush3.bf16.msra.mxu0 %v4010_v22 }
 0x48c   : > { %3763 = vmatprep.subr.bf16.mxu0 %v4011_v33 }
 0x48d   : > { %3684 = vmatmul.mubr.bf16.gmra.mrb[12].mxu0 %v4771_v51  ;;  %3732 = vmatmul.mubr.bf16.gmra.mrb[12].mxu1 %v4771_v51 }
 0x48e   : > { %3687 = vmatprep.mubr.bf16.mxu0 %v4773_v54  ;;  %3735 = vmatprep.mubr.bf16.mxu1 %v4773_v54 }
 0x48f   : > { %3764 = vmatpush3.bf16.msra.mxu0 %v4011_v33 }
 0x490   : > { %3765 = vmatprep.subr.bf16.mxu0 %v4012_v36 }
 0x493   : > { %3766 = vmatpush3.bf16.msra.mxu0 %v4012_v36 }
 0x494   : > { %3767 = vmatprep.subr.bf16.mxu0 %v4013_v24 }
 0x495   : > { %3688 = vmatmul.mubr.bf16.gmra.mrb[16].mxu0 %v993_v0  ;;  %3736 = vmatmul.mubr.bf16.gmra.mrb[16].mxu1 %v993_v0 }
 0x496   : > { %3691 = vmatprep.mubr.bf16.mxu0 %v4778_v1  ;;  %3739 = vmatprep.mubr.bf16.mxu1 %v4778_v1 }
 0x497   : > { %3768 = vmatpush3.bf16.msra.mxu0 %v4013_v24 }
 0x498   : > { %3769 = vmatprep.subr.bf16.mxu0 %v4014_v28 }
 0x49b   : > { %3770 = vmatpush3.bf16.msra.mxu0 %v4014_v28 }
 0x49d   : > { %3692 = vmatmul.mubr.bf16.gmra.mrb[20].mxu0 %v4780_v56  ;;  %3740 = vmatmul.mubr.bf16.gmra.mrb[20].mxu1 %v4780_v56 }
 0x49e   : > { %3695 = vmatprep.mubr.bf16.mxu0 %v4782_v58  ;;  %3743 = vmatprep.mubr.bf16.mxu1 %v4782_v58 }
 0x4a5   : > { %3696 = vmatmul.mubr.bf16.gmra.mrb[24].mxu0 %v4789_v4  ;;  %3744 = vmatmul.mubr.bf16.gmra.mrb[24].mxu1 %v4789_v4 }
 0x4a6   : > { %3699 = vmatprep.mubr.bf16.mxu0 %v4791_v6  ;;  %3747 = vmatprep.mubr.bf16.mxu1 %v4791_v6 }
 0x4ad   : > { %3700 = vmatmul.mubr.bf16.gmra.mrb[28].mxu0 %v4795_v10  ;;  %3748 = vmatmul.mubr.bf16.gmra.mrb[28].mxu1 %v4795_v10 }
 0x4ae   : > { %3703 = vmatprep.mubr.bf16.mxu0 %v1000_v18  ;;  %3751 = vmatprep.mubr.bf16.mxu1 %v1000_v18 }
 0x4b5   : > { %3704 = vmatmul.mubr.bf16.gmra.mrb[32].mxu0 %v4798_v12  ;;  %3752 = vmatmul.mubr.bf16.gmra.mrb[32].mxu1 %v4798_v12 }
 0x4b6   : > { %3771 = vmatprep.mubr.bf16.mxu0 %v4761_v59 }
 0x4bd   : > { %3772 = vmatmul.mubr.bf16.vlgmr.msra.gmra.mrb[36].mxu0 %v4763_v37 }
 0x4be   : > { %3775 = vmatprep.mubr.bf16.mxu0 %v4765_v39 }
 0x4c5   : > { %3776 = vmatmul.mubr.bf16.gmra.mrb[40].mxu0 %v4767_v45 }
 0x4c6   : > { %3779 = vmatprep.mubr.bf16.mxu0 %v4769_v32 }
 0x4cd   : > { %3780 = vmatmul.mubr.bf16.gmra.mrb[44].mxu0 %v4771_v51 }
 0x4ce   : > { %3783 = vmatprep.mubr.bf16.mxu0 %v4773_v54 }
 0x4d5   : > { %3784 = vmatmul.mubr.bf16.gmra.mrb[48].mxu0 %v993_v0 }
 0x4d6   : > { %3787 = vmatprep.mubr.bf16.mxu0 %v4778_v1 }
 0x4dd   : > { %3788 = vmatmul.mubr.bf16.gmra.mrb[52].mxu0 %v4780_v56 }
 0x4de   : > { %3791 = vmatprep.mubr.bf16.mxu0 %v4782_v58 }
 0x4e5   : > { %3792 = vmatmul.mubr.bf16.gmra.mrb[56].mxu0 %v4789_v4 }
 0x4e6   : > { %3795 = vmatprep.mubr.bf16.mxu0 %v4791_v6 }
 0x4ed   : > { %3796 = vmatmul.mubr.bf16.gmra.mrb[60].mxu0 %v4795_v10 }
 0x4ee   : > { %3799 = vmatprep.mubr.bf16.mxu0 %v1000_v18 }
 0x4f5   : > { %3800 = vmatmul.mubr.bf16.gmra.mrb[64].mxu0 %v4798_v12 }
 0x550   : > { %v3677_v30 = vpop.f32.mrb[4].mxu0  ;;  %v3725_v40 = vpop.f32.mrb[4].mxu1 }
 0x551   : > { %v1123_v57 = vpop.f32.mrb[5].mxu0  ;;  %v1387_v61 = vpop.f32.mrb[5].mxu1  ;;  %v4866_v5 = vadd.f32 %v3677_v30, %v4858_v35  ;;  %v4869_v9 = vadd.f32 %v3725_v40, %v4863_v55 }
 0x552   : > { %v3678_v63 = vpop.f32.mrb[6].mxu0  ;;  %v3726_v3 = vpop.f32.mrb[6].mxu1  ;;  %v4878_v23 = vadd.f32 %v4858_v35, %v1123_v57  ;;  %v4881_v27 = vadd.f32 %v4863_v55, %v1387_v61 }
 0x553   : > { %v4872_v11 = vadd.f32 %v3678_v63, %v4858_v35  ;;  %v4875_v15 = vadd.f32 %v3726_v3, %v4863_v55  ;;  %v1126_v17 = vpop.f32.mrb[7].mxu0  ;;  %v1390_v21 = vpop.f32.mrb[7].mxu1 }
 0x554   : > { %v4884_v29 = vadd.f32 %v4858_v35, %v1126_v17  ;;  %v4887_v34 = vadd.f32 %v4863_v55, %v1390_v21 }
 0x555   : > { %v1251_v38 = vpack.c.bf16 %v4872_v11, %v4866_v5  ;;  %v1515_v2 = vpack.c.bf16 %v4875_v15, %v4869_v9 }
 0x556   : > { %v1250_v7 = vpack.c.bf16 %v4884_v29, %v4878_v23  ;;  %v1514_v8 = vpack.c.bf16 %v4887_v34, %v4881_v27 }
 0x558   : > { %v3681_v13 = vpop.f32.mrb[8].mxu0  ;;  %v3729_v14 = vpop.f32.mrb[8].mxu1 }
 0x559   : > { %v1139_v19 = vpop.f32.mrb[9].mxu0  ;;  %v1403_v20 = vpop.f32.mrb[9].mxu1  ;;  %v4898_v31 = vadd.f32 %v3681_v13, %v4858_v35  ;;  %v4901_v41 = vadd.f32 %v3729_v14, %v4863_v55 }
 0x55a   : > { %v3682_v25 = vpop.f32.mrb[10].mxu0  ;;  %v3730_v26 = vpop.f32.mrb[10].mxu1  ;;  %v4910_v49 = vadd.f32 %v4858_v35, %v1139_v19  ;;  %v4913_v50 = vadd.f32 %v4863_v55, %v1403_v20 }
 0x55b   : > { %v4904_v43 = vadd.f32 %v3682_v25, %v4858_v35  ;;  %v4907_v44 = vadd.f32 %v3730_v26, %v4863_v55  ;;  %v1142_v46 = vpop.f32.mrb[11].mxu0  ;;  %v1406_v47 = vpop.f32.mrb[11].mxu1 }
 0x55c   : > { %v4916_v52 = vadd.f32 %v4858_v35, %v1142_v46  ;;  %v4919_v53 = vadd.f32 %v4863_v55, %v1406_v47 }
 0x55d   : > { %v1253_v48 = vpack.c.bf16 %v4904_v43, %v4898_v31  ;;  %v1517_v59 = vpack.c.bf16 %v4907_v44, %v4901_v41 }
 0x55e   : > { %v1252_v37 = vpack.c.bf16 %v4916_v52, %v4910_v49  ;;  %v1516_v39 = vpack.c.bf16 %v4919_v53, %v4913_v50 }
 0x560   : > { %v3685_v45 = vpop.f32.mrb[12].mxu0  ;;  %v3733_v32 = vpop.f32.mrb[12].mxu1 }
 0x561   : > { %v1155_v51 = vpop.f32.mrb[13].mxu0  ;;  %v1419_v54 = vpop.f32.mrb[13].mxu1  ;;  %v4930_v56 = vadd.f32 %v3685_v45, %v4858_v35  ;;  %v4933_v58 = vadd.f32 %v3733_v32, %v4863_v55 }
 0x562   : > { %v3686_v42 = vpop.f32.mrb[14].mxu0  ;;  %v3734_v1 = vpop.f32.mrb[14].mxu1  ;;  %v4942_v10 = vadd.f32 %v4858_v35, %v1155_v51  ;;  %v4945_v60 = vadd.f32 %v4863_v55, %v1419_v54 }
 0x563   : > { %v4936_v62 = vadd.f32 %v3686_v42, %v4858_v35  ;;  %v4939_v0 = vadd.f32 %v3734_v1, %v4863_v55  ;;  %v1158_v4 = vpop.f32.mrb[15].mxu0  ;;  %v1422_v6 = vpop.f32.mrb[15].mxu1 }
 0x564   : > { %v4948_v12 = vadd.f32 %v4858_v35, %v1158_v4  ;;  %v4951_v16 = vadd.f32 %v4863_v55, %v1422_v6 }
 0x565   : > { %v1519_v22 = vpack.c.bf16 %v4939_v0, %v4933_v58 }
 0x566   : > { %v1518_v36 = vpack.c.bf16 %v4951_v16, %v4945_v60 }
 0x568   : > { %v3689_v24 = vpop.f32.mrb[16].mxu0  ;;  %v3737_v28 = vpop.f32.mrb[16].mxu1 }
 0x569   : > { %v1171_v30 = vpop.f32.mrb[17].mxu0  ;;  %v1435_v40 = vpop.f32.mrb[17].mxu1  ;;  %v4962_v63 = vadd.f32 %v3689_v24, %v4858_v35  ;;  %v4965_v3 = vadd.f32 %v3737_v28, %v4863_v55 }
 0x56a   : > { %v3690_v57 = vpop.f32.mrb[18].mxu0  ;;  %v3738_v61 = vpop.f32.mrb[18].mxu1  ;;  %v4974_v19 = vadd.f32 %v4858_v35, %v1171_v30  ;;  %v4977_v20 = vadd.f32 %v4863_v55, %v1435_v40 }
 0x56b   : > { %v4968_v17 = vadd.f32 %v3690_v57, %v4858_v35  ;;  %v4971_v21 = vadd.f32 %v3738_v61, %v4863_v55  ;;  %v1174_v13 = vpop.f32.mrb[19].mxu0  ;;  %v1438_v14 = vpop.f32.mrb[19].mxu1 }
 0x56c   : > { %v4980_v25 = vadd.f32 %v4858_v35, %v1174_v13  ;;  %v4983_v26 = vadd.f32 %v4863_v55, %v1438_v14 }
 0x56d   : > { %v5552_v31 = vpack.c.bf16 %v4971_v21, %v4965_v3 }
 0x570   : > { %v3693_v51 = vpop.f32.mrb[20].mxu0  ;;  %v3741_v54 = vpop.f32.mrb[20].mxu1 }
 0x571   : > { %v1187_v42 = vpop.f32.mrb[21].mxu0  ;;  %v1451_v1 = vpop.f32.mrb[21].mxu1  ;;  %v1196_v24 = vadd.f32 %v3693_v51, %v4858_v35  ;;  %v1460_v28 = vadd.f32 %v3741_v54, %v4863_v55 }
 0x572   : > { %v3694_v4 = vpop.f32.mrb[22].mxu0  ;;  %v3742_v6 = vpop.f32.mrb[22].mxu1  ;;  %v1188_v13 = vadd.f32 %v4858_v35, %v1187_v42  ;;  %v1452_v14 = vadd.f32 %v4863_v55, %v1451_v1 }
 0x573   : > { %v1199_v30 = vadd.f32 %v3694_v4, %v4858_v35  ;;  %v1463_v40 = vadd.f32 %v3742_v6, %v4863_v55  ;;  %v1190_v57 = vpop.f32.mrb[23].mxu0  ;;  %v1454_v61 = vpop.f32.mrb[23].mxu1 }
 0x574   : > { %v1191_v46 = vadd.f32 %v4858_v35, %v1190_v57  ;;  %v1455_v45 = vadd.f32 %v4863_v55, %v1454_v61 }
 0x575   : > { %v1259_v18 = vpack.c.bf16 %v1199_v30, %v1196_v24  ;;  %v1523_v33 = vpack.c.bf16 %v1463_v40, %v1460_v28 }
 0x576   : > { %v1258_v47 = vpack.c.bf16 %v1191_v46, %v1188_v13  ;;  %v1522_v51 = vpack.c.bf16 %v1455_v45, %v1452_v14 }
 0x578   : > { %v3697_v32 = vpop.f32.mrb[24].mxu0  ;;  %v3745_v54 = vpop.f32.mrb[24].mxu1  ;;  %3405 = vmatprep.subr.bf16.mxu1 %v1258_v47  ;;  %3453 = vmatprep.subr.bf16.mxu0 %v1522_v51 }
 0x579   : > { %v1203_v4 = vpop.f32.mrb[25].mxu0  ;;  %v1467_v6 = vpop.f32.mrb[25].mxu1  ;;  %3406 = vmatpush3.bf16.xpose.msra.mxu1 %v1250_v7  ;;  %3454 = vmatpush3.bf16.msra.mxu0 %v1514_v8  ;;  %v1212_v46 = vadd.f32 %v3697_v32, %v4858_v35  ;;  %v1476_v45 = vadd.f32 %v3745_v54, %v4863_v55 }
 0x57a   : > { %v3698_v42 = vpop.f32.mrb[26].mxu0  ;;  %v3746_v1 = vpop.f32.mrb[26].mxu1  ;;  %3407 = vmatprep.subr.bf16.mxu1 %v1259_v18  ;;  %3455 = vmatprep.subr.bf16.mxu0 %v1523_v33  ;;  %v1204_v23 = vadd.f32 %v4858_v35, %v1203_v4  ;;  %v1468_v29 = vadd.f32 %v4863_v55, %v1467_v6 }
 0x57b   : > { %v1215_v47 = vadd.f32 %v3698_v42, %v4858_v35  ;;  %v1479_v24 = vadd.f32 %v3746_v1, %v4863_v55  ;;  %v1206_v28 = vpop.f32.mrb[27].mxu0  ;;  %v1470_v30 = vpop.f32.mrb[27].mxu1 }
 0x57c   : > { %v1207_v27 = vadd.f32 %v4858_v35, %v1206_v28  ;;  %v1471_v34 = vadd.f32 %v4863_v55, %v1470_v30 }
 0x57d   : > { %v1261_v7 = vpack.c.bf16 %v1215_v47, %v1212_v46  ;;  %v1525_v8 = vpack.c.bf16 %v1479_v24, %v1476_v45  ;;  %3456 = vmatpush3.bf16.msra.mxu0 %v1515_v2 }
 0x57e   : > { %v1260_v18 = vpack.c.bf16 %v1207_v27, %v1204_v23  ;;  %v1524_v33 = vpack.c.bf16 %v1471_v34, %v1468_v29 }
 0x580   : > { %v3701_v32 = vpop.f32.mrb[28].mxu0  ;;  %v3749_v40 = vpop.f32.mrb[28].mxu1  ;;  %3457 = vmatprep.subr.bf16.mxu0 %v1524_v33 }
 0x581   : > { %v1219_v57 = vpop.f32.mrb[29].mxu0  ;;  %v1483_v61 = vpop.f32.mrb[29].mxu1  ;;  %3408 = vmatpush3.bf16.xpose.msra.mxu1 %v1251_v38  ;;  %3458 = vmatpush3.bf16.msra.mxu0 %v1516_v39  ;;  %v5025_v9 = vadd.f32 %v3701_v32, %v4858_v35  ;;  %v1492_v15 = vadd.f32 %v3749_v40, %v4863_v55 }
 0x582   : > { %v3702_v13 = vpop.f32.mrb[30].mxu0  ;;  %v3750_v14 = vpop.f32.mrb[30].mxu1  ;;  %3409 = vmatprep.subr.bf16.mxu1 %v1260_v18  ;;  %3459 = vmatprep.subr.bf16.mxu0 %v1525_v8  ;;  %v1220_v11 = vadd.f32 %v4858_v35, %v1219_v57  ;;  %v1484_v38 = vadd.f32 %v4863_v55, %v1483_v61  ;;  %v5061_v8 = vld [vmem:[%s5532_s7] ss:$0 sm:$0xff] }
 0x583   : > { %v1231_v2 = vadd.f32 %v3702_v13, %v4858_v35  ;;  %v1495_v51 = vadd.f32 %v3750_v14, %v4863_v55  ;;  %v1222_v54 = vpop.f32.mrb[31].mxu0  ;;  %v1486_v5 = vpop.f32.mrb[31].mxu1 }
 0x584   : > { %v1223_v50 = vadd.f32 %v4858_v35, %v1222_v54  ;;  %v1487_v53 = vadd.f32 %v4863_v55, %v1486_v5 }
 0x585   : > { %v1263_v39 = vpack.c.bf16 %v1231_v2, %v5025_v9  ;;  %v1527_v4 = vpack.c.bf16 %v1495_v51, %v1492_v15  ;;  %3460 = vmatpush3.bf16.msra.mxu0 %v1517_v59 }
 0x586   : > { %v1262_v6 = vpack.c.bf16 %v1223_v50, %v1220_v11  ;;  %v1526_v42 = vpack.c.bf16 %v1487_v53, %v1484_v38 }
 0x588   : > { %v3705_v1 = vpop.f32.mrb[32].mxu0  ;;  %v3753_v46 = vpop.f32.mrb[32].mxu1  ;;  %3461 = vmatprep.subr.bf16.mxu0 %v1526_v42 }
 0x589   : > { %v1235_v45 = vpop.f32.mrb[33].mxu0  ;;  %v1499_v47 = vpop.f32.mrb[33].mxu1  ;;  %3410 = vmatpush3.bf16.xpose.msra.mxu1 %v1252_v37  ;;  %3462 = vmatpush3.bf16.msra.mxu0 %v1518_v36  ;;  %v5045_v41 = vadd.f32 %v3705_v1, %v4858_v35  ;;  %v1508_v44 = vadd.f32 %v3753_v46, %v4863_v55 }
 0x58a   : > { %v3706_v24 = vpop.f32.mrb[34].mxu0  ;;  %v3754_v28 = vpop.f32.mrb[34].mxu1  ;;  %3411 = vmatprep.subr.bf16.mxu1 %v1261_v7  ;;  %3463 = vmatprep.subr.bf16.mxu0 %v1527_v4  ;;  %v1236_v52 = vadd.f32 %v4858_v35, %v1235_v45  ;;  %v1500_v37 = vadd.f32 %v4863_v55, %v1499_v47 }
 0x58b   : > { %v1247_v59 = vadd.f32 %v3706_v24, %v4858_v35  ;;  %v1511_v30 = vadd.f32 %v3754_v28, %v4863_v55  ;;  %v1238_v23 = vpop.f32.mrb[35].mxu0  ;;  %v1502_v49 = vpop.f32.mrb[35].mxu1 }
 0x58c   : > { %v1239_v60 = vadd.f32 %v4858_v35, %v1238_v23  ;;  %v1503_v16 = vadd.f32 %v4863_v55, %v1502_v49  ;;  %v5551_v35 = vpack.c.bf16 %v4983_v26, %v4977_v20  ;;  %v5553_v26 = vpack.c.bf16 %v4948_v12, %v4942_v10 }
 0x58d   : > { %v1265_v36 = vpack.c.bf16 %v1247_v59, %v5045_v41  ;;  %v1529_v29 = vpack.c.bf16 %v1511_v30, %v1508_v44  ;;  %3464 = vmatpush3.bf16.msra.mxu0 %v1519_v22  ;;  %v5554_v10 = vpack.c.bf16 %v4936_v62, %v4930_v56  ;;  %v5555_v56 = vpack.c.bf16 %v4980_v25, %v4974_v19 }
 0x58e   : > { %v1264_v27 = vpack.c.bf16 %v1239_v60, %v1236_v52  ;;  %v1528_v34 = vpack.c.bf16 %v1503_v16, %v1500_v37  ;;  %v5556_v30 = vpack.c.bf16 %v4968_v17, %v4962_v63 }
 0x590   : > { %v3773_v7 = vpop.f32.mrb[36].mxu0  ;;  %3465 = vmatprep.subr.bf16.mxu0 %v1528_v34 }
 0x591   : > { %v1672_v18 = vpop.f32.mrb[37].mxu0  ;;  %3412 = vmatpush3.bf16.xpose.msra.mxu1 %v1253_v48  ;;  %3466 = vmatpush3.bf16.msra.mxu0 %v5551_v35  ;;  %v1681_v58 = vadd.f32 %v3773_v7, %v5061_v8 }
 0x592   : > { %v3774_v55 = vpop.f32.mrb[38].mxu0  ;;  %3413 = vmatprep.subr.bf16.mxu1 %v1262_v6  ;;  %3467 = vmatprep.subr.bf16.mxu0 %v1529_v29  ;;  %v1673_v33 = vadd.f32 %v5061_v8, %v1672_v18 }
 0x593   : > { %v1684_v0 = vadd.f32 %v3774_v55, %v5061_v8  ;;  %v1675_v22 = vpop.f32.mrb[39].mxu0 }
 0x594   : > { %v1676_v32 = vadd.f32 %v5061_v8, %v1675_v22 }
 0x595   : > { %v5073_v40 = vpack.c.bf16 %v1684_v0, %v1681_v58  ;;  %3468 = vmatpush3.bf16.msra.mxu0 %v5552_v31 }
 0x596   : > { %v1799_v43 = vpack.c.bf16 %v1676_v32, %v1673_v33 }
 0x598   : > { %v3777_v48 = vpop.f32.mrb[40].mxu0  ;;  %3421 = vmatprep.mubr.bf16.mxu1 %v1799_v43 }
 0x599   : > { %v1688_v20 = vpop.f32.mrb[41].mxu0  ;;  %3414 = vmatpush3.bf16.xpose.msra.mxu1 %v5553_v26  ;;  %v1697_v61 = vadd.f32 %v3777_v48, %v5061_v8 }
 0x59a   : > { %v3778_v57 = vpop.f32.mrb[42].mxu0  ;;  %3415 = vmatprep.subr.bf16.mxu1 %v1263_v39  ;;  %v1689_v9 = vadd.f32 %v5061_v8, %v1688_v20 }
 0x59b   : > { %v1700_v13 = vadd.f32 %v3778_v57, %v5061_v8  ;;  %v1691_v14 = vpop.f32.mrb[43].mxu0 }
 0x59c   : > { %v1692_v3 = vadd.f32 %v5061_v8, %v1691_v14 }
 0x59d   : > { %v5085_v21 = vpack.c.bf16 %v1700_v13, %v1697_v61 }
 0x59e   : > { %v1801_v15 = vpack.c.bf16 %v1692_v3, %v1689_v9 }
 0x5a0   : > { %v3781_v2 = vpop.f32.mrb[44].mxu0 }
 0x5a1   : > { %v1713_v51 = vadd.f32 %v3781_v2, %v5061_v8  ;;  %v1704_v54 = vpop.f32.mrb[45].mxu0  ;;  %3416 = vmatpush3.bf16.xpose.msra.mxu1 %v5554_v10 }
 0x5a2   : > { %v3782_v12 = vpop.f32.mrb[46].mxu0  ;;  %3417 = vmatprep.subr.bf16.mxu1 %v1264_v27  ;;  %v1705_v38 = vadd.f32 %v5061_v8, %v1704_v54 }
 0x5a3   : > { %v1716_v5 = vadd.f32 %v3782_v12, %v5061_v8  ;;  %v1707_v11 = vpop.f32.mrb[47].mxu0 }
 0x5a4   : > { %v1708_v50 = vadd.f32 %v5061_v8, %v1707_v11 }
 0x5a5   : > { %v5094_v53 = vpack.c.bf16 %v1716_v5, %v1713_v51 }
 0x5a6   : > { %v1803_v39 = vpack.c.bf16 %v1708_v50, %v1705_v38 }
 0x5a8   : > { %v3785_v4 = vpop.f32.mrb[48].mxu0 }
 0x5a9   : > { %v1729_v6 = vadd.f32 %v3785_v4, %v5061_v8  ;;  %v1720_v42 = vpop.f32.mrb[49].mxu0  ;;  %3418 = vmatpush3.bf16.xpose.msra.mxu1 %v5555_v56 }
 0x5aa   : > { %v1721_v62 = vadd.f32 %v5061_v8, %v1720_v42  ;;  %v3786_v1 = vpop.f32.mrb[50].mxu0  ;;  %3419 = vmatprep.subr.bf16.mxu1 %v1265_v36 }
 0x5ab   : > { %v1732_v46 = vadd.f32 %v3786_v1, %v5061_v8  ;;  %v1723_v45 = vpop.f32.mrb[51].mxu0 }
 0x5ac   : > { %v1724_v47 = vadd.f32 %v5061_v8, %v1723_v45 }
 0x5ad   : > { %v1806_v24 = vpack.c.bf16 %v1732_v46, %v1729_v6 }
 0x5ae   : > { %v1805_v28 = vpack.c.bf16 %v1724_v47, %v1721_v62 }
 0x5b0   : > { %v3789_v41 = vpop.f32.mrb[52].mxu0 }
 0x5b1   : > { %v1745_v44 = vadd.f32 %v3789_v41, %v5061_v8  ;;  %v1736_v59 = vpop.f32.mrb[53].mxu0  ;;  %3420 = vmatpush3.bf16.xpose.msra.mxu1 %v5556_v30 }
 0x5b2   : > { %v1737_v19 = vadd.f32 %v5061_v8, %v1736_v59  ;;  %v3790_v25 = vpop.f32.mrb[54].mxu0 }
 0x5b3   : > { %v1748_v23 = vadd.f32 %v3790_v25, %v5061_v8  ;;  %v1739_v49 = vpop.f32.mrb[55].mxu0 }
 0x5b4   : > { %v1740_v52 = vadd.f32 %v5061_v8, %v1739_v49 }
 0x5b5   : > { %v1808_v37 = vpack.c.bf16 %v1748_v23, %v1745_v44 }
 0x5b6   : > { %v1807_v60 = vpack.c.bf16 %v1740_v52, %v1737_v19 }
 0x5b8   : > { %v3793_v16 = vpop.f32.mrb[56].mxu0  ;;  %3422 = vmatmul.mubr.bf16.vlgmr.msra.gmra.mrb[36].mxu1 %v1799_v43 }
 0x5b9   : > { %v1761_v36 = vadd.f32 %v3793_v16, %v5061_v8  ;;  %v1752_v29 = vpop.f32.mrb[57].mxu0  ;;  %3423 = vmatprep.mubr.bf16.mxu1 %v5073_v40 }
 0x5ba   : > { %v1753_v63 = vadd.f32 %v5061_v8, %v1752_v29  ;;  %v3794_v17 = vpop.f32.mrb[58].mxu0 }
 0x5bb   : > { %v1764_v27 = vadd.f32 %v3794_v17, %v5061_v8  ;;  %v1755_v34 = vpop.f32.mrb[59].mxu0 }
 0x5bc   : > { %v1756_v7 = vadd.f32 %v5061_v8, %v1755_v34 }
 0x5bd   : > { %v1810_v18 = vpack.c.bf16 %v1764_v27, %v1761_v36 }
 0x5be   : > { %v1809_v35 = vpack.c.bf16 %v1756_v7, %v1753_v63 }
 0x5c0   : > { %v3797_v55 = vpop.f32.mrb[60].mxu0  ;;  %3424 = vmatmul.mubr.bf16.gmra.mrb[40].mxu1 %v5073_v40 }
 0x5c1   : > { %v1777_v58 = vadd.f32 %v3797_v55, %v5061_v8  ;;  %v1768_v0 = vpop.f32.mrb[61].mxu0  ;;  %3425 = vmatprep.mubr.bf16.mxu1 %v1801_v15 }
 0x5c2   : > { %v1769_v22 = vadd.f32 %v5061_v8, %v1768_v0  ;;  %v3798_v33 = vpop.f32.mrb[62].mxu0 }
 0x5c3   : > { %v1780_v32 = vadd.f32 %v3798_v33, %v5061_v8  ;;  %v1771_v31 = vpop.f32.mrb[63].mxu0 }
 0x5c4   : > { %v1772_v43 = vadd.f32 %v5061_v8, %v1771_v31 }
 0x5c5   : > { %v1812_v48 = vpack.c.bf16 %v1780_v32, %v1777_v58 }
 0x5c6   : > { %v1811_v20 = vpack.c.bf16 %v1772_v43, %v1769_v22 }
 0x5c8   : > { %v3801_v26 = vpop.f32.mrb[64].mxu0  ;;  %3426 = vmatmul.mubr.bf16.gmra.mrb[44].mxu1 %v1801_v15 }
 0x5c9   : > { %v1793_v57 = vadd.f32 %v3801_v26, %v5061_v8  ;;  %v1784_v61 = vpop.f32.mrb[65].mxu0  ;;  %3427 = vmatprep.mubr.bf16.mxu1 %v5085_v21 }
 0x5ca   : > { %v1785_v40 = vadd.f32 %v5061_v8, %v1784_v61  ;;  %v3802_v13 = vpop.f32.mrb[66].mxu0 }
 0x5cb   : > { %v1796_v14 = vadd.f32 %v3802_v13, %v5061_v8  ;;  %v1787_v9 = vpop.f32.mrb[67].mxu0 }
 0x5cc   : > { %v1788_v3 = vadd.f32 %v5061_v8, %v1787_v9 }
 0x5cd   : > { %v1814_v2 = vpack.c.bf16 %v1796_v14, %v1793_v57 }
 0x5ce   : > { %v1813_v51 = vpack.c.bf16 %v1788_v3, %v1785_v40 }
 0x5d0   : > { %3428 = vmatmul.mubr.bf16.gmra.mrb[48].mxu1 %v5085_v21 }
 0x5d1   : > { %3429 = vmatprep.mubr.bf16.mxu1 %v1803_v39 }
 0x5d8   : > { %3430 = vmatmul.mubr.bf16.gmra.mrb[52].mxu1 %v1803_v39 }
 0x5d9   : > { %3431 = vmatprep.mubr.bf16.mxu1 %v5094_v53 }
 0x5e0   : > { %3432 = vmatmul.mubr.bf16.gmra.mrb[56].mxu1 %v5094_v53 }
 0x5e1   : > { %3433 = vmatprep.mubr.bf16.mxu1 %v1805_v28 }
 0x5e8   : > { %3434 = vmatmul.mubr.bf16.gmra.mrb[60].mxu1 %v1805_v28 }
 0x5e9   : > { %3435 = vmatprep.mubr.bf16.mxu1 %v1806_v24 }
 0x5f0   : > { %3436 = vmatmul.mubr.bf16.gmra.mrb[64].mxu1 %v1806_v24 }
 0x5f1   : > { %3437 = vmatprep.mubr.bf16.mxu1 %v1807_v60 }
 0x5f8   : > { %3438 = vmatmul.mubr.bf16.gmra.mrb[68].mxu1 %v1807_v60 }
 0x5f9   : > { %3439 = vmatprep.mubr.bf16.mxu1 %v1808_v37 }
 0x600   : > { %3440 = vmatmul.mubr.bf16.gmra.mrb[72].mxu1 %v1808_v37 }
 0x601   : > { %3441 = vmatprep.mubr.bf16.mxu1 %v1809_v35 }
 0x608   : > { %3442 = vmatmul.mubr.bf16.gmra.mrb[76].mxu1 %v1809_v35 }
 0x609   : > { %3443 = vmatprep.mubr.bf16.mxu1 %v1810_v18 }
 0x610   : > { %3444 = vmatmul.mubr.bf16.gmra.mrb[80].mxu1 %v1810_v18 }
 0x611   : > { %3445 = vmatprep.mubr.bf16.mxu1 %v1811_v20 }
 0x618   : > { %3446 = vmatmul.mubr.bf16.gmra.mrb[84].mxu1 %v1811_v20 }
 0x619   : > { %3447 = vmatprep.mubr.bf16.mxu1 %v1812_v48 }
 0x620   : > { %3448 = vmatmul.mubr.bf16.gmra.mrb[88].mxu1 %v1812_v48 }
 0x621   : > { %3449 = vmatprep.mubr.bf16.mxu1 %v1813_v51 }
 0x628   : > { %3450 = vmatmul.mubr.bf16.gmra.mrb[92].mxu1 %v1813_v51 }
 0x629   : > { %3451 = vmatprep.mubr.bf16.mxu1 %v1814_v2 }
 0x630   : > { %3452 = vmatmul.mubr.bf16.gmra.mrb[96].mxu1 %v1814_v2 }
 0x68b   : > { %v5128_v8 = vpop.f32.mrb[36].mxu1 }
 0x68c   : > { %v5130_v21 = vpop.f32.mrb[37].mxu1 }
 0x68d   : > { %v5132_v15 = vpop.f32.mrb[38].mxu1  ;;  %v2024_v54 = vmax.f32 %v5128_v8, %v5130_v21 }
 0x68e   : > { %v5136_v10 = vpop.f32.mrb[39].mxu1 }
 0x68f   : > { %2025 = vmax.xlane.f32.xlu0 %v2024_v54  ;;  %v2027_v12 = vmax.f32 %v5132_v15, %v5136_v10 }
 0x691   : > { %2028 = vmax.xlane.f32.xlu1 %v2027_v12 }
 0x693   : > { %v5140_v5 = vpop.f32.mrb[40].mxu1 }
 0x694   : > { %v5142_v11 = vpop.f32.mrb[41].mxu1 }
 0x695   : > { %v5144_v38 = vpop.f32.mrb[42].mxu1  ;;  %v2030_v50 = vmax.f32 %v5140_v5, %v5142_v11 }
 0x696   : > { %v5148_v53 = vpop.f32.mrb[43].mxu1 }
 0x697   : > { %2031 = vmax.xlane.f32.xlu1 %v2030_v50  ;;  %v2033_v39 = vmax.f32 %v5144_v38, %v5148_v53 }
 0x69b   : > { %2034 = vmax.xlane.f32.xlu1 %v2033_v39  ;;  %v5152_v4 = vpop.f32.mrb[44].mxu1 }
 0x69c   : > { %v5154_v6 = vpop.f32.mrb[45].mxu1 }
 0x69d   : > { %v5156_v42 = vpop.f32.mrb[46].mxu1  ;;  %v2036_v56 = vmax.f32 %v5152_v4, %v5154_v6 }
 0x69e   : > { %v5160_v62 = vpop.f32.mrb[47].mxu1 }
 0x69f   : > { %2037 = vmax.xlane.f32.xlu0 %v2036_v56  ;;  %v2039_v1 = vmax.f32 %v5156_v42, %v5160_v62 }
 0x6a1   : > { %2040 = vmax.xlane.f32.xlu1 %v2039_v1 }
 0x6a3   : > { %v5164_v46 = vpop.f32.mrb[48].mxu1 }
 0x6a4   : > { %v5166_v45 = vpop.f32.mrb[49].mxu1 }
 0x6a5   : > { %v5168_v47 = vpop.f32.mrb[50].mxu1  ;;  %v2042_v24 = vmax.f32 %v5164_v46, %v5166_v45 }
 0x6a6   : > { %v5172_v28 = vpop.f32.mrb[51].mxu1 }
 0x6a7   : > { %2043 = vmax.xlane.f32.xlu0 %v2042_v24  ;;  %v2045_v41 = vmax.f32 %v5168_v47, %v5172_v28 }
 0x6a9   : > { %2046 = vmax.xlane.f32.xlu1 %v2045_v41 }
 0x6ab   : > { %v5176_v44 = vpop.f32.mrb[52].mxu1 }
 0x6ac   : > { %v5178_v59 = vpop.f32.mrb[53].mxu1 }
 0x6ad   : > { %v5180_v30 = vpop.f32.mrb[54].mxu1  ;;  %v2048_v19 = vmax.f32 %v5176_v44, %v5178_v59 }
 0x6ae   : > { %v5184_v25 = vpop.f32.mrb[55].mxu1 }
 0x6af   : > { %2049 = vmax.xlane.f32.xlu0 %v2048_v19  ;;  %v2051_v23 = vmax.f32 %v5180_v30, %v5184_v25 }
 0x6b1   : > { %2052 = vmax.xlane.f32.xlu1 %v2051_v23 }
 0x6b3   : > { %v5188_v49 = vpop.f32.mrb[56].mxu1 }
 0x6b4   : > { %v5190_v52 = vpop.f32.mrb[57].mxu1 }
 0x6b5   : > { %v5192_v37 = vpop.f32.mrb[58].mxu1  ;;  %v2054_v60 = vmax.f32 %v5188_v49, %v5190_v52 }
 0x6b6   : > { %v5196_v16 = vpop.f32.mrb[59].mxu1 }
 0x6b7   : > { %2055 = vmax.xlane.f32.xlu0 %v2054_v60  ;;  %v2057_v36 = vmax.f32 %v5192_v37, %v5196_v16 }
 0x6b9   : > { %2058 = vmax.xlane.f32.xlu1 %v2057_v36 }
 0x6bb   : > { %v5200_v29 = vpop.f32.mrb[60].mxu1 }
 0x6bc   : > { %v5202_v63 = vpop.f32.mrb[61].mxu1 }
 0x6bd   : > { %v5204_v17 = vpop.f32.mrb[62].mxu1  ;;  %v2060_v27 = vmax.f32 %v5200_v29, %v5202_v63 }
 0x6be   : > { %v5208_v34 = vpop.f32.mrb[63].mxu1 }
 0x6bf   : > { %2061 = vmax.xlane.f32.xlu0 %v2060_v27  ;;  %v2063_v7 = vmax.f32 %v5204_v17, %v5208_v34 }
 0x6c1   : > { %2064 = vmax.xlane.f32.xlu1 %v2063_v7 }
 0x6c3   : > { %v5212_v18 = vpop.f32.mrb[64].mxu1 }
 0x6c4   : > { %v5214_v35 = vpop.f32.mrb[65].mxu1 }
 0x6c5   : > { %v5216_v55 = vpop.f32.mrb[66].mxu1  ;;  %v2066_v58 = vmax.f32 %v5212_v18, %v5214_v35 }
 0x6c6   : > { %v5220_v0 = vpop.f32.mrb[67].mxu1 }
 0x6c7   : > { %2067 = vmax.xlane.f32.xlu0 %v2066_v58  ;;  %v2069_v22 = vmax.f32 %v5216_v55, %v5220_v0 }
 0x6c9   : > { %2070 = vmax.xlane.f32.xlu1 %v2069_v22 }
 0x6cb   : > { %v5224_v33 = vpop.f32.mrb[68].mxu1 }
 0x6cc   : > { %v5226_v32 = vpop.f32.mrb[69].mxu1 }
 0x6cd   : > { %v5228_v31 = vpop.f32.mrb[70].mxu1  ;;  %v2072_v43 = vmax.f32 %v5224_v33, %v5226_v32 }
 0x6ce   : > { %v5232_v48 = vpop.f32.mrb[71].mxu1 }
 0x6cf   : > { %2073 = vmax.xlane.f32.xlu0 %v2072_v43  ;;  %v2075_v20 = vmax.f32 %v5228_v31, %v5232_v48 }
 0x6d1   : > { %2076 = vmax.xlane.f32.xlu1 %v2075_v20 }
 0x6d3   : > { %v5236_v26 = vpop.f32.mrb[72].mxu1 }
 0x6d4   : > { %v5238_v57 = vpop.f32.mrb[73].mxu1 }
 0x6d5   : > { %v5240_v61 = vpop.f32.mrb[74].mxu1  ;;  %v2078_v40 = vmax.f32 %v5236_v26, %v5238_v57 }
 0x6d6   : > { %v5244_v13 = vpop.f32.mrb[75].mxu1 }
 0x6d7   : > { %2079 = vmax.xlane.f32.xlu0 %v2078_v40  ;;  %v2081_v14 = vmax.f32 %v5240_v61, %v5244_v13 }
 0x6d9   : > { %2082 = vmax.xlane.f32.xlu1 %v2081_v14 }
 0x6db   : > { %v5248_v9 = vpop.f32.mrb[76].mxu1 }
 0x6dc   : > { %v5250_v3 = vpop.f32.mrb[77].mxu1 }
 0x6dd   : > { %v5252_v2 = vpop.f32.mrb[78].mxu1  ;;  %v2084_v51 = vmax.f32 %v5248_v9, %v5250_v3 }
 0x6de   : > { %v5256_v54 = vpop.f32.mrb[79].mxu1 }
 0x6df   : > { %2085 = vmax.xlane.f32.xlu0 %v2084_v51  ;;  %v2087_v12 = vmax.f32 %v5252_v2, %v5256_v54 }
 0x6e1   : > { %2088 = vmax.xlane.f32.xlu1 %v2087_v12 }
 0x6e3   : > { %v5260_v50 = vpop.f32.mrb[80].mxu1 }
 0x6e4   : > { %v5262_v39 = vpop.f32.mrb[81].mxu1 }
 0x6e5   : > { %v5264_v56 = vpop.f32.mrb[82].mxu1  ;;  %v2090_v1 = vmax.f32 %v5260_v50, %v5262_v39 }
 0x6e6   : > { %v5268_v24 = vpop.f32.mrb[83].mxu1 }
 0x6e7   : > { %2091 = vmax.xlane.f32.xlu0 %v2090_v1  ;;  %v2093_v41 = vmax.f32 %v5264_v56, %v5268_v24 }
 0x6e9   : > { %2094 = vmax.xlane.f32.xlu1 %v2093_v41 }
 0x6eb   : > { %v5272_v19 = vpop.f32.mrb[84].mxu1 }
 0x6ec   : > { %v5274_v23 = vpop.f32.mrb[85].mxu1 }
 0x6ed   : > { %v5276_v60 = vpop.f32.mrb[86].mxu1  ;;  %v2096_v36 = vmax.f32 %v5272_v19, %v5274_v23 }
 0x6ee   : > { %5557 = vst [vmem:[#allocation5_spill] sm:$0xff] %v5276_v60  ;;  %v5280_v27 = vpop.f32.mrb[87].mxu1 }
 0x6ef   : > { %5558 = vst [vmem:[#allocation6_spill] sm:$0xff] %v5280_v27  ;;  %2097 = vmax.xlane.f32.xlu0 %v2096_v36  ;;  %v2099_v7 = vmax.f32 %v5276_v60, %v5280_v27 }
 0x6f1   : > { %2100 = vmax.xlane.f32.xlu1 %v2099_v7 }
 0x6f3   : > { %v5284_v58 = vpop.f32.mrb[88].mxu1 }
 0x6f4   : > { %5559 = vst [vmem:[#allocation7_spill] sm:$0xff] %v5284_v58  ;;  %v5286_v22 = vpop.f32.mrb[89].mxu1 }
 0x6f5   : > { %5560 = vst [vmem:[#allocation8_spill] sm:$0xff] %v5286_v22  ;;  %v5288_v43 = vpop.f32.mrb[90].mxu1  ;;  %v2102_v20 = vmax.f32 %v5284_v58, %v5286_v22 }
 0x6f6   : > { %5561 = vst [vmem:[#allocation9_spill] sm:$0xff] %v5288_v43  ;;  %v5292_v40 = vpop.f32.mrb[91].mxu1 }
 0x6f7   : > { %5562 = vst [vmem:[#allocation10_spill] sm:$0xff] %v5292_v40  ;;  %2103 = vmax.xlane.f32.xlu0 %v2102_v20  ;;  %v2105_v14 = vmax.f32 %v5288_v43, %v5292_v40 }
 0x6f9   : > { %2106 = vmax.xlane.f32.xlu1 %v2105_v14 }
 0x6fb   : > { %v5296_v51 = vpop.f32.mrb[92].mxu1 }
 0x6fc   : > { %5563 = vst [vmem:[#allocation11_spill] sm:$0xff] %v5296_v51  ;;  %v5298_v12 = vpop.f32.mrb[93].mxu1 }
 0x6fd   : > { %5564 = vst [vmem:[#allocation12_spill] sm:$0xff] %v5298_v12  ;;  %v5300_v1 = vpop.f32.mrb[94].mxu1  ;;  %v2108_v41 = vmax.f32 %v5296_v51, %v5298_v12 }
 0x6fe   : > { %5565 = vst [vmem:[#allocation13_spill] sm:$0xff] %v5300_v1  ;;  %v5304_v36 = vpop.f32.mrb[95].mxu1 }
 0x6ff   : > { %5566 = vst [vmem:[#allocation14_spill] sm:$0xff] %v5304_v36  ;;  %2109 = vmax.xlane.f32.xlu0 %v2108_v41  ;;  %v2111_v7 = vmax.f32 %v5300_v1, %v5304_v36 }
 0x701   : > { %2112 = vmax.xlane.f32.xlu1 %v2111_v7 }
 0x703   : > { %v5308_v20 = vpop.f32.mrb[96].mxu1 }
 0x704   : > { %5567 = vst [vmem:[#allocation15_spill] sm:$0xff] %v5308_v20  ;;  %v5310_v40 = vpop.f32.mrb[97].mxu1 }
 0x705   : > { %5568 = vst [vmem:[#allocation16_spill] sm:$0xff] %v5310_v40  ;;  %v5312_v14 = vpop.f32.mrb[98].mxu1  ;;  %v2114_v43 = vmax.f32 %v5308_v20, %v5310_v40 }
 0x706   : > { %v5316_v22 = vpop.f32.mrb[99].mxu1 }
 0x707   : > { %5569 = vst [vmem:[#allocation17_spill] sm:$0xff] %v5316_v22  ;;  %2115 = vmax.xlane.f32.xlu0 %v2114_v43  ;;  %v2117_v12 = vmax.f32 %v5312_v14, %v5316_v22 }
 0x709   : > { %2118 = vmax.xlane.f32.xlu1 %v2117_v12 }
 0x71c   : > { %v2026_v41 = vpop.xlane.xlu0 %2025 }
 0x71d   : > { %v2120_v36 = vsub.f32 %v5128_v8, %v2026_v41  ;;  %v2121_v7 = vsub.f32 %v5130_v21, %v2026_v41 }
 0x71e   : > { %v2029_v1 = vpop.xlane.xlu1 %2028 }
 0x71f   : > { %v2184_v51 = vmul.f32 1.442695, %v2120_v36  ;;  %v2186_v58 = vmul.f32 1.442695, %v2121_v7  ;;  %v2122_v27 = vsub.f32 %v5132_v15, %v2029_v1  ;;  %v2123_v60 = vsub.f32 %v5136_v10, %v2029_v1 }
 0x721   : > { %4025 = vpow2.f32 %v2184_v51  ;;  %v2188_v40 = vmul.f32 1.442695, %v2122_v27  ;;  %v2190_v20 = vmul.f32 1.442695, %v2123_v60 }
 0x722   : > { %4027 = vpow2.f32 %v2186_v58 }
 0x723   : > { %4029 = vpow2.f32 %v2188_v40 }
 0x724   : > { %4031 = vpow2.f32 %v2190_v20  ;;  %v2032_v43 = vpop.xlane.xlu1 %2031 }
 0x725   : > { %v2124_v12 = vsub.f32 %v5140_v5, %v2032_v43  ;;  %v2125_v8 = vsub.f32 %v5142_v11, %v2032_v43 }
 0x727   : > { %v2192_v22 = vmul.f32 1.442695, %v2124_v12  ;;  %v2194_v21 = vmul.f32 1.442695, %v2125_v8 }
 0x728   : > { %v2035_v41 = vpop.xlane.xlu1 %2034 }
 0x729   : > { %4033 = vpow2.f32 %v2192_v22  ;;  %v2126_v36 = vsub.f32 %v5144_v38, %v2035_v41  ;;  %v2127_v15 = vsub.f32 %v5148_v53, %v2035_v41  ;;  %v4015_v22 = vld [vmem:[%s5535_s10] sm:$0xff]  }
 0x72a   : > { %4035 = vpow2.f32 %v2194_v21  ;;  %3803 = vmatprep.subr.bf16.mxu1 %v4015_v22 }
 0x72b   : > { %v4026_v10 = vpop.eup %4025  ;;  %v2196_v27 = vmul.f32 1.442695, %v2126_v36  ;;  %v2198_v60 = vmul.f32 1.442695, %v2127_v15  ;;  %3804 = vmatpush3.bf16.msra.mxu1 %v4015_v22 }
 0x72c   : > { %v4028_v58 = vpop.eup %4027  ;;  %v2038_v40 = vpop.xlane.xlu0 %2037 }
 0x72d   : > { %v4030_v51 = vpop.eup %4029  ;;  %4037 = vpow2.f32 %v2196_v27  ;;  %v2128_v5 = vsub.f32 %v5152_v4, %v2038_v40  ;;  %v2129_v11 = vsub.f32 %v5154_v6, %v2038_v40  ;;  %v2312_v1 = vadd.f32 %v4028_v58, %v4026_v10 }
 0x72e   : > { %v4032_v38 = vpop.eup %4031  ;;  %4039 = vpow2.f32 %v2198_v60  ;;  %v2041_v53 = vpop.xlane.xlu1 %2040  ;;  %v2408_v20 = vpack.c.bf16 %v4030_v51, %v4026_v10 }
 0x72f   : > { %v2200_v7 = vmul.f32 1.442695, %v2128_v5  ;;  %v2202_v43 = vmul.f32 1.442695, %v2129_v11  ;;  %v2130_v12 = vsub.f32 %v5156_v42, %v2041_v53  ;;  %v2131_v8 = vsub.f32 %v5160_v62, %v2041_v53  ;;  %2313 = vadd.xlane.f32.xlu0 %v2312_v1 }
 0x730   : > { %v2409_v4 = vpack.c.bf16 %v4032_v38, %v4028_v58  ;;  %v2315_v21 = vadd.f32 %v4032_v38, %v4030_v51 }
 0x731   : > { %4041 = vpow2.f32 %v2200_v7  ;;  %v2204_v6 = vmul.f32 1.442695, %v2130_v12  ;;  %v2206_v41 = vmul.f32 1.442695, %v2131_v8 }
 0x732   : > { %4043 = vpow2.f32 %v2202_v43  ;;  %2488 = vmatprep.mubr.bf16.mxu0 %v2409_v4  ;;  %2316 = vadd.xlane.f32.xlu1 %v2315_v21 }
 0x733   : > { %v4034_v36 = vpop.eup %4033  ;;  %4045 = vpow2.f32 %v2204_v6  ;;  %2489 = vmatmul.mubr.bf16.vlgmr.msra.gmra.mrb[68].mxu0 %v2408_v20 }
 0x734   : > { %v4036_v15 = vpop.eup %4035  ;;  %4047 = vpow2.f32 %v2206_v41  ;;  %v2044_v10 = vpop.xlane.xlu0 %2043 }
 0x735   : > { %v2132_v42 = vsub.f32 %v5164_v46, %v2044_v10  ;;  %v2133_v62 = vsub.f32 %v5166_v45, %v2044_v10  ;;  %v2318_v27 = vadd.f32 %v4036_v15, %v4034_v36 }
 0x736   : > { %v2047_v60 = vpop.xlane.xlu1 %2046 }
 0x737   : > { %v4038_v58 = vpop.eup %4037  ;;  %v2208_v40 = vmul.f32 1.442695, %v2132_v42  ;;  %v2210_v51 = vmul.f32 1.442695, %v2133_v62  ;;  %v2134_v5 = vsub.f32 %v5168_v47, %v2047_v60  ;;  %v2135_v11 = vsub.f32 %v5172_v28, %v2047_v60  ;;  %2319 = vadd.xlane.f32.xlu0 %v2318_v27 }
 0x738   : > { %v4040_v1 = vpop.eup %4039  ;;  %v2410_v22 = vpack.c.bf16 %v4038_v58, %v4034_v36 }
 0x739   : > { %4049 = vpow2.f32 %v2208_v40  ;;  %v2212_v38 = vmul.f32 1.442695, %v2134_v5  ;;  %v2214_v53 = vmul.f32 1.442695, %v2135_v11  ;;  %v2321_v20 = vadd.f32 %v4040_v1, %v4038_v58 }
 0x73a   : > { %4051 = vpow2.f32 %v2210_v51  ;;  %v2411_v46 = vpack.c.bf16 %v4040_v1, %v4036_v15 }
 0x73b   : > { %v4042_v7 = vpop.eup %4041  ;;  %4053 = vpow2.f32 %v2212_v38  ;;  %2322 = vadd.xlane.f32.xlu1 %v2321_v20 }
 0x73c   : > { %v4044_v45 = vpop.eup %4043  ;;  %4055 = vpow2.f32 %v2214_v53  ;;  %2496 = vmatprep.mubr.bf16.mxu0 %v2411_v46  ;;  %v2050_v43 = vpop.xlane.xlu0 %2049 }
 0x73d   : > { %v4046_v12 = vpop.eup %4045  ;;  %2497 = vmatmul.mubr.bf16.gmra.mrb[72].mxu0 %v2410_v22  ;;  %v2136_v47 = vsub.f32 %v5176_v44, %v2050_v43  ;;  %v2137_v28 = vsub.f32 %v5178_v59, %v2050_v43  ;;  %v2324_v8 = vadd.f32 %v4044_v45, %v4042_v7 }
 0x73e   : > { %v4048_v4 = vpop.eup %4047  ;;  %v2053_v21 = vpop.xlane.xlu1 %2052  ;;  %v2412_v6 = vpack.c.bf16 %v4046_v12, %v4042_v7 }
 0x73f   : > { %v2216_v41 = vmul.f32 1.442695, %v2136_v47  ;;  %v2218_v36 = vmul.f32 1.442695, %v2137_v28  ;;  %v2138_v15 = vsub.f32 %v5180_v30, %v2053_v21  ;;  %v2139_v10 = vsub.f32 %v5184_v25, %v2053_v21  ;;  %2325 = vadd.xlane.f32.xlu0 %v2324_v8 }
 0x740   : > { %v2327_v42 = vadd.f32 %v4048_v4, %v4046_v12  ;;  %v2413_v62 = vpack.c.bf16 %v4048_v4, %v4044_v45 }
 0x741   : > { %4057 = vpow2.f32 %v2216_v41  ;;  %v2220_v27 = vmul.f32 1.442695, %v2138_v15  ;;  %v2222_v60 = vmul.f32 1.442695, %v2139_v10 }
 0x742   : > { %4059 = vpow2.f32 %v2218_v36  ;;  %2328 = vadd.xlane.f32.xlu1 %v2327_v42  ;;  %2504 = vmatprep.mubr.bf16.mxu0 %v2413_v62 }
 0x743   : > { %v4050_v44 = vpop.eup %4049  ;;  %4061 = vpow2.f32 %v2220_v27 }
 0x744   : > { %v4052_v59 = vpop.eup %4051  ;;  %4063 = vpow2.f32 %v2222_v60  ;;  %v2056_v58 = vpop.xlane.xlu0 %2055 }
 0x745   : > { %v4054_v40 = vpop.eup %4053  ;;  %2505 = vmatmul.mubr.bf16.gmra.mrb[76].mxu0 %v2412_v6  ;;  %v2140_v30 = vsub.f32 %v5188_v49, %v2056_v58  ;;  %v2141_v25 = vsub.f32 %v5190_v52, %v2056_v58  ;;  %v2330_v51 = vadd.f32 %v4052_v59, %v4050_v44  ;;  %v4016_v49 = vld [vmem:[%s5535_s10 + $0x8] sm:$0xff]  }
 0x746   : > { %v4056_v5 = vpop.eup %4055  ;;  %v2059_v11 = vpop.xlane.xlu1 %2058  ;;  %v2414_v1 = vpack.c.bf16 %v4054_v40, %v4050_v44  ;;  %3805 = vmatprep.subr.bf16.mxu1 %v4016_v49 }
 0x747   : > { %v2224_v22 = vmul.f32 1.442695, %v2140_v30  ;;  %v2226_v38 = vmul.f32 1.442695, %v2141_v25  ;;  %v2142_v53 = vsub.f32 %v5192_v37, %v2059_v11  ;;  %v2143_v20 = vsub.f32 %v5196_v16, %v2059_v11  ;;  %2331 = vadd.xlane.f32.xlu0 %v2330_v51  ;;  %3806 = vmatpush3.bf16.msra.mxu1 %v4016_v49 }
 0x748   : > { %v2333_v46 = vadd.f32 %v4056_v5, %v4054_v40  ;;  %v2415_v7 = vpack.c.bf16 %v4056_v5, %v4052_v59 }
 0x749   : > { %4065 = vpow2.f32 %v2224_v22  ;;  %v2228_v45 = vmul.f32 1.442695, %v2142_v53  ;;  %v2230_v43 = vmul.f32 1.442695, %v2143_v20  ;;  %v4017_v53 = vld [vmem:[%s5535_s10 + $0x10] sm:$0xff]  }
 0x74a   : > { %4067 = vpow2.f32 %v2226_v38  ;;  %2334 = vadd.xlane.f32.xlu1 %v2333_v46  ;;  %2512 = vmatprep.mubr.bf16.mxu0 %v2415_v7 }
 0x74b   : > { %v4058_v52 = vpop.eup %4057  ;;  %4069 = vpow2.f32 %v2228_v45  ;;  %3807 = vmatprep.subr.bf16.mxu1 %v4017_v53 }
 0x74c   : > { %v4060_v12 = vpop.eup %4059  ;;  %4071 = vpow2.f32 %v2230_v43  ;;  %v2062_v37 = vpop.xlane.xlu0 %2061  ;;  %3808 = vmatpush3.bf16.msra.mxu1 %v4017_v53 }
 0x74d   : > { %v4062_v16 = vpop.eup %4061  ;;  %2513 = vmatmul.mubr.bf16.gmra.mrb[80].mxu0 %v2414_v1  ;;  %v2144_v47 = vsub.f32 %v5200_v29, %v2062_v37  ;;  %v2145_v28 = vsub.f32 %v5202_v63, %v2062_v37  ;;  %v2336_v8 = vadd.f32 %v4060_v12, %v4058_v52 }
 0x74e   : > { %v4064_v4 = vpop.eup %4063  ;;  %v2065_v21 = vpop.xlane.xlu1 %2064  ;;  %v2416_v6 = vpack.c.bf16 %v4062_v16, %v4058_v52 }
 0x74f   : > { %v2232_v41 = vmul.f32 1.442695, %v2144_v47  ;;  %v2234_v36 = vmul.f32 1.442695, %v2145_v28  ;;  %v2146_v15 = vsub.f32 %v5204_v17, %v2065_v21  ;;  %v2147_v10 = vsub.f32 %v5208_v34, %v2065_v21  ;;  %2337 = vadd.xlane.f32.xlu0 %v2336_v8 }
 0x750   : > { %v2339_v42 = vadd.f32 %v4064_v4, %v4062_v16  ;;  %v2417_v62 = vpack.c.bf16 %v4064_v4, %v4060_v12 }
 0x751   : > { %4073 = vpow2.f32 %v2232_v41  ;;  %v2236_v27 = vmul.f32 1.442695, %v2146_v15  ;;  %v2238_v60 = vmul.f32 1.442695, %v2147_v10 }
 0x752   : > { %4075 = vpow2.f32 %v2234_v36  ;;  %2340 = vadd.xlane.f32.xlu1 %v2339_v42  ;;  %2520 = vmatprep.mubr.bf16.mxu0 %v2417_v62 }
 0x753   : > { %v4066_v29 = vpop.eup %4065  ;;  %4077 = vpow2.f32 %v2236_v27 }
 0x754   : > { %v4068_v63 = vpop.eup %4067  ;;  %4079 = vpow2.f32 %v2238_v60  ;;  %v2068_v44 = vpop.xlane.xlu0 %2067 }
 0x755   : > { %v4070_v59 = vpop.eup %4069  ;;  %2521 = vmatmul.mubr.bf16.gmra.mrb[84].mxu0 %v2416_v6  ;;  %v2148_v17 = vsub.f32 %v5212_v18, %v2068_v44  ;;  %v2149_v34 = vsub.f32 %v5214_v35, %v2068_v44  ;;  %v2342_v58 = vadd.f32 %v4068_v63, %v4066_v29 }
 0x756   : > { %v4072_v40 = vpop.eup %4071  ;;  %v2071_v30 = vpop.xlane.xlu1 %2070  ;;  %v2418_v25 = vpack.c.bf16 %v4070_v59, %v4066_v29 }
 0x757   : > { %v2240_v51 = vmul.f32 1.442695, %v2148_v17  ;;  %v2242_v5 = vmul.f32 1.442695, %v2149_v34  ;;  %v2150_v11 = vsub.f32 %v5216_v55, %v2071_v30  ;;  %v2151_v1 = vsub.f32 %v5220_v0, %v2071_v30  ;;  %2343 = vadd.xlane.f32.xlu0 %v2342_v58  ;;  %v4018_v17 = vld [vmem:[%s5535_s10 + $0x18] sm:$0xff]  }
 0x758   : > { %v2345_v22 = vadd.f32 %v4072_v40, %v4070_v59  ;;  %v2419_v38 = vpack.c.bf16 %v4072_v40, %v4068_v63  ;;  %3809 = vmatprep.subr.bf16.mxu1 %v4018_v17 }
 0x759   : > { %4081 = vpow2.f32 %v2240_v51  ;;  %v2244_v18 = vmul.f32 1.442695, %v2150_v11  ;;  %v2246_v35 = vmul.f32 1.442695, %v2151_v1  ;;  %3810 = vmatpush3.bf16.msra.mxu1 %v4018_v17 }
 0x75a   : > { %4083 = vpow2.f32 %v2242_v5  ;;  %2346 = vadd.xlane.f32.xlu1 %v2345_v22  ;;  %2528 = vmatprep.mubr.bf16.mxu0 %v2419_v38 }
 0x75b   : > { %v4074_v20 = vpop.eup %4073  ;;  %4085 = vpow2.f32 %v2244_v18 }
 0x75c   : > { %v4076_v46 = vpop.eup %4075  ;;  %4087 = vpow2.f32 %v2246_v35  ;;  %v2074_v55 = vpop.xlane.xlu0 %2073 }
 0x75d   : > { %v4078_v0 = vpop.eup %4077  ;;  %2529 = vmatmul.mubr.bf16.gmra.mrb[88].mxu0 %v2418_v25  ;;  %v2152_v7 = vsub.f32 %v5224_v33, %v2074_v55  ;;  %v2153_v45 = vsub.f32 %v5226_v32, %v2074_v55  ;;  %v2348_v43 = vadd.f32 %v4076_v46, %v4074_v20 }
 0x75e   : > { %v4080_v49 = vpop.eup %4079  ;;  %v2077_v52 = vpop.xlane.xlu1 %2076  ;;  %v2420_v12 = vpack.c.bf16 %v4078_v0, %v4074_v20 }
 0x75f   : > { %v2248_v37 = vmul.f32 1.442695, %v2152_v7  ;;  %v2250_v16 = vmul.f32 1.442695, %v2153_v45  ;;  %v2154_v47 = vsub.f32 %v5228_v31, %v2077_v52  ;;  %v2155_v28 = vsub.f32 %v5232_v48, %v2077_v52  ;;  %2349 = vadd.xlane.f32.xlu0 %v2348_v43 }
 0x760   : > { %v2351_v8 = vadd.f32 %v4080_v49, %v4078_v0  ;;  %v2421_v4 = vpack.c.bf16 %v4080_v49, %v4076_v46 }
 0x761   : > { %4089 = vpow2.f32 %v2248_v37  ;;  %v2252_v21 = vmul.f32 1.442695, %v2154_v47  ;;  %v2254_v6 = vmul.f32 1.442695, %v2155_v28 }
 0x762   : > { %4091 = vpow2.f32 %v2250_v16  ;;  %2352 = vadd.xlane.f32.xlu1 %v2351_v8  ;;  %2536 = vmatprep.mubr.bf16.mxu0 %v2421_v4  ;;  %v4019_v8 = vld [vmem:[%s5535_s10 + $0x20] sm:$0xff]  }
 0x763   : > { %v4082_v33 = vpop.eup %4081  ;;  %4093 = vpow2.f32 %v2252_v21  ;;  %3811 = vmatprep.subr.bf16.mxu1 %v4019_v8 }
 0x764   : > { %v4084_v32 = vpop.eup %4083  ;;  %4095 = vpow2.f32 %v2254_v6  ;;  %v2080_v41 = vpop.xlane.xlu0 %2079  ;;  %3812 = vmatpush3.bf16.msra.mxu1 %v4019_v8 }
 0x765   : > { %v4086_v36 = vpop.eup %4085  ;;  %2537 = vmatmul.mubr.bf16.gmra.mrb[92].mxu0 %v2420_v12  ;;  %v2156_v31 = vsub.f32 %v5236_v26, %v2080_v41  ;;  %v2157_v48 = vsub.f32 %v5238_v57, %v2080_v41  ;;  %v2354_v15 = vadd.f32 %v4084_v32, %v4082_v33 }
 0x766   : > { %v4088_v10 = vpop.eup %4087  ;;  %v2083_v42 = vpop.xlane.xlu1 %2082  ;;  %v2422_v62 = vpack.c.bf16 %v4086_v36, %v4082_v33 }
 0x767   : > { %v2256_v27 = vmul.f32 1.442695, %v2156_v31  ;;  %v2258_v60 = vmul.f32 1.442695, %v2157_v48  ;;  %v2158_v29 = vsub.f32 %v5240_v61, %v2083_v42  ;;  %v2159_v63 = vsub.f32 %v5244_v13, %v2083_v42  ;;  %2355 = vadd.xlane.f32.xlu0 %v2354_v15 }
 0x768   : > { %v2357_v44 = vadd.f32 %v4088_v10, %v4086_v36  ;;  %v2423_v59 = vpack.c.bf16 %v4088_v10, %v4084_v32  ;;  %v5570_v10 = vld [vmem:[#allocation5_spill] sm:$0xff] }
 0x769   : > { %4097 = vpow2.f32 %v2256_v27  ;;  %v2260_v26 = vmul.f32 1.442695, %v2158_v29  ;;  %v2262_v57 = vmul.f32 1.442695, %v2159_v63 }
 0x76a   : > { %4099 = vpow2.f32 %v2258_v60  ;;  %2358 = vadd.xlane.f32.xlu1 %v2357_v44  ;;  %2544 = vmatprep.mubr.bf16.mxu0 %v2423_v59 }
 0x76b   : > { %v4090_v34 = vpop.eup %4089  ;;  %4101 = vpow2.f32 %v2260_v26  ;;  %v5572_v26 = vld [vmem:[#allocation7_spill] sm:$0xff] }
 0x76c   : > { %v4092_v58 = vpop.eup %4091  ;;  %4103 = vpow2.f32 %v2262_v57  ;;  %v2086_v61 = vpop.xlane.xlu0 %2085 }
 0x76d   : > { %v4094_v13 = vpop.eup %4093  ;;  %2545 = vmatmul.mubr.bf16.gmra.mrb[96].mxu0 %v2422_v62  ;;  %v2160_v40 = vsub.f32 %v5248_v9, %v2086_v61  ;;  %v2161_v30 = vsub.f32 %v5250_v3, %v2086_v61  ;;  %v2360_v25 = vadd.f32 %v4092_v58, %v4090_v34  ;;  %v5571_v62 = vld [vmem:[#allocation6_spill] sm:$0xff] }
 0x76e   : > { %v4096_v51 = vpop.eup %4095  ;;  %v2089_v5 = vpop.xlane.xlu1 %2088  ;;  %v2424_v11 = vpack.c.bf16 %v4094_v13, %v4090_v34  ;;  %v5573_v34 = vld [vmem:[#allocation8_spill] sm:$0xff] }
 0x76f   : > { %v2264_v1 = vmul.f32 1.442695, %v2160_v40  ;;  %v2266_v22 = vmul.f32 1.442695, %v2161_v30  ;;  %v2162_v38 = vsub.f32 %v5252_v2, %v2089_v5  ;;  %v2163_v53 = vsub.f32 %v5256_v54, %v2089_v5  ;;  %2361 = vadd.xlane.f32.xlu0 %v2360_v25  ;;  %v5574_v5 = vld [vmem:[#allocation9_spill] sm:$0xff] }
 0x770   : > { %v2363_v18 = vadd.f32 %v4096_v51, %v4094_v13  ;;  %v2425_v35 = vpack.c.bf16 %v4096_v51, %v4092_v58 }
 0x771   : > { %4105 = vpow2.f32 %v2264_v1  ;;  %v2268_v20 = vmul.f32 1.442695, %v2162_v38  ;;  %v2270_v46 = vmul.f32 1.442695, %v2163_v53  ;;  %v5575_v1 = vld [vmem:[#allocation10_spill] sm:$0xff] }
 0x772   : > { %4107 = vpow2.f32 %v2266_v22  ;;  %2364 = vadd.xlane.f32.xlu1 %v2363_v18  ;;  %2552 = vmatprep.mubr.bf16.mxu0 %v2425_v35 }
 0x773   : > { %v4098_v9 = vpop.eup %4097  ;;  %4109 = vpow2.f32 %v2268_v20 }
 0x774   : > { %v4100_v3 = vpop.eup %4099  ;;  %4111 = vpow2.f32 %v2270_v46  ;;  %v2092_v55 = vpop.xlane.xlu0 %2091 }
 0x775   : > { %v4102_v0 = vpop.eup %4101  ;;  %2553 = vmatmul.mubr.bf16.gmra.mrb[100].mxu0 %v2424_v11  ;;  %v2164_v2 = vsub.f32 %v5260_v50, %v2092_v55  ;;  %v2165_v54 = vsub.f32 %v5262_v39, %v2092_v55  ;;  %v2366_v7 = vadd.f32 %v4100_v3, %v4098_v9 }
 0x776   : > { %v4104_v45 = vpop.eup %4103  ;;  %v2095_v43 = vpop.xlane.xlu1 %2094  ;;  %v2426_v49 = vpack.c.bf16 %v4102_v0, %v4098_v9 }
 0x777   : > { %v2272_v52 = vmul.f32 1.442695, %v2164_v2  ;;  %v2274_v12 = vmul.f32 1.442695, %v2165_v54  ;;  %v2166_v37 = vsub.f32 %v5264_v56, %v2095_v43  ;;  %v2167_v16 = vsub.f32 %v5268_v24, %v2095_v43  ;;  %2367 = vadd.xlane.f32.xlu0 %v2366_v7  ;;  %v5577_v54 = vld [vmem:[#allocation12_spill] sm:$0xff] }
 0x778   : > { %v2369_v47 = vadd.f32 %v4104_v45, %v4102_v0  ;;  %v2427_v28 = vpack.c.bf16 %v4104_v45, %v4100_v3  ;;  %v4020_v3 = vld [vmem:[%s5535_s10 + $0x28] sm:$0xff]   ;;  %v5576_v0 = vld [vmem:[#allocation11_spill] sm:$0xff] }
 0x779   : > { %4113 = vpow2.f32 %v2272_v52  ;;  %v2276_v50 = vmul.f32 1.442695, %v2166_v37  ;;  %v2278_v39 = vmul.f32 1.442695, %v2167_v16  ;;  %3813 = vmatprep.subr.bf16.mxu1 %v4020_v3  ;;  %v5578_v16 = vld [vmem:[#allocation13_spill] sm:$0xff] }
 0x77a   : > { %4115 = vpow2.f32 %v2274_v12  ;;  %2370 = vadd.xlane.f32.xlu1 %v2369_v47  ;;  %2560 = vmatprep.mubr.bf16.mxu0 %v2427_v28  ;;  %v5579_v28 = vld [vmem:[#allocation14_spill] sm:$0xff] }
 0x77b   : > { %v4106_v4 = vpop.eup %4105  ;;  %4117 = vpow2.f32 %v2276_v50  ;;  %3814 = vmatpush3.bf16.msra.mxu1 %v4020_v3 }
 0x77c   : > { %v4108_v21 = vpop.eup %4107  ;;  %4119 = vpow2.f32 %v2278_v39  ;;  %v2098_v56 = vpop.xlane.xlu0 %2097 }
 0x77d   : > { %v4110_v24 = vpop.eup %4109  ;;  %2561 = vmatmul.mubr.bf16.gmra.mrb[104].mxu0 %v2426_v49  ;;  %v2168_v6 = vsub.f32 %v5272_v19, %v2098_v56  ;;  %v2169_v33 = vsub.f32 %v5274_v23, %v2098_v56  ;;  %v2372_v32 = vadd.f32 %v4108_v21, %v4106_v4 }
 0x77e   : > { %v4112_v41 = vpop.eup %4111  ;;  %v2101_v36 = vpop.xlane.xlu1 %2100  ;;  %v2428_v31 = vpack.c.bf16 %v4110_v24, %v4106_v4 }
 0x77f   : > { %v2280_v48 = vmul.f32 1.442695, %v2168_v6  ;;  %v2282_v15 = vmul.f32 1.442695, %v2169_v33  ;;  %v2170_v42 = vsub.f32 %v5570_v10, %v2101_v36  ;;  %v2171_v27 = vsub.f32 %v5571_v62, %v2101_v36  ;;  %2373 = vadd.xlane.f32.xlu0 %v2372_v32  ;;  %v4021_v33 = vld [vmem:[%s5535_s10 + $0x30] sm:$0xff]  }
 0x780   : > { %v2375_v60 = vadd.f32 %v4112_v41, %v4110_v24  ;;  %v2429_v29 = vpack.c.bf16 %v4112_v41, %v4108_v21  ;;  %v5580_v41 = vld [vmem:[#allocation15_spill] sm:$0xff]  ;;  %3815 = vmatprep.subr.bf16.mxu1 %v4021_v33 }
 0x781   : > { %4121 = vpow2.f32 %v2280_v48  ;;  %v2284_v63 = vmul.f32 1.442695, %v2170_v42  ;;  %v2286_v44 = vmul.f32 1.442695, %v2171_v27  ;;  %3816 = vmatpush3.bf16.msra.mxu1 %v4021_v33 }
 0x782   : > { %4123 = vpow2.f32 %v2282_v15  ;;  %2376 = vadd.xlane.f32.xlu1 %v2375_v60  ;;  %2568 = vmatprep.mubr.bf16.mxu0 %v2429_v29 }
 0x783   : > { %v4114_v19 = vpop.eup %4113  ;;  %4125 = vpow2.f32 %v2284_v63  ;;  %v5582_v63 = vld [vmem:[#allocation17_spill] sm:$0xff] }
 0x784   : > { %v4116_v23 = vpop.eup %4115  ;;  %4127 = vpow2.f32 %v2286_v44  ;;  %v2104_v59 = vpop.xlane.xlu0 %2103 }
 0x785   : > { %v4118_v17 = vpop.eup %4117  ;;  %2569 = vmatmul.mubr.bf16.gmra.mrb[108].mxu0 %v2428_v31  ;;  %v2172_v57 = vsub.f32 %v5572_v26, %v2104_v59  ;;  %v2173_v58 = vsub.f32 %v5573_v34, %v2104_v59  ;;  %v2378_v61 = vadd.f32 %v4116_v23, %v4114_v19  ;;  %v5581_v31 = vld [vmem:[#allocation16_spill] sm:$0xff] }
 0x786   : > { %v4120_v13 = vpop.eup %4119  ;;  %v2107_v40 = vpop.xlane.xlu1 %2106  ;;  %v2430_v30 = vpack.c.bf16 %v4118_v17, %v4114_v19  ;;  %v4022_v59 = vld [vmem:[%s5535_s10 + $0x38] sm:$0xff]  }
 0x787   : > { %v2288_v25 = vmul.f32 1.442695, %v2172_v57  ;;  %v2290_v51 = vmul.f32 1.442695, %v2173_v58  ;;  %v2174_v11 = vsub.f32 %v5574_v5, %v2107_v40  ;;  %v2175_v22 = vsub.f32 %v5575_v1, %v2107_v40  ;;  %2379 = vadd.xlane.f32.xlu0 %v2378_v61  ;;  %3817 = vmatprep.subr.bf16.mxu1 %v4022_v59 }
 0x788   : > { %v2381_v38 = vadd.f32 %v4120_v13, %v4118_v17  ;;  %v2431_v53 = vpack.c.bf16 %v4120_v13, %v4116_v23  ;;  %3818 = vmatpush3.bf16.msra.mxu1 %v4022_v59 }
 0x789   : > { %4129 = vpow2.f32 %v2288_v25  ;;  %v2292_v18 = vmul.f32 1.442695, %v2174_v11  ;;  %v2294_v35 = vmul.f32 1.442695, %v2175_v22 }
 0x78a   : > { %4131 = vpow2.f32 %v2290_v51  ;;  %2382 = vadd.xlane.f32.xlu1 %v2381_v38  ;;  %2576 = vmatprep.mubr.bf16.mxu0 %v2431_v53 }
 0x78b   : > { %v4122_v20 = vpop.eup %4121  ;;  %4133 = vpow2.f32 %v2292_v18 }
 0x78c   : > { %v4124_v46 = vpop.eup %4123  ;;  %4135 = vpow2.f32 %v2294_v35  ;;  %v2110_v9 = vpop.xlane.xlu0 %2109 }
 0x78d   : > { %v4126_v55 = vpop.eup %4125  ;;  %2577 = vmatmul.mubr.bf16.gmra.mrb[112].mxu0 %v2430_v30  ;;  %v2176_v2 = vsub.f32 %v5576_v0, %v2110_v9  ;;  %v2177_v7 = vsub.f32 %v5577_v54, %v2110_v9  ;;  %v2384_v45 = vadd.f32 %v4124_v46, %v4122_v20 }
 0x78e   : > { %v4128_v43 = vpop.eup %4127  ;;  %v2113_v49 = vpop.xlane.xlu1 %2112  ;;  %v2432_v52 = vpack.c.bf16 %v4126_v55, %v4122_v20 }
 0x78f   : > { %v2296_v12 = vmul.f32 1.442695, %v2176_v2  ;;  %v2298_v37 = vmul.f32 1.442695, %v2177_v7  ;;  %v2178_v47 = vsub.f32 %v5578_v16, %v2113_v49  ;;  %v2179_v8 = vsub.f32 %v5579_v28, %v2113_v49  ;;  %2385 = vadd.xlane.f32.xlu0 %v2384_v45 }
 0x790   : > { %v2387_v50 = vadd.f32 %v4128_v43, %v4126_v55  ;;  %v2433_v39 = vpack.c.bf16 %v4128_v43, %v4124_v46 }
 0x791   : > { %4137 = vpow2.f32 %v2296_v12  ;;  %v2300_v4 = vmul.f32 1.442695, %v2178_v47  ;;  %v2302_v21 = vmul.f32 1.442695, %v2179_v8 }
 0x792   : > { %4139 = vpow2.f32 %v2298_v37  ;;  %2388 = vadd.xlane.f32.xlu1 %v2387_v50  ;;  %2584 = vmatprep.mubr.bf16.mxu0 %v2433_v39 }
 0x793   : > { %v4130_v56 = vpop.eup %4129  ;;  %4141 = vpow2.f32 %v2300_v4 }
 0x794   : > { %v4132_v24 = vpop.eup %4131  ;;  %4143 = vpow2.f32 %v2302_v21  ;;  %v2116_v6 = vpop.xlane.xlu0 %2115 }
 0x795   : > { %v4134_v32 = vpop.eup %4133  ;;  %2585 = vmatmul.mubr.bf16.gmra.mrb[116].mxu0 %v2432_v52  ;;  %v2180_v36 = vsub.f32 %v5580_v41, %v2116_v6  ;;  %v2181_v48 = vsub.f32 %v5581_v31, %v2116_v6  ;;  %v2390_v15 = vadd.f32 %v4132_v24, %v4130_v56 }
 0x796   : > { %v4136_v10 = vpop.eup %4135  ;;  %v2119_v42 = vpop.xlane.xlu1 %2118  ;;  %v2434_v62 = vpack.c.bf16 %v4134_v32, %v4130_v56 }
 0x797   : > { %v2304_v27 = vmul.f32 1.442695, %v2180_v36  ;;  %v2306_v60 = vmul.f32 1.442695, %v2181_v48  ;;  %2391 = vadd.xlane.f32.xlu0 %v2390_v15  ;;  %v2182_v29 = vsub.f32 %v5312_v14, %v2119_v42  ;;  %v2183_v44 = vsub.f32 %v5582_v63, %v2119_v42 }
 0x798   : > { %v2393_v19 = vadd.f32 %v4136_v10, %v4134_v32  ;;  %v2435_v23 = vpack.c.bf16 %v4136_v10, %v4132_v24 }
 0x799   : > { %4145 = vpow2.f32 %v2304_v27  ;;  %v2308_v17 = vmul.f32 1.442695, %v2182_v29  ;;  %v2310_v26 = vmul.f32 1.442695, %v2183_v44 }
 0x79a   : > { %4147 = vpow2.f32 %v2306_v60  ;;  %2394 = vadd.xlane.f32.xlu1 %v2393_v19  ;;  %2592 = vmatprep.mubr.bf16.mxu0 %v2435_v23 }
 0x79b   : > { %v4138_v57 = vpop.eup %4137  ;;  %4149 = vpow2.f32 %v2308_v17 }
 0x79c   : > { %v4140_v34 = vpop.eup %4139  ;;  %4151 = vpow2.f32 %v2310_v26 }
 0x79d   : > { %v4142_v14 = vpop.eup %4141  ;;  %2593 = vmatmul.mubr.bf16.gmra.mrb[120].mxu0 %v2434_v62  ;;  %v2396_v58 = vadd.f32 %v4140_v34, %v4138_v57 }
 0x79e   : > { %v4144_v61 = vpop.eup %4143  ;;  %v2436_v13 = vpack.c.bf16 %v4142_v14, %v4138_v57 }
 0x79f   : > { %2397 = vadd.xlane.f32.xlu0 %v2396_v58  ;;  %v2399_v40 = vadd.f32 %v4144_v61, %v4142_v14  ;;  %v2437_v30 = vpack.c.bf16 %v4144_v61, %v4140_v34 }
 0x7a1   : > { %2400 = vadd.xlane.f32.xlu1 %v2399_v40  ;;  %2600 = vmatprep.mubr.bf16.mxu0 %v2437_v30 }
 0x7a3   : > { %v4146_v25 = vpop.eup %4145 }
 0x7a4   : > { %v4148_v51 = vpop.eup %4147 }
 0x7a5   : > { %v4150_v5 = vpop.eup %4149  ;;  %2601 = vmatmul.mubr.bf16.gmra.mrb[124].mxu0 %v2436_v13  ;;  %v2402_v11 = vadd.f32 %v4148_v51, %v4146_v25 }
 0x7a6   : > { %v4152_v1 = vpop.eup %4151  ;;  %v2438_v22 = vpack.c.bf16 %v4150_v5, %v4146_v25 }
 0x7a7   : > { %2403 = vadd.xlane.f32.xlu0 %v2402_v11  ;;  %v2405_v38 = vadd.f32 %v4152_v1, %v4150_v5  ;;  %v2439_v53 = vpack.c.bf16 %v4152_v1, %v4148_v51 }
 0x7a9   : > { %2406 = vadd.xlane.f32.xlu1 %v2405_v38  ;;  %2608 = vmatprep.mubr.bf16.mxu0 %v2439_v53 }
 0x7ad   : > { %2609 = vmatmul.mubr.bf16.gmra.mrb[128].mxu0 %v2438_v22 }
 0x7bc   : > { %v2314_v18 = vpop.xlane.xlu0 %2313 }
 0x7bd   : > { %4153 = vrcp.f32 %v2314_v18 }
 0x7bf   : > { %v2317_v35 = vpop.xlane.xlu1 %2316 }
 0x7c0   : > { %4155 = vrcp.f32 %v2317_v35 }
 0x7c4   : > { %v2320_v46 = vpop.xlane.xlu0 %2319 }
 0x7c5   : > { %4157 = vrcp.f32 %v2320_v46 }
 0x7c7   : > { %v4154_v54 = vpop.eup %4153 }
 0x7c8   : > { %v2323_v3 = vpop.xlane.xlu1 %2322 }
 0x7c9   : > { %4159 = vrcp.f32 %v2323_v3 }
 0x7ca   : > { %v4156_v45 = vpop.eup %4155 }
 0x7cc   : > { %v2326_v12 = vpop.xlane.xlu0 %2325 }
 0x7cd   : > { %4161 = vrcp.f32 %v2326_v12 }
 0x7cf   : > { %v2329_v37 = vpop.xlane.xlu1 %2328  ;;  %v4158_v39 = vpop.eup %4157 }
 0x7d0   : > { %4163 = vrcp.f32 %v2329_v37 }
 0x7d3   : > { %v4160_v21 = vpop.eup %4159 }
 0x7d4   : > { %v2332_v6 = vpop.xlane.xlu0 %2331 }
 0x7d5   : > { %4165 = vrcp.f32 %v2332_v6 }
 0x7d7   : > { %v2335_v33 = vpop.xlane.xlu1 %2334  ;;  %v4162_v10 = vpop.eup %4161 }
 0x7d8   : > { %4167 = vrcp.f32 %v2335_v33 }
 0x7da   : > { %v4164_v62 = vpop.eup %4163 }
 0x7dc   : > { %v2338_v29 = vpop.xlane.xlu0 %2337 }
 0x7dd   : > { %4169 = vrcp.f32 %v2338_v29 }
 0x7df   : > { %v2341_v63 = vpop.xlane.xlu1 %2340  ;;  %v4166_v57 = vpop.eup %4165 }
 0x7e0   : > { %4171 = vrcp.f32 %v2341_v63 }
 0x7e2   : > { %v4168_v14 = vpop.eup %4167 }
 0x7e4   : > { %v2344_v13 = vpop.xlane.xlu0 %2343 }
 0x7e5   : > { %4173 = vrcp.f32 %v2344_v13 }
 0x7e7   : > { %v2347_v40 = vpop.xlane.xlu1 %2346  ;;  %v4170_v22 = vpop.eup %4169 }
 0x7e8   : > { %4175 = vrcp.f32 %v2347_v40 }
 0x7ea   : > { %v4172_v53 = vpop.eup %4171 }
 0x7ef   : > { %v2353_v46 = vpop.xlane.xlu1 %2352 }
 0x7f7   : > { %v2359_v37 = vpop.xlane.xlu1 %2358 }
 0x806   : > { %v3469_v20 = vpop.f32.mrb[68].mxu0 }
 0x807   : > { %v3470_v9 = vpop.f32.mrb[69].mxu0 }
 0x808   : > { %v3471_v55 = vadd.f32 %v3470_v9, %v3469_v20  ;;  %v3472_v0 = vpop.f32.mrb[70].mxu0  ;;  %v2350_v20 = vpop.xlane.xlu0 %2349 }
 0x809   : > { %v3473_v2 = vpop.f32.mrb[71].mxu0  ;;  %4177 = vrcp.f32 %v2350_v20 }
 0x80a   : > { %v3474_v7 = vadd.f32 %v3473_v2, %v3472_v0  ;;  %v2649_v43 = vmul.f32 %v4154_v54, %v3471_v55  ;;  %4179 = vrcp.f32 %v2353_v46 }
 0x80c   : > { %v2650_v49 = vmul.f32 %v4156_v45, %v3474_v7  ;;  %v4174_v7 = vpop.eup %4173  ;;  %v2356_v12 = vpop.xlane.xlu0 %2355 }
 0x80d   : > { %4181 = vrcp.f32 %v2356_v12 }
 0x80e   : > { %v2681_v52 = vpack.c.bf16 %v2650_v49, %v2649_v43  ;;  %v4176_v43 = vpop.eup %4175  ;;  %4183 = vrcp.f32 %v2359_v37 }
 0x810   : > { %v3475_v16 = vpop.f32.mrb[72].mxu0  ;;  %3819 = vmatprep.mubr.bf16.mxu1 %v2681_v52  ;;  %v2362_v33 = vpop.xlane.xlu0 %2361 }
 0x811   : > { %v3476_v47 = vpop.f32.mrb[73].mxu0  ;;  %4185 = vrcp.f32 %v2362_v33 }
 0x812   : > { %v3477_v28 = vadd.f32 %v3476_v47, %v3475_v16  ;;  %v3478_v8 = vpop.f32.mrb[74].mxu0 }
 0x813   : > { %v3479_v50 = vpop.f32.mrb[75].mxu0 }
 0x814   : > { %v3480_v4 = vadd.f32 %v3479_v50, %v3478_v8  ;;  %v2651_v56 = vmul.f32 %v4158_v39, %v3477_v28  ;;  %v2368_v63 = vpop.xlane.xlu0 %2367 }
 0x816   : > { %v2652_v24 = vmul.f32 %v4160_v21, %v3480_v4  ;;  %v4178_v4 = vpop.eup %4177 }
 0x818   : > { %v2682_v32 = vpack.c.bf16 %v2652_v24, %v2651_v56  ;;  %v3481_v41 = vpop.f32.mrb[76].mxu0  ;;  %v4180_v56 = vpop.eup %4179 }
 0x819   : > { %v3482_v36 = vpop.f32.mrb[77].mxu0  ;;  %v2374_v40 = vpop.xlane.xlu0 %2373 }
 0x81a   : > { %v3483_v31 = vadd.f32 %v3482_v36, %v3481_v41  ;;  %v3484_v48 = vpop.f32.mrb[78].mxu0  ;;  %3820 = vmatmul.mubr.bf16.vlgmr.msra.gmra.mrb[100].mxu1 %v2682_v32  ;;  %v2365_v32 = vpop.xlane.xlu1 %2364 }
 0x81b   : > { %v3485_v15 = vpop.f32.mrb[79].mxu0  ;;  %4187 = vrcp.f32 %v2365_v32 }
 0x81c   : > { %v3486_v42 = vadd.f32 %v3485_v15, %v3484_v48  ;;  %v2653_v27 = vmul.f32 %v4162_v10, %v3483_v31  ;;  %4189 = vrcp.f32 %v2368_v63 }
 0x81d   : > { %v2380_v46 = vpop.xlane.xlu0 %2379 }
 0x81e   : > { %v2654_v60 = vmul.f32 %v4164_v62, %v3486_v42  ;;  %v4182_v42 = vpop.eup %4181 }
 0x820   : > { %v3487_v44 = vpop.f32.mrb[80].mxu0  ;;  %v2683_v19 = vpack.c.bf16 %v2654_v60, %v2653_v27  ;;  %v4184_v27 = vpop.eup %4183 }
 0x821   : > { %v3488_v23 = vpop.f32.mrb[81].mxu0  ;;  %v2386_v37 = vpop.xlane.xlu0 %2385 }
 0x822   : > { %v3489_v59 = vadd.f32 %v3488_v23, %v3487_v44  ;;  %v3490_v17 = vpop.f32.mrb[82].mxu0  ;;  %3823 = vmatprep.mubr.bf16.mxu1 %v2683_v19  ;;  %v2371_v44 = vpop.xlane.xlu1 %2370 }
 0x823   : > { %v3491_v26 = vpop.f32.mrb[83].mxu0  ;;  %4191 = vrcp.f32 %v2371_v44 }
 0x824   : > { %v3492_v34 = vadd.f32 %v3491_v26, %v3490_v17  ;;  %v2655_v58 = vmul.f32 %v4166_v57, %v3489_v59  ;;  %4193 = vrcp.f32 %v2374_v40 }
 0x825   : > { %v2392_v32 = vpop.xlane.xlu0 %2391 }
 0x826   : > { %v2656_v61 = vmul.f32 %v4168_v14, %v3492_v34  ;;  %v4186_v34 = vpop.eup %4185 }
 0x828   : > { %v3493_v30 = vpop.f32.mrb[84].mxu0  ;;  %v2684_v25 = vpack.c.bf16 %v2656_v61, %v2655_v58  ;;  %v4188_v58 = vpop.eup %4187 }
 0x829   : > { %v3494_v51 = vpop.f32.mrb[85].mxu0 }
 0x82a   : > { %v3495_v5 = vadd.f32 %v3494_v51, %v3493_v30  ;;  %v3496_v11 = vpop.f32.mrb[86].mxu0  ;;  %3824 = vmatmul.mubr.bf16.gmra.mrb[104].mxu1 %v2684_v25  ;;  %v2377_v30 = vpop.xlane.xlu1 %2376 }
 0x82b   : > { %v3497_v1 = vpop.f32.mrb[87].mxu0  ;;  %4195 = vrcp.f32 %v2377_v30 }
 0x82c   : > { %v3498_v38 = vadd.f32 %v3497_v1, %v3496_v11  ;;  %v2657_v18 = vmul.f32 %v4170_v22, %v3495_v5  ;;  %4197 = vrcp.f32 %v2380_v46  ;;  %v2398_v44 = vpop.xlane.xlu0 %2397 }
 0x82e   : > { %v2658_v35 = vmul.f32 %v4172_v53, %v3498_v38  ;;  %v4190_v38 = vpop.eup %4189 }
 0x830   : > { %v3499_v9 = vpop.f32.mrb[88].mxu0  ;;  %v2685_v3 = vpack.c.bf16 %v2658_v35, %v2657_v18  ;;  %v4192_v18 = vpop.eup %4191 }
 0x831   : > { %v3500_v55 = vpop.f32.mrb[89].mxu0 }
 0x832   : > { %v3501_v0 = vadd.f32 %v3500_v55, %v3499_v9  ;;  %v3502_v2 = vpop.f32.mrb[90].mxu0  ;;  %3827 = vmatprep.mubr.bf16.mxu1 %v2685_v3  ;;  %v2383_v9 = vpop.xlane.xlu1 %2382 }
 0x833   : > { %v3503_v54 = vpop.f32.mrb[91].mxu0  ;;  %4199 = vrcp.f32 %v2383_v9 }
 0x834   : > { %v3504_v45 = vadd.f32 %v3503_v54, %v3502_v2  ;;  %v2659_v49 = vmul.f32 %v4174_v7, %v3501_v0  ;;  %4201 = vrcp.f32 %v2386_v37  ;;  %v2404_v30 = vpop.xlane.xlu0 %2403  ;;  %v5411_v37 = vld [vmem:[%s5536_s11] ss:$0 sm:$0xff] }
 0x836   : > { %v2660_v52 = vmul.f32 %v4176_v43, %v3504_v45  ;;  %v4194_v45 = vpop.eup %4193 }
 0x838   : > { %v3505_v16 = vpop.f32.mrb[92].mxu0  ;;  %v2686_v47 = vpack.c.bf16 %v2660_v52, %v2659_v49  ;;  %v4196_v49 = vpop.eup %4195 }
 0x839   : > { %v3506_v28 = vpop.f32.mrb[93].mxu0 }
 0x83a   : > { %v3507_v8 = vadd.f32 %v3506_v28, %v3505_v16  ;;  %v3508_v50 = vpop.f32.mrb[94].mxu0  ;;  %3828 = vmatmul.mubr.bf16.gmra.mrb[108].mxu1 %v2686_v47  ;;  %v2389_v16 = vpop.xlane.xlu1 %2388 }
 0x83b   : > { %v3509_v39 = vpop.f32.mrb[95].mxu0  ;;  %4203 = vrcp.f32 %v2389_v16 }
 0x83c   : > { %v3510_v21 = vadd.f32 %v3509_v39, %v3508_v50  ;;  %v2661_v24 = vmul.f32 %v4178_v4, %v3507_v8  ;;  %4205 = vrcp.f32 %v2392_v32 }
 0x83e   : > { %v2662_v6 = vmul.f32 %v4180_v56, %v3510_v21  ;;  %v4198_v21 = vpop.eup %4197 }
 0x840   : > { %v3511_v41 = vpop.f32.mrb[96].mxu0  ;;  %v2687_v36 = vpack.c.bf16 %v2662_v6, %v2661_v24  ;;  %v4200_v24 = vpop.eup %4199 }
 0x841   : > { %v3512_v31 = vpop.f32.mrb[97].mxu0 }
 0x842   : > { %v3513_v48 = vadd.f32 %v3512_v31, %v3511_v41  ;;  %v3514_v15 = vpop.f32.mrb[98].mxu0  ;;  %3831 = vmatprep.mubr.bf16.mxu1 %v2687_v36  ;;  %v2395_v41 = vpop.xlane.xlu1 %2394 }
 0x843   : > { %v3515_v10 = vpop.f32.mrb[99].mxu0  ;;  %4207 = vrcp.f32 %v2395_v41 }
 0x844   : > { %v3516_v62 = vadd.f32 %v3515_v10, %v3514_v15  ;;  %v2663_v60 = vmul.f32 %v4182_v42, %v3513_v48  ;;  %4209 = vrcp.f32 %v2398_v44 }
 0x846   : > { %v2664_v29 = vmul.f32 %v4184_v27, %v3516_v62  ;;  %v4202_v62 = vpop.eup %4201 }
 0x848   : > { %v3517_v19 = vpop.f32.mrb[100].mxu0  ;;  %v2688_v23 = vpack.c.bf16 %v2664_v29, %v2663_v60  ;;  %v4204_v60 = vpop.eup %4203 }
 0x849   : > { %v3518_v59 = vpop.f32.mrb[101].mxu0 }
 0x84a   : > { %v3519_v17 = vadd.f32 %v3518_v59, %v3517_v19  ;;  %v3520_v26 = vpop.f32.mrb[102].mxu0  ;;  %3832 = vmatmul.mubr.bf16.gmra.mrb[112].mxu1 %v2688_v23  ;;  %v2401_v19 = vpop.xlane.xlu1 %2400 }
 0x84b   : > { %v3521_v57 = vpop.f32.mrb[103].mxu0  ;;  %4211 = vrcp.f32 %v2401_v19 }
 0x84c   : > { %v3522_v14 = vadd.f32 %v3521_v57, %v3520_v26  ;;  %v2665_v61 = vmul.f32 %v4186_v34, %v3519_v17  ;;  %4213 = vrcp.f32 %v2404_v30 }
 0x84e   : > { %v2666_v13 = vmul.f32 %v4188_v58, %v3522_v14  ;;  %v4206_v14 = vpop.eup %4205 }
 0x850   : > { %v3523_v25 = vpop.f32.mrb[104].mxu0  ;;  %v2689_v51 = vpack.c.bf16 %v2666_v13, %v2665_v61  ;;  %v4208_v61 = vpop.eup %4207 }
 0x851   : > { %v3524_v5 = vpop.f32.mrb[105].mxu0 }
 0x852   : > { %v3525_v11 = vadd.f32 %v3524_v5, %v3523_v25  ;;  %v3526_v1 = vpop.f32.mrb[106].mxu0  ;;  %3835 = vmatprep.mubr.bf16.mxu1 %v2689_v51  ;;  %v2407_v25 = vpop.xlane.xlu1 %2406 }
 0x853   : > { %v3527_v22 = vpop.f32.mrb[107].mxu0  ;;  %4215 = vrcp.f32 %v2407_v25 }
 0x854   : > { %v3528_v53 = vadd.f32 %v3527_v22, %v3526_v1  ;;  %v2667_v35 = vmul.f32 %v4190_v38, %v3525_v11 }
 0x856   : > { %v2668_v20 = vmul.f32 %v4192_v18, %v3528_v53  ;;  %v4210_v53 = vpop.eup %4209 }
 0x858   : > { %v3529_v3 = vpop.f32.mrb[108].mxu0  ;;  %v2690_v55 = vpack.c.bf16 %v2668_v20, %v2667_v35  ;;  %v4212_v35 = vpop.eup %4211 }
 0x859   : > { %v3530_v0 = vpop.f32.mrb[109].mxu0 }
 0x85a   : > { %v3531_v2 = vadd.f32 %v3530_v0, %v3529_v3  ;;  %v3532_v54 = vpop.f32.mrb[110].mxu0  ;;  %3836 = vmatmul.mubr.bf16.gmra.mrb[116].mxu1 %v2690_v55 }
 0x85b   : > { %v3533_v7 = vpop.f32.mrb[111].mxu0 }
 0x85c   : > { %v3534_v43 = vadd.f32 %v3533_v7, %v3532_v54  ;;  %v2669_v52 = vmul.f32 %v4194_v45, %v3531_v2  ;;  %v4214_v7 = vpop.eup %4213 }
 0x85e   : > { %v2670_v12 = vmul.f32 %v4196_v49, %v3534_v43  ;;  %v4216_v43 = vpop.eup %4215 }
 0x860   : > { %v3535_v47 = vpop.f32.mrb[112].mxu0  ;;  %v2691_v28 = vpack.c.bf16 %v2670_v12, %v2669_v52 }
 0x861   : > { %v3536_v8 = vpop.f32.mrb[113].mxu0 }
 0x862   : > { %v3537_v50 = vadd.f32 %v3536_v8, %v3535_v47  ;;  %v3538_v39 = vpop.f32.mrb[114].mxu0  ;;  %3839 = vmatprep.mubr.bf16.mxu1 %v2691_v28 }
 0x863   : > { %v3539_v4 = vpop.f32.mrb[115].mxu0 }
 0x864   : > { %v3540_v56 = vadd.f32 %v3539_v4, %v3538_v39  ;;  %v2671_v6 = vmul.f32 %v4198_v21, %v3537_v50 }
 0x866   : > { %v2672_v33 = vmul.f32 %v4200_v24, %v3540_v56 }
 0x868   : > { %v3541_v36 = vpop.f32.mrb[116].mxu0  ;;  %v2692_v31 = vpack.c.bf16 %v2672_v33, %v2671_v6 }
 0x869   : > { %v3542_v48 = vpop.f32.mrb[117].mxu0 }
 0x86a   : > { %v3543_v15 = vadd.f32 %v3542_v48, %v3541_v36  ;;  %v3544_v10 = vpop.f32.mrb[118].mxu0  ;;  %3840 = vmatmul.mubr.bf16.gmra.mrb[120].mxu1 %v2692_v31 }
 0x86b   : > { %v3545_v42 = vpop.f32.mrb[119].mxu0 }
 0x86c   : > { %v3546_v27 = vadd.f32 %v3545_v42, %v3544_v10  ;;  %v2673_v29 = vmul.f32 %v4202_v62, %v3543_v15 }
 0x86e   : > { %v2674_v63 = vmul.f32 %v4204_v60, %v3546_v27 }
 0x870   : > { %v3547_v23 = vpop.f32.mrb[120].mxu0  ;;  %v2693_v59 = vpack.c.bf16 %v2674_v63, %v2673_v29 }
 0x871   : > { %v3548_v17 = vpop.f32.mrb[121].mxu0 }
 0x872   : > { %v3549_v26 = vadd.f32 %v3548_v17, %v3547_v23  ;;  %v3550_v57 = vpop.f32.mrb[122].mxu0  ;;  %3843 = vmatprep.mubr.bf16.mxu1 %v2693_v59 }
 0x873   : > { %v3551_v34 = vpop.f32.mrb[123].mxu0 }
 0x874   : > { %v3552_v58 = vadd.f32 %v3551_v34, %v3550_v57  ;;  %v2675_v13 = vmul.f32 %v4206_v14, %v3549_v26 }
 0x876   : > { %v2676_v40 = vmul.f32 %v4208_v61, %v3552_v58 }
 0x878   : > { %v3553_v51 = vpop.f32.mrb[124].mxu0  ;;  %v2694_v5 = vpack.c.bf16 %v2676_v40, %v2675_v13 }
 0x879   : > { %v3554_v11 = vpop.f32.mrb[125].mxu0 }
 0x87a   : > { %v3555_v1 = vadd.f32 %v3554_v11, %v3553_v51  ;;  %v3556_v22 = vpop.f32.mrb[126].mxu0  ;;  %3844 = vmatmul.mubr.bf16.gmra.mrb[124].mxu1 %v2694_v5 }
 0x87b   : > { %v3557_v38 = vpop.f32.mrb[127].mxu0 }
 0x87c   : > { %v3558_v18 = vadd.f32 %v3557_v38, %v3556_v22  ;;  %v2677_v20 = vmul.f32 %v4210_v53, %v3555_v1 }
 0x87e   : > { %v2678_v46 = vmul.f32 %v4212_v35, %v3558_v18 }
 0x880   : > { %v3559_v9 = vpop.f32.mrb[128].mxu0  ;;  %v2695_v3 = vpack.c.bf16 %v2678_v46, %v2677_v20 }
 0x881   : > { %v3560_v55 = vpop.f32.mrb[129].mxu0 }
 0x882   : > { %v3561_v0 = vadd.f32 %v3560_v55, %v3559_v9  ;;  %v3562_v2 = vpop.f32.mrb[130].mxu0  ;;  %3847 = vmatprep.mubr.bf16.mxu1 %v2695_v3 }
 0x883   : > { %v3563_v54 = vpop.f32.mrb[131].mxu0 }
 0x884   : > { %v3564_v45 = vadd.f32 %v3563_v54, %v3562_v2  ;;  %v2679_v49 = vmul.f32 %v4214_v7, %v3561_v0 }
 0x886   : > { %v2680_v52 = vmul.f32 %v4216_v43, %v3564_v45 }
 0x888   : > { %v2696_v12 = vpack.c.bf16 %v2680_v52, %v2679_v49 }
 0x88a   : > { %3848 = vmatmul.mubr.bf16.gmra.mrb[128].mxu1 %v2696_v12 }
 0x8ed   : > { %v3821_v16 = vpop.f32.mrb[100].mxu1 }
 0x8ee   : > { %v2802_v47 = vpop.f32.mrb[101].mxu1  ;;  %v2811_v4 = vadd.f32 %v3821_v16, %v5411_v37 }
 0x8ef   : > { %v2803_v28 = vadd.f32 %v5411_v37, %v2802_v47  ;;  %v3822_v8 = vpop.f32.mrb[102].mxu1  ;;  %v2997_v47 = vld [vmem:[%s4336_s28] sm:$0xff] }
 0x8f0   : > { %v2805_v50 = vpop.f32.mrb[103].mxu1  ;;  %v2814_v21 = vadd.f32 %v3822_v8, %v5411_v37 }
 0x8f1   : > { %2929 = vxpose.xlu0.b32.start [1/16] %v2803_v28, 128  ;;  %v2806_v39 = vadd.f32 %v5411_v37, %v2805_v50  ;;  %v2999_v50 = vld [vmem:[%s4336_s28 + $0x10] sm:$0xff] }
 0x8f5   : > { %2930 = vxpose.xlu0.b32.cont [2/16] %v2806_v39, 128 }
 0x8f9   : > { %2931 = vxpose.xlu0.b32.cont [3/16] %v2811_v4, 128  ;;  %v3001_v4 = vld [vmem:[%s4336_s28 + $0x20] sm:$0xff] }
 0x8fd   : > { %v3825_v56 = vpop.f32.mrb[104].mxu1  ;;  %2932 = vxpose.xlu0.b32.cont [4/16] %v2814_v21, 128 }
 0x8fe   : > { %v2818_v24 = vpop.f32.mrb[105].mxu1  ;;  %v2827_v36 = vadd.f32 %v3825_v56, %v5411_v37 }
 0x8ff   : > { %v2819_v6 = vadd.f32 %v5411_v37, %v2818_v24  ;;  %v3826_v33 = vpop.f32.mrb[106].mxu1  ;;  %v3003_v24 = vld [vmem:[%s4336_s28 + $0x30] sm:$0xff] }
 0x900   : > { %v2821_v32 = vpop.f32.mrb[107].mxu1  ;;  %v2830_v31 = vadd.f32 %v3826_v33, %v5411_v37 }
 0x901   : > { %2933 = vxpose.xlu0.b32.cont [5/16] %v2819_v6, 128  ;;  %v2822_v41 = vadd.f32 %v5411_v37, %v2821_v32  ;;  %v3005_v32 = vld [vmem:[%s4336_s28 + $0x40] sm:$0xff] }
 0x905   : > { %2934 = vxpose.xlu0.b32.cont [6/16] %v2822_v41, 128 }
 0x909   : > { %2935 = vxpose.xlu0.b32.cont [7/16] %v2827_v36, 128 }
 0x90d   : > { %v3829_v48 = vpop.f32.mrb[108].mxu1  ;;  %2936 = vxpose.xlu0.b32.cont [8/16] %v2830_v31, 128  ;;  %v3007_v31 = vld [vmem:[%s4336_s28 + $0x50] sm:$0xff] }
 0x90e   : > { %v2834_v15 = vpop.f32.mrb[109].mxu1  ;;  %v2843_v60 = vadd.f32 %v3829_v48, %v5411_v37 }
 0x90f   : > { %v2835_v10 = vadd.f32 %v5411_v37, %v2834_v15  ;;  %v3830_v42 = vpop.f32.mrb[110].mxu1 }
 0x910   : > { %v2837_v62 = vpop.f32.mrb[111].mxu1  ;;  %v2846_v29 = vadd.f32 %v3830_v42, %v5411_v37 }
 0x911   : > { %2937 = vxpose.xlu0.b32.cont [9/16] %v2835_v10, 128  ;;  %v2838_v27 = vadd.f32 %v5411_v37, %v2837_v62  ;;  %v3009_v10 = vld [vmem:[%s4336_s28 + $0x60] sm:$0xff] }
 0x915   : > { %2938 = vxpose.xlu0.b32.cont [10/16] %v2838_v27, 128  ;;  %v3011_v27 = vld [vmem:[%s4336_s28 + $0x70] sm:$0xff] }
 0x919   : > { %2939 = vxpose.xlu0.b32.cont [11/16] %v2843_v60, 128 }
 0x91d   : > { %v3833_v63 = vpop.f32.mrb[112].mxu1  ;;  %2940 = vxpose.xlu0.b32.cont [12/16] %v2846_v29, 128 }
 0x91e   : > { %v2850_v44 = vpop.f32.mrb[113].mxu1  ;;  %v2859_v26 = vadd.f32 %v3833_v63, %v5411_v37  ;;  %v3013_v63 = vld [vmem:[%s4336_s28 + $0x80] sm:$0xff] }
 0x91f   : > { %v2851_v19 = vadd.f32 %v5411_v37, %v2850_v44  ;;  %v3834_v23 = vpop.f32.mrb[114].mxu1 }
 0x920   : > { %v2853_v59 = vpop.f32.mrb[115].mxu1  ;;  %v2862_v57 = vadd.f32 %v3834_v23, %v5411_v37  ;;  %v3015_v23 = vld [vmem:[%s4336_s28 + $0x90] sm:$0xff] }
 0x921   : > { %2941 = vxpose.xlu0.b32.cont [13/16] %v2851_v19, 128  ;;  %v2854_v17 = vadd.f32 %v5411_v37, %v2853_v59 }
 0x925   : > { %2942 = vxpose.xlu0.b32.cont [14/16] %v2854_v17, 128 }
 0x929   : > { %2943 = vxpose.xlu0.b32.cont [15/16] %v2859_v26, 128  ;;  %v3017_v26 = vld [vmem:[%s4336_s28 + $0xa0] sm:$0xff] }
 0x92d   : > { %v3837_v34 = vpop.f32.mrb[116].mxu1  ;;  %2944 = vxpose.xlu0.b32.end [16/16] %v2862_v57, 128 }
 0x92e   : > { %v2866_v14 = vpop.f32.mrb[117].mxu1  ;;  %v2875_v30 = vadd.f32 %v3837_v34, %v5411_v37 }
 0x92f   : > { %v2867_v58 = vadd.f32 %v5411_v37, %v2866_v14  ;;  %v3838_v61 = vpop.f32.mrb[118].mxu1  ;;  %v3019_v14 = vld [vmem:[%s4336_s28 + $0xb0] sm:$0xff] }
 0x930   : > { %v2869_v13 = vpop.f32.mrb[119].mxu1  ;;  %v2878_v25 = vadd.f32 %v3838_v61, %v5411_v37 }
 0x931   : > { %2961 = vxpose.xlu1.b32.start [1/16] %v2867_v58, 128  ;;  %v2870_v40 = vadd.f32 %v5411_v37, %v2869_v13  ;;  %v3021_v13 = vld [vmem:[%s4336_s28 + $0xc0] sm:$0xff] }
 0x935   : > { %2962 = vxpose.xlu1.b32.cont [2/16] %v2870_v40, 128 }
 0x939   : > { %2963 = vxpose.xlu1.b32.cont [3/16] %v2875_v30, 128 }
 0x93d   : > { %v3841_v51 = vpop.f32.mrb[120].mxu1  ;;  %2964 = vxpose.xlu1.b32.cont [4/16] %v2878_v25, 128  ;;  %v3023_v25 = vld [vmem:[%s4336_s28 + $0xd0] sm:$0xff] }
 0x93e   : > { %v2882_v5 = vpop.f32.mrb[121].mxu1  ;;  %v2891_v53 = vadd.f32 %v3841_v51, %v5411_v37 }
 0x93f   : > { %v2883_v11 = vadd.f32 %v5411_v37, %v2882_v5  ;;  %v3842_v1 = vpop.f32.mrb[122].mxu1 }
 0x940   : > { %v2885_v22 = vpop.f32.mrb[123].mxu1  ;;  %v2894_v18 = vadd.f32 %v3842_v1, %v5411_v37 }
 0x941   : > { %2965 = vxpose.xlu1.b32.cont [5/16] %v2883_v11, 128  ;;  %v2886_v38 = vadd.f32 %v5411_v37, %v2885_v22  ;;  %v3025_v11 = vld [vmem:[%s4336_s28 + $0xe0] sm:$0xff] }
 0x945   : > { %2966 = vxpose.xlu1.b32.cont [6/16] %v2886_v38, 128  ;;  %v3027_v38 = vld [vmem:[%s4336_s28 + $0xf0] sm:$0xff] }
 0x949   : > { %2967 = vxpose.xlu1.b32.cont [7/16] %v2891_v53, 128 }
 0x94d   : > { %v3845_v35 = vpop.f32.mrb[124].mxu1  ;;  %2968 = vxpose.xlu1.b32.cont [8/16] %v2894_v18, 128 }
 0x94e   : > { %v2898_v20 = vpop.f32.mrb[125].mxu1  ;;  %v2907_v0 = vadd.f32 %v3845_v35, %v5411_v37  ;;  %v2998_v35 = vld [vmem:[%s4336_s28 + $0x8] sm:$0xff] }
 0x94f   : > { %v2899_v46 = vadd.f32 %v5411_v37, %v2898_v20  ;;  %v3846_v9 = vpop.f32.mrb[126].mxu1 }
 0x950   : > { %v2901_v3 = vpop.f32.mrb[127].mxu1  ;;  %v2910_v2 = vadd.f32 %v3846_v9, %v5411_v37  ;;  %v3000_v9 = vld [vmem:[%s4336_s28 + $0x18] sm:$0xff] }
 0x951   : > { %2969 = vxpose.xlu1.b32.cont [9/16] %v2899_v46, 128  ;;  %v2902_v55 = vadd.f32 %v5411_v37, %v2901_v3 }
 0x955   : > { %2970 = vxpose.xlu1.b32.cont [10/16] %v2902_v55, 128 }
 0x959   : > { %2971 = vxpose.xlu1.b32.cont [11/16] %v2907_v0, 128  ;;  %v3002_v0 = vld [vmem:[%s4336_s28 + $0x28] sm:$0xff] }
 0x95d   : > { %v3849_v54 = vpop.f32.mrb[128].mxu1  ;;  %2972 = vxpose.xlu1.b32.cont [12/16] %v2910_v2, 128 }
 0x95e   : > { %v2914_v7 = vpop.f32.mrb[129].mxu1  ;;  %v2923_v12 = vadd.f32 %v3849_v54, %v5411_v37 }
 0x95f   : > { %v2915_v45 = vadd.f32 %v5411_v37, %v2914_v7  ;;  %v3850_v43 = vpop.f32.mrb[130].mxu1  ;;  %v3004_v7 = vld [vmem:[%s4336_s28 + $0x38] sm:$0xff] }
 0x960   : > { %v2917_v49 = vpop.f32.mrb[131].mxu1  ;;  %v2926_v16 = vadd.f32 %v3850_v43, %v5411_v37 }
 0x961   : > { %2973 = vxpose.xlu1.b32.cont [13/16] %v2915_v45, 128  ;;  %v2918_v52 = vadd.f32 %v5411_v37, %v2917_v49  ;;  %v3006_v49 = vld [vmem:[%s4336_s28 + $0x48] sm:$0xff] }
 0x965   : > { %2974 = vxpose.xlu1.b32.cont [14/16] %v2918_v52, 128 }
 0x969   : > { %2975 = vxpose.xlu1.b32.cont [15/16] %v2923_v12, 128 }
 0x96d   : > { %2976 = vxpose.xlu1.b32.end [16/16] %v2926_v16, 128  ;;  %v3008_v16 = vld [vmem:[%s4336_s28 + $0x58] sm:$0xff] }
 0x971   : > { %v2945_v28 = vpop.trf.xlu0 }
 0x972   : > { %v3029_v8 = vadd.f32 %v2997_v47, %v2945_v28 }
 0x974   : > { %3061 = vst [vmem:[%s5451_s13] sm:$0xff] %v3029_v8  ;;  %v3010_v8 = vld [vmem:[%s4336_s28 + $0x68] sm:$0xff] }
 0x975   : > { %v2946_v37 = vpop.trf.xlu0 }
 0x976   : > { %v3031_v39 = vadd.f32 %v2999_v50, %v2946_v37 }
 0x978   : > { %3063 = vst [vmem:[%s5451_s13 + $0x10] sm:$0xff] %v3031_v39  ;;  %v3012_v39 = vld [vmem:[%s4336_s28 + $0x78] sm:$0xff] }
 0x979   : > { %v2947_v21 = vpop.trf.xlu0 }
 0x97a   : > { %v3033_v56 = vadd.f32 %v3001_v4, %v2947_v21 }
 0x97c   : > { %3065 = vst [vmem:[%s5451_s13 + $0x20] sm:$0xff] %v3033_v56  ;;  %v3014_v56 = vld [vmem:[%s4336_s28 + $0x88] sm:$0xff] }
 0x97d   : > { %v2948_v6 = vpop.trf.xlu0 }
 0x97e   : > { %v3035_v33 = vadd.f32 %v3003_v24, %v2948_v6 }
 0x980   : > { %3067 = vst [vmem:[%s5451_s13 + $0x30] sm:$0xff] %v3035_v33  ;;  %v3016_v33 = vld [vmem:[%s4336_s28 + $0x98] sm:$0xff] }
 0x981   : > { %v2949_v41 = vpop.trf.xlu0 }
 0x982   : > { %v3037_v36 = vadd.f32 %v3005_v32, %v2949_v41 }
 0x984   : > { %3069 = vst [vmem:[%s5451_s13 + $0x40] sm:$0xff] %v3037_v36  ;;  %v3018_v36 = vld [vmem:[%s4336_s28 + $0xa8] sm:$0xff] }
 0x985   : > { %v2950_v48 = vpop.trf.xlu0 }
 0x986   : > { %v3039_v15 = vadd.f32 %v3007_v31, %v2950_v48 }
 0x988   : > { %3071 = vst [vmem:[%s5451_s13 + $0x50] sm:$0xff] %v3039_v15  ;;  %v3020_v15 = vld [vmem:[%s4336_s28 + $0xb8] sm:$0xff] }
 0x989   : > { %v2951_v42 = vpop.trf.xlu0 }
 0x98a   : > { %v3041_v62 = vadd.f32 %v3009_v10, %v2951_v42 }
 0x98c   : > { %3073 = vst [vmem:[%s5451_s13 + $0x60] sm:$0xff] %v3041_v62  ;;  %v3022_v62 = vld [vmem:[%s4336_s28 + $0xc8] sm:$0xff] }
 0x98d   : > { %v2952_v60 = vpop.trf.xlu0 }
 0x98e   : > { %v3043_v29 = vadd.f32 %v3011_v27, %v2952_v60 }
 0x990   : > { %3075 = vst [vmem:[%s5451_s13 + $0x70] sm:$0xff] %v3043_v29  ;;  %v3024_v29 = vld [vmem:[%s4336_s28 + $0xd8] sm:$0xff] }
 0x991   : > { %v2953_v44 = vpop.trf.xlu0 }
 0x992   : > { %v3045_v19 = vadd.f32 %v3013_v63, %v2953_v44 }
 0x994   : > { %3077 = vst [vmem:[%s5451_s13 + $0x80] sm:$0xff] %v3045_v19  ;;  %v3026_v19 = vld [vmem:[%s4336_s28 + $0xe8] sm:$0xff] }
 0x995   : > { %v2954_v59 = vpop.trf.xlu0 }
 0x996   : > { %v3047_v17 = vadd.f32 %v3015_v23, %v2954_v59 }
 0x998   : > { %3079 = vst [vmem:[%s5451_s13 + $0x90] sm:$0xff] %v3047_v17  ;;  %v3028_v17 = vld [vmem:[%s4336_s28 + $0xf8] sm:$0xff] }
 0x999   : > { %v2955_v57 = vpop.trf.xlu0 }
 0x99a   : > { %v3049_v34 = vadd.f32 %v3017_v26, %v2955_v57 }
 0x99c   : > { %3081 = vst [vmem:[%s5451_s13 + $0xa0] sm:$0xff] %v3049_v34 }
 0x99d   : > { %v2956_v58 = vpop.trf.xlu0 }
 0x99e   : > { %v3051_v61 = vadd.f32 %v3019_v14, %v2956_v58 }
 0x9a0   : > { %3083 = vst [vmem:[%s5451_s13 + $0xb0] sm:$0xff] %v3051_v61 }
 0x9a1   : > { %v2957_v40 = vpop.trf.xlu0 }
 0x9a2   : > { %v3053_v30 = vadd.f32 %v3021_v13, %v2957_v40 }
 0x9a4   : > { %3085 = vst [vmem:[%s5451_s13 + $0xc0] sm:$0xff] %v3053_v30 }
 0x9a5   : > { %v2958_v51 = vpop.trf.xlu0 }
 0x9a6   : > { %v3055_v5 = vadd.f32 %v3023_v25, %v2958_v51 }
 0x9a8   : > { %3087 = vst [vmem:[%s5451_s13 + $0xd0] sm:$0xff] %v3055_v5 }
 0x9a9   : > { %v2959_v1 = vpop.trf.xlu0 }
 0x9aa   : > { %v3057_v22 = vadd.f32 %v3025_v11, %v2959_v1 }
 0x9ac   : > { %3089 = vst [vmem:[%s5451_s13 + $0xe0] sm:$0xff] %v3057_v22 }
 0x9ad   : > { %v2960_v53 = vpop.trf.xlu0 }
 0x9ae   : > { %v3059_v18 = vadd.f32 %v3027_v38, %v2960_v53 }
 0x9b0   : > { %3091 = vst [vmem:[%s5451_s13 + $0xf0] sm:$0xff] %v3059_v18 }
 0x9b1   : > { %v2977_v20 = vpop.trf.xlu1 }
 0x9b2   : > { %v3030_v46 = vadd.f32 %v2998_v35, %v2977_v20 }
 0x9b4   : > { %3062 = vst [vmem:[%s5451_s13 + $0x8] sm:$0xff] %v3030_v46 }
 0x9b5   : > { %v2978_v3 = vpop.trf.xlu1 }
 0x9b6   : > { %v3032_v55 = vadd.f32 %v3000_v9, %v2978_v3 }
 0x9b8   : > { %3064 = vst [vmem:[%s5451_s13 + $0x18] sm:$0xff] %v3032_v55 }
 0x9b9   : > { %v2979_v2 = vpop.trf.xlu1 }
 0x9ba   : > { %v3034_v54 = vadd.f32 %v3002_v0, %v2979_v2 }
 0x9bc   : > { %3066 = vst [vmem:[%s5451_s13 + $0x28] sm:$0xff] %v3034_v54 }
 0x9bd   : > { %v2980_v45 = vpop.trf.xlu1 }
 0x9be   : > { %v3036_v43 = vadd.f32 %v3004_v7, %v2980_v45 }
 0x9c0   : > { %3068 = vst [vmem:[%s5451_s13 + $0x38] sm:$0xff] %v3036_v43 }
 0x9c1   : > { %v2981_v52 = vpop.trf.xlu1 }
 0x9c2   : > { %v3038_v12 = vadd.f32 %v3006_v49, %v2981_v52 }
 0x9c4   : > { %3070 = vst [vmem:[%s5451_s13 + $0x48] sm:$0xff] %v3038_v12 }
 0x9c5   : > { %v2982_v47 = vpop.trf.xlu1 }
 0x9c6   : > { %v3040_v28 = vadd.f32 %v3008_v16, %v2982_v47 }
 0x9c8   : > { %3072 = vst [vmem:[%s5451_s13 + $0x58] sm:$0xff] %v3040_v28 }
 0x9c9   : > { %v2983_v50 = vpop.trf.xlu1 }
 0x9ca   : > { %v3042_v37 = vadd.f32 %v3010_v8, %v2983_v50 }
 0x9cc   : > { %3074 = vst [vmem:[%s5451_s13 + $0x68] sm:$0xff] %v3042_v37 }
 0x9cd   : > { %v2984_v4 = vpop.trf.xlu1 }
 0x9ce   : > { %v3044_v21 = vadd.f32 %v3012_v39, %v2984_v4 }
 0x9d0   : > { %3076 = vst [vmem:[%s5451_s13 + $0x78] sm:$0xff] %v3044_v21 }
 0x9d1   : > { %v2985_v24 = vpop.trf.xlu1 }
 0x9d2   : > { %v3046_v6 = vadd.f32 %v3014_v56, %v2985_v24 }
 0x9d4   : > { %3078 = vst [vmem:[%s5451_s13 + $0x88] sm:$0xff] %v3046_v6 }
 0x9d5   : > { %v2986_v32 = vpop.trf.xlu1 }
 0x9d6   : > { %v3048_v41 = vadd.f32 %v3016_v33, %v2986_v32 }
 0x9d8   : > { %3080 = vst [vmem:[%s5451_s13 + $0x98] sm:$0xff] %v3048_v41 }
 0x9d9   : > { %v2987_v31 = vpop.trf.xlu1 }
 0x9da   : > { %v3050_v48 = vadd.f32 %v3018_v36, %v2987_v31 }
 0x9dc   : > { %3082 = vst [vmem:[%s5451_s13 + $0xa8] sm:$0xff] %v3050_v48 }
 0x9dd   : > { %v2988_v10 = vpop.trf.xlu1 }
 0x9de   : > { %v3052_v42 = vadd.f32 %v3020_v15, %v2988_v10 }
 0x9e0   : > { %3084 = vst [vmem:[%s5451_s13 + $0xb8] sm:$0xff] %v3052_v42 }
 0x9e1   : > { %v2989_v27 = vpop.trf.xlu1 }
 0x9e2   : > { %v3054_v60 = vadd.f32 %v3022_v62, %v2989_v27 }
 0x9e4   : > { %3086 = vst [vmem:[%s5451_s13 + $0xc8] sm:$0xff] %v3054_v60 }
 0x9e5   : > { %v2990_v63 = vpop.trf.xlu1 }
 0x9e6   : > { %v3056_v44 = vadd.f32 %v3024_v29, %v2990_v63 }
 0x9e8   : > { %3088 = vst [vmem:[%s5451_s13 + $0xd8] sm:$0xff] %v3056_v44 }
 0x9e9   : > { %v2991_v23 = vpop.trf.xlu1 }
 0x9ea   : > { %v3058_v59 = vadd.f32 %v3026_v19, %v2991_v23 }
 0x9ec   : > { %3090 = vst [vmem:[%s5451_s13 + $0xe8] sm:$0xff] %v3058_v59 }
 0x9ed   : > { %v2992_v26 = vpop.trf.xlu1 }
 0x9ee   : > { %v3060_v57 = vadd.f32 %v3028_v17, %v2992_v26 }
 0x9f0   : > { %3092 = vst [vmem:[%s5451_s13 + $0xf8] sm:$0xff] %v3060_v57 }
 0x9f1 PF: > { %s22_s23 = sadd.s32 1, %s4239_s23   ;;  %s5583_s21 = smov %s4235_s22 }
 0x9f2   : > { %p19_p5 = scmp.ge.s32.totalorder %s22_s23, 4   ;;  %s5584_s22 = smov %s5586_s24 }
 0x9f4   :  { %21 = sbr.rel (!%p19_p5) target bundleno = 2 (0x2), region = 104 }

</bundles_post_ra>
